<compile_context>
chip_gen: v7x
topology: tpu7x:2x2x1
jax: 0.10.0
libtpu: 0.0.40
codegen_flags: <defaults>
</compile_context>

<pallas_src>
import jax
import jax.numpy as jnp
from jax.experimental import pallas as pl
from jax.experimental.pallas import tpu as pltpu

NEG_SLOPE = 0.2


def _lrelu(v):
    # leaky_relu(v) == max(v, 0.2*v) for slope in (0, 1)
    return jnp.maximum(v, NEG_SLOPE * v)


def _channel_mix(w, x):
    """(Co, Ci) x (Ci, L) -> (Co, L), f32 accumulation.

    For tiny channel counts the MXU tile would be >95% padding, so use VPU
    broadcast-FMAs instead (perf-review item: skip MXU for C <= 8)."""
    co, ci = w.shape
    if ci <= 8:
        acc = w[:, 0:1] * x[0:1, :]
        for c in range(1, ci):
            acc = acc + w[:, c:c + 1] * x[c:c + 1, :]
        return acc
    return jnp.dot(w, x, preferred_element_type=jnp.float32)


def _make_aab_kernel(C, H, W, t):
    HW = H * W

    def kernel(x_ref, mask_ref, wf_ref, wl_ref,
               wk1_ref, wk2_ref, bk2_ref, wk3_ref, wk4_ref, wna_ref,
               adm1_ref, adm2_ref, o_ref):
        # x_ref: (C, HW) one image, channels on sublanes, spatial on lanes.
        x = x_ref[...].astype(jnp.float32)

        def shifted_taps(v):
            """Nine (dy, dx) shifted+zero-padded copies of v, shared by 3x3 convs."""
            taps = []
            for tap in range(9):
                dy = tap // 3 - 1
                dx = tap % 3 - 1
                off = dy * W + dx
                s = v if off == 0 else pltpu.roll(v, shift=(-off) % HW, axis=1)
                taps.append(s * mask_ref[tap])       # mask zeroes the borders
            return taps

        def conv3x3(w9_ref, taps):
            acc = _channel_mix(w9_ref[0].astype(jnp.float32), taps[0])
            for tap in range(1, 9):
                acc = acc + _channel_mix(w9_ref[tap].astype(jnp.float32), taps[tap])
            return acc

        # conv_first (1x1, no bias) + leaky relu
        y_in = _lrelu(_channel_mix(wf_ref[...].astype(jnp.float32), x))

        # --- Attention Dropout Module: global avg pool -> MLP -> softmax(./t) ---
        pooled = jnp.mean(y_in, axis=1, keepdims=True)                       # (C, 1)
        h = jnp.maximum(_channel_mix(adm1_ref[...].astype(jnp.float32), pooled), 0.0)
        logits = _channel_mix(adm2_ref[...].astype(jnp.float32), h) * (1.0 / t)  # (2, 1)
        m = jnp.max(logits, keepdims=True)
        e = jnp.exp(logits - m)
        probs = e / jnp.sum(e, keepdims=True)                                # (2, 1)
        w_att = probs[0:1, 0:1]                                              # (1, 1)
        w_non = probs[1:2, 0:1]

        # --- Attention branch & non-attention branch (share y_in taps) -----
        taps_in = shifted_taps(y_in)
        a = _lrelu(conv3x3(wk1_ref, taps_in))                                # k1 + lrelu
        a = _channel_mix(wk2_ref[...].astype(jnp.float32), a) \
            + bk2_ref[...].astype(jnp.float32)                               # k2 (1x1 + bias)
        att = jax.nn.sigmoid(a)
        y3 = conv3x3(wk3_ref, taps_in)                                       # k3
        y_ab = conv3x3(wk4_ref, shifted_taps(y3 * att))                      # k4
        y_nab = conv3x3(wna_ref, taps_in)                                    # non_attention

        y = _lrelu(y_ab * w_att + y_nab * w_non)
        out = _channel_mix(wl_ref[...].astype(jnp.float32), y) + x           # conv_last + residual
        o_ref[...] = out.astype(o_ref.dtype)

    return kernel


def aab_forward(x, params, *, t=30.0):
    """x: (N, C, H, W) NCHW. params: PyTorch-convention weights (see __main__)."""
    N, C, H, W = x.shape
    HW = H * W
    Cr = params["adm_w1"].shape[0]

    # Native NCHW: a free reshape puts H*W on the (lane-dense) last axis.
    x3 = x.reshape(N, C, HW)

    # Border-validity masks for the nine 3x3 taps (shared by all 3x3 convs).
    rows = jnp.arange(H, dtype=jnp.int32)[:, None]
    cols = jnp.arange(W, dtype=jnp.int32)[None, :]
    masks = []
    for tap in range(9):
        dy = tap // 3 - 1
        dx = tap % 3 - 1
        m = ((rows + dy >= 0) & (rows + dy < H) &
             (cols + dx >= 0) & (cols + dx < W))
        masks.append(m.reshape(1, HW))
    tap_mask = jnp.stack(masks, axis=0).astype(jnp.float32)      # (9, 1, HW)

    def tap_major(w):  # (Co, Ci, 3, 3) -> (9, Co, Ci), tap = (dy+1)*3 + (dx+1)
        return jnp.transpose(w, (2, 3, 0, 1)).reshape(9, C, C)

    wk1 = tap_major(params["w_k1"])
    wk3 = tap_major(params["w_k3"])
    wk4 = tap_major(params["w_k4"])
    wna = tap_major(params["w_na"])
    bk2 = params["b_k2"].reshape(C, 1)

    kernel = _make_aab_kernel(C, H, W, float(t))

    def res_spec(shape):  # resident (VMEM) weight/constant: same block every step
        return pl.BlockSpec(shape, lambda b, _n=len(shape): (0,) * _n)

    out3 = pl.pallas_call(
        kernel,
        out_shape=jax.ShapeDtypeStruct((N, C, HW), x.dtype),
        grid_spec=pltpu.PrefetchScalarGridSpec(
            num_scalar_prefetch=0,
            grid=(N,),
            in_specs=[
                pl.BlockSpec((None, C, HW), lambda b: (b, 0, 0)),   # x (one image)
                res_spec((9, 1, HW)),     # tap border masks
                res_spec((C, C)),         # conv_first
                res_spec((C, C)),         # conv_last
                res_spec((9, C, C)),      # k1
                res_spec((C, C)),         # k2 weight
                res_spec((C, 1)),         # k2 bias
                res_spec((9, C, C)),      # k3
                res_spec((9, C, C)),      # k4
                res_spec((9, C, C)),      # non_attention
                res_spec((Cr, C)),        # ADM linear 1
                res_spec((2, Cr)),        # ADM linear 2
            ],
            out_specs=pl.BlockSpec((None, C, HW), lambda b: (b, 0, 0)),
        ),
        compiler_params=pltpu.CompilerParams(
            dimension_semantics=("parallel",),
        ),
    )(x3, tap_mask, params["w_first"], params["w_last"],
      wk1, params["w_k2"], bk2, wk3, wk4, wna,
      params["adm_w1"], params["adm_w2"])

    return out3.reshape(N, C, H, W)


def aab_reference(x, params, *, t=30.0):
    """Pure-JAX reference mirroring the PyTorch AAB forward."""
    def lrelu(v):
        return jnp.where(v >= 0, v, NEG_SLOPE * v)

    def conv3(inp, w):
        return jax.lax.conv_general_dilated(
            inp, w, window_strides=(1, 1), padding=[(1, 1), (1, 1)],
            dimension_numbers=("NCHW", "OIHW", "NCHW"))

    def conv1(inp, w):
        return jnp.einsum("oc,nchw->nohw", w, inp)

    y_in = lrelu(conv1(x, params["w_first"]))
    pooled = jnp.mean(y_in, axis=(2, 3))                          # (N, C)
    h = jax.nn.relu(pooled @ params["adm_w1"].T)                  # (N, Cr)
    logits = h @ params["adm_w2"].T                               # (N, 2)
    probs = jax.nn.softmax(logits / t, axis=1)

    a = lrelu(conv3(y_in, params["w_k1"]))
    a = conv1(a, params["w_k2"]) + params["b_k2"][None, :, None, None]
    att = jax.nn.sigmoid(a)
    y_ab = conv3(conv3(y_in, params["w_k3"]) * att, params["w_k4"])
    y_nab = conv3(y_in, params["w_na"])

    y = lrelu(y_ab * probs[:, 0][:, None, None, None]
              + y_nab * probs[:, 1][:, None, None, None])
    return conv1(y, params["w_last"]) + x


if __name__ == "__main__":
    key = jax.random.PRNGKey(0)
    keys = jax.random.split(key, 11)

    N, C, H, W = 2, 4, 16, 16
    radio, t = 4, 30.0
    Cr = C // radio

    def uinit(k, shape, fan_in):
        bound = 1.0 / (fan_in ** 0.5)
        return jax.random.uniform(k, shape, minval=-bound, maxval=bound,
                                  dtype=jnp.float32)

    params = {
        "w_first": uinit(keys[0], (C, C), C),              # conv_first 1x1 (no bias)
        "w_last":  uinit(keys[1], (C, C), C),              # conv_last  1x1 (no bias)
        "w_k1":    uinit(keys[2], (C, C, 3, 3), C * 9),    # k1 3x3 (no bias)
        "w_k2":    uinit(keys[3], (C, C), C),              # k2 1x1 weight
        "b_k2":    uinit(keys[4], (C,), C),                # k2 1x1 bias
        "w_k3":    uinit(keys[5], (C, C, 3, 3), C * 9),    # k3 3x3 (no bias)
        "w_k4":    uinit(keys[6], (C, C, 3, 3), C * 9),    # k4 3x3 (no bias)
        "w_na":    uinit(keys[7], (C, C, 3, 3), C * 9),    # non_attention 3x3
        "adm_w1":  uinit(keys[8], (Cr, C), C),             # Linear(C, C//radio)
        "adm_w2":  uinit(keys[9], (2, Cr), max(Cr, 1)),    # Linear(C//radio, 2)
    }
    x = jax.random.normal(keys[10], (N, C, H, W), dtype=jnp.float32)

    out = aab_forward(x, params, t=t)
    out = jax.block_until_ready(out)

    ref = aab_reference(x, params, t=t)
    assert out.shape == x.shape, (out.shape, x.shape)
    err = float(jnp.max(jnp.abs(out - ref)))
    assert err < 1e-4, f"mismatch vs reference: max abs err = {err}"

    print("KERNEL_OK")
</pallas_src>

<mosaic_0001>
module attributes {stable_mosaic.version = 11 : i64} {
  func.func @kernel(%arg0: i32, %arg1: memref<1x4x256xf32, #tpu.memory_space<vmem>>, %arg2: memref<9x1x256xf32, #tpu.memory_space<vmem>>, %arg3: memref<4x4xf32, #tpu.memory_space<vmem>>, %arg4: memref<4x4xf32, #tpu.memory_space<vmem>>, %arg5: memref<9x4x4xf32, #tpu.memory_space<vmem>>, %arg6: memref<4x4xf32, #tpu.memory_space<vmem>>, %arg7: memref<4x1xf32, #tpu.memory_space<vmem>>, %arg8: memref<9x4x4xf32, #tpu.memory_space<vmem>>, %arg9: memref<9x4x4xf32, #tpu.memory_space<vmem>>, %arg10: memref<9x4x4xf32, #tpu.memory_space<vmem>>, %arg11: memref<1x4xf32, #tpu.memory_space<vmem>>, %arg12: memref<2x1xf32, #tpu.memory_space<vmem>>, %arg13: memref<1x4x256xf32, #tpu.memory_space<vmem>>) attributes {dimension_semantics = [#tpu.dimension_semantics<parallel>], iteration_bounds = array<i64: 2>, scalar_prefetch = 0 : i64, scratch_operands = 0 : i64, tpu.core_type = #tpu.core_type<tc>, window_params = [{transform_indices = @transform_0, window_bounds = array<i64: 1, 4, 256>}, {pipeline_mode = #tpu.pipeline_mode<synchronous>, transform_indices = @transform_1, window_bounds = array<i64: 9, 1, 256>}, {pipeline_mode = #tpu.pipeline_mode<synchronous>, transform_indices = @transform_2, window_bounds = array<i64: 4, 4>}, {pipeline_mode = #tpu.pipeline_mode<synchronous>, transform_indices = @transform_3, window_bounds = array<i64: 4, 4>}, {pipeline_mode = #tpu.pipeline_mode<synchronous>, transform_indices = @transform_4, window_bounds = array<i64: 9, 4, 4>}, {pipeline_mode = #tpu.pipeline_mode<synchronous>, transform_indices = @transform_5, window_bounds = array<i64: 4, 4>}, {pipeline_mode = #tpu.pipeline_mode<synchronous>, transform_indices = @transform_6, window_bounds = array<i64: 4, 1>}, {pipeline_mode = #tpu.pipeline_mode<synchronous>, transform_indices = @transform_7, window_bounds = array<i64: 9, 4, 4>}, {pipeline_mode = #tpu.pipeline_mode<synchronous>, transform_indices = @transform_8, window_bounds = array<i64: 9, 4, 4>}, {pipeline_mode = #tpu.pipeline_mode<synchronous>, transform_indices = @transform_9, window_bounds = array<i64: 9, 4, 4>}, {pipeline_mode = #tpu.pipeline_mode<synchronous>, transform_indices = @transform_10, window_bounds = array<i64: 1, 4>}, {pipeline_mode = #tpu.pipeline_mode<synchronous>, transform_indices = @transform_11, window_bounds = array<i64: 2, 1>}, {transform_indices = @transform_12, window_bounds = array<i64: 1, 4, 256>}]} {
    %c0 = arith.constant 0 : index
    %c0_0 = arith.constant 0 : index
    %c0_1 = arith.constant 0 : index
    %0 = vector.load %arg1[%c0, %c0_0, %c0_1] : memref<1x4x256xf32, #tpu.memory_space<vmem>>, vector<1x4x256xf32>
    %1 = vector.shape_cast %0 : vector<1x4x256xf32> to vector<4x256xf32>
    %c0_2 = arith.constant 0 : index
    %c0_3 = arith.constant 0 : index
    %2 = vector.load %arg3[%c0_2, %c0_3] : memref<4x4xf32, #tpu.memory_space<vmem>>, vector<4x4xf32>
    %3 = vector.extract_strided_slice %2 {offsets = [0, 0], sizes = [4, 1], strides = [1, 1]} : vector<4x4xf32> to vector<4x1xf32>
    %4 = vector.extract_strided_slice %1 {offsets = [0, 0], sizes = [1, 256], strides = [1, 1]} : vector<4x256xf32> to vector<1x256xf32>
    %5 = vector.broadcast %3 : vector<4x1xf32> to vector<4x256xf32>
    %6 = vector.broadcast %4 : vector<1x256xf32> to vector<4x256xf32>
    %7 = arith.mulf %5, %6 : vector<4x256xf32>
    %8 = vector.extract_strided_slice %2 {offsets = [0, 1], sizes = [4, 1], strides = [1, 1]} : vector<4x4xf32> to vector<4x1xf32>
    %9 = vector.extract_strided_slice %1 {offsets = [1, 0], sizes = [1, 256], strides = [1, 1]} : vector<4x256xf32> to vector<1x256xf32>
    %10 = vector.broadcast %8 : vector<4x1xf32> to vector<4x256xf32>
    %11 = vector.broadcast %9 : vector<1x256xf32> to vector<4x256xf32>
    %12 = arith.mulf %10, %11 : vector<4x256xf32>
    %13 = arith.addf %7, %12 : vector<4x256xf32>
    %14 = vector.extract_strided_slice %2 {offsets = [0, 2], sizes = [4, 1], strides = [1, 1]} : vector<4x4xf32> to vector<4x1xf32>
    %15 = vector.extract_strided_slice %1 {offsets = [2, 0], sizes = [1, 256], strides = [1, 1]} : vector<4x256xf32> to vector<1x256xf32>
    %16 = vector.broadcast %14 : vector<4x1xf32> to vector<4x256xf32>
    %17 = vector.broadcast %15 : vector<1x256xf32> to vector<4x256xf32>
    %18 = arith.mulf %16, %17 : vector<4x256xf32>
    %19 = arith.addf %13, %18 : vector<4x256xf32>
    %20 = vector.extract_strided_slice %2 {offsets = [0, 3], sizes = [4, 1], strides = [1, 1]} : vector<4x4xf32> to vector<4x1xf32>
    %21 = vector.extract_strided_slice %1 {offsets = [3, 0], sizes = [1, 256], strides = [1, 1]} : vector<4x256xf32> to vector<1x256xf32>
    %22 = vector.broadcast %20 : vector<4x1xf32> to vector<4x256xf32>
    %23 = vector.broadcast %21 : vector<1x256xf32> to vector<4x256xf32>
    %24 = arith.mulf %22, %23 : vector<4x256xf32>
    %25 = arith.addf %19, %24 : vector<4x256xf32>
    %cst = arith.constant 2.000000e-01 : f32
    %26 = vector.broadcast %cst : f32 to vector<4x256xf32>
    %27 = arith.mulf %26, %25 : vector<4x256xf32>
    %28 = arith.maximumf %25, %27 : vector<4x256xf32>
    %cst_4 = arith.constant dense<0.000000e+00> : vector<4xf32>
    %29 = vector.multi_reduction <add>, %28, %cst_4 [1] : vector<4x256xf32> to vector<4xf32>
    %30 = vector.shape_cast %29 : vector<4xf32> to vector<4x1xf32>
    %cst_5 = arith.constant 2.560000e+02 : f32
    %31 = vector.broadcast %cst_5 : f32 to vector<4x1xf32>
    %32 = arith.divf %30, %31 : vector<4x1xf32>
    %c0_6 = arith.constant 0 : index
    %c0_7 = arith.constant 0 : index
    %33 = vector.load %arg11[%c0_6, %c0_7] : memref<1x4xf32, #tpu.memory_space<vmem>>, vector<1x4xf32>
    %34 = vector.extract_strided_slice %33 {offsets = [0, 0], sizes = [1, 1], strides = [1, 1]} : vector<1x4xf32> to vector<1x1xf32>
    %35 = vector.extract_strided_slice %32 {offsets = [0, 0], sizes = [1, 1], strides = [1, 1]} : vector<4x1xf32> to vector<1x1xf32>
    %36 = arith.mulf %34, %35 : vector<1x1xf32>
    %37 = vector.extract_strided_slice %33 {offsets = [0, 1], sizes = [1, 1], strides = [1, 1]} : vector<1x4xf32> to vector<1x1xf32>
    %38 = vector.extract_strided_slice %32 {offsets = [1, 0], sizes = [1, 1], strides = [1, 1]} : vector<4x1xf32> to vector<1x1xf32>
    %39 = arith.mulf %37, %38 : vector<1x1xf32>
    %40 = arith.addf %36, %39 : vector<1x1xf32>
    %41 = vector.extract_strided_slice %33 {offsets = [0, 2], sizes = [1, 1], strides = [1, 1]} : vector<1x4xf32> to vector<1x1xf32>
    %42 = vector.extract_strided_slice %32 {offsets = [2, 0], sizes = [1, 1], strides = [1, 1]} : vector<4x1xf32> to vector<1x1xf32>
    %43 = arith.mulf %41, %42 : vector<1x1xf32>
    %44 = arith.addf %40, %43 : vector<1x1xf32>
    %45 = vector.extract_strided_slice %33 {offsets = [0, 3], sizes = [1, 1], strides = [1, 1]} : vector<1x4xf32> to vector<1x1xf32>
    %46 = vector.extract_strided_slice %32 {offsets = [3, 0], sizes = [1, 1], strides = [1, 1]} : vector<4x1xf32> to vector<1x1xf32>
    %47 = arith.mulf %45, %46 : vector<1x1xf32>
    %48 = arith.addf %44, %47 : vector<1x1xf32>
    %cst_8 = arith.constant 0.000000e+00 : f32
    %49 = vector.broadcast %cst_8 : f32 to vector<1x1xf32>
    %50 = arith.maximumf %48, %49 : vector<1x1xf32>
    %c0_9 = arith.constant 0 : index
    %c0_10 = arith.constant 0 : index
    %51 = vector.load %arg12[%c0_9, %c0_10] : memref<2x1xf32, #tpu.memory_space<vmem>>, vector<2x1xf32>
    %52 = vector.broadcast %50 : vector<1x1xf32> to vector<2x1xf32>
    %53 = arith.mulf %51, %52 : vector<2x1xf32>
    %cst_11 = arith.constant 0.0333333351 : f32
    %54 = vector.broadcast %cst_11 : f32 to vector<2x1xf32>
    %55 = arith.mulf %53, %54 : vector<2x1xf32>
    %56 = vector.shape_cast %55 : vector<2x1xf32> to vector<1x2x1xf32>
    %cst_12 = arith.constant dense<0xFF800000> : vector<1xf32>
    %57 = vector.multi_reduction <maximumf>, %56, %cst_12 [1, 2] : vector<1x2x1xf32> to vector<1xf32>
    %58 = vector.shape_cast %57 : vector<1xf32> to vector<1x1x1xf32>
    %59 = vector.extract %58[0, 0, 0] : f32 from vector<1x1x1xf32>
    %60 = vector.broadcast %59 : f32 to vector<1x1xf32>
    %61 = vector.broadcast %60 : vector<1x1xf32> to vector<2x1xf32>
    %62 = arith.subf %55, %61 : vector<2x1xf32>
    %63 = math.exp %62 : vector<2x1xf32>
    %64 = vector.shape_cast %63 : vector<2x1xf32> to vector<1x2x1xf32>
    %cst_13 = arith.constant dense<0.000000e+00> : vector<1xf32>
    %65 = vector.multi_reduction <add>, %64, %cst_13 [1, 2] : vector<1x2x1xf32> to vector<1xf32>
    %66 = vector.shape_cast %65 : vector<1xf32> to vector<1x1x1xf32>
    %67 = vector.extract %66[0, 0, 0] : f32 from vector<1x1x1xf32>
    %68 = vector.broadcast %67 : f32 to vector<1x1xf32>
    %69 = vector.broadcast %68 : vector<1x1xf32> to vector<2x1xf32>
    %70 = arith.divf %63, %69 : vector<2x1xf32>
    %71 = vector.extract_strided_slice %70 {offsets = [0, 0], sizes = [1, 1], strides = [1, 1]} : vector<2x1xf32> to vector<1x1xf32>
    %72 = vector.extract_strided_slice %70 {offsets = [1, 0], sizes = [1, 1], strides = [1, 1]} : vector<2x1xf32> to vector<1x1xf32>
    %c17_i32 = arith.constant 17 : i32
    %73 = tpu.dynamic_rotate %28 by %c17_i32 dim 1 : vector<4x256xf32>, i32 -> vector<4x256xf32>
    %c0_14 = arith.constant 0 : index
    %c0_15 = arith.constant 0 : index
    %c0_16 = arith.constant 0 : index
    %74 = vector.load %arg2[%c0_14, %c0_15, %c0_16] : memref<9x1x256xf32, #tpu.memory_space<vmem>>, vector<1x1x256xf32>
    %75 = vector.shape_cast %74 : vector<1x1x256xf32> to vector<1x256xf32>
    %76 = vector.broadcast %75 : vector<1x256xf32> to vector<4x256xf32>
    %77 = arith.mulf %73, %76 : vector<4x256xf32>
    %c16_i32 = arith.constant 16 : i32
    %78 = tpu.dynamic_rotate %28 by %c16_i32 dim 1 : vector<4x256xf32>, i32 -> vector<4x256xf32>
    %c1 = arith.constant 1 : index
    %c0_17 = arith.constant 0 : index
    %c0_18 = arith.constant 0 : index
    %79 = vector.load %arg2[%c1, %c0_17, %c0_18] : memref<9x1x256xf32, #tpu.memory_space<vmem>>, vector<1x1x256xf32>
    %80 = vector.shape_cast %79 : vector<1x1x256xf32> to vector<1x256xf32>
    %81 = vector.broadcast %80 : vector<1x256xf32> to vector<4x256xf32>
    %82 = arith.mulf %78, %81 : vector<4x256xf32>
    %c15_i32 = arith.constant 15 : i32
    %83 = tpu.dynamic_rotate %28 by %c15_i32 dim 1 : vector<4x256xf32>, i32 -> vector<4x256xf32>
    %c2 = arith.constant 2 : index
    %c0_19 = arith.constant 0 : index
    %c0_20 = arith.constant 0 : index
    %84 = vector.load %arg2[%c2, %c0_19, %c0_20] : memref<9x1x256xf32, #tpu.memory_space<vmem>>, vector<1x1x256xf32>
    %85 = vector.shape_cast %84 : vector<1x1x256xf32> to vector<1x256xf32>
    %86 = vector.broadcast %85 : vector<1x256xf32> to vector<4x256xf32>
    %87 = arith.mulf %83, %86 : vector<4x256xf32>
    %c1_i32 = arith.constant 1 : i32
    %88 = tpu.dynamic_rotate %28 by %c1_i32 dim 1 : vector<4x256xf32>, i32 -> vector<4x256xf32>
    %c3 = arith.constant 3 : index
    %c0_21 = arith.constant 0 : index
    %c0_22 = arith.constant 0 : index
    %89 = vector.load %arg2[%c3, %c0_21, %c0_22] : memref<9x1x256xf32, #tpu.memory_space<vmem>>, vector<1x1x256xf32>
    %90 = vector.shape_cast %89 : vector<1x1x256xf32> to vector<1x256xf32>
    %91 = vector.broadcast %90 : vector<1x256xf32> to vector<4x256xf32>
    %92 = arith.mulf %88, %91 : vector<4x256xf32>
    %c4 = arith.constant 4 : index
    %c0_23 = arith.constant 0 : index
    %c0_24 = arith.constant 0 : index
    %93 = vector.load %arg2[%c4, %c0_23, %c0_24] : memref<9x1x256xf32, #tpu.memory_space<vmem>>, vector<1x1x256xf32>
    %94 = vector.shape_cast %93 : vector<1x1x256xf32> to vector<1x256xf32>
    %95 = vector.broadcast %94 : vector<1x256xf32> to vector<4x256xf32>
    %96 = arith.mulf %28, %95 : vector<4x256xf32>
    %c255_i32 = arith.constant 255 : i32
    %97 = tpu.dynamic_rotate %28 by %c255_i32 dim 1 : vector<4x256xf32>, i32 -> vector<4x256xf32>
    %c5 = arith.constant 5 : index
    %c0_25 = arith.constant 0 : index
    %c0_26 = arith.constant 0 : index
    %98 = vector.load %arg2[%c5, %c0_25, %c0_26] : memref<9x1x256xf32, #tpu.memory_space<vmem>>, vector<1x1x256xf32>
    %99 = vector.shape_cast %98 : vector<1x1x256xf32> to vector<1x256xf32>
    %100 = vector.broadcast %99 : vector<1x256xf32> to vector<4x256xf32>
    %101 = arith.mulf %97, %100 : vector<4x256xf32>
    %c241_i32 = arith.constant 241 : i32
    %102 = tpu.dynamic_rotate %28 by %c241_i32 dim 1 : vector<4x256xf32>, i32 -> vector<4x256xf32>
    %c6 = arith.constant 6 : index
    %c0_27 = arith.constant 0 : index
    %c0_28 = arith.constant 0 : index
    %103 = vector.load %arg2[%c6, %c0_27, %c0_28] : memref<9x1x256xf32, #tpu.memory_space<vmem>>, vector<1x1x256xf32>
    %104 = vector.shape_cast %103 : vector<1x1x256xf32> to vector<1x256xf32>
    %105 = vector.broadcast %104 : vector<1x256xf32> to vector<4x256xf32>
    %106 = arith.mulf %102, %105 : vector<4x256xf32>
    %c240_i32 = arith.constant 240 : i32
    %107 = tpu.dynamic_rotate %28 by %c240_i32 dim 1 : vector<4x256xf32>, i32 -> vector<4x256xf32>
    %c7 = arith.constant 7 : index
    %c0_29 = arith.constant 0 : index
    %c0_30 = arith.constant 0 : index
    %108 = vector.load %arg2[%c7, %c0_29, %c0_30] : memref<9x1x256xf32, #tpu.memory_space<vmem>>, vector<1x1x256xf32>
    %109 = vector.shape_cast %108 : vector<1x1x256xf32> to vector<1x256xf32>
    %110 = vector.broadcast %109 : vector<1x256xf32> to vector<4x256xf32>
    %111 = arith.mulf %107, %110 : vector<4x256xf32>
    %c239_i32 = arith.constant 239 : i32
    %112 = tpu.dynamic_rotate %28 by %c239_i32 dim 1 : vector<4x256xf32>, i32 -> vector<4x256xf32>
    %c8 = arith.constant 8 : index
    %c0_31 = arith.constant 0 : index
    %c0_32 = arith.constant 0 : index
    %113 = vector.load %arg2[%c8, %c0_31, %c0_32] : memref<9x1x256xf32, #tpu.memory_space<vmem>>, vector<1x1x256xf32>
    %114 = vector.shape_cast %113 : vector<1x1x256xf32> to vector<1x256xf32>
    %115 = vector.broadcast %114 : vector<1x256xf32> to vector<4x256xf32>
    %116 = arith.mulf %112, %115 : vector<4x256xf32>
    %c0_33 = arith.constant 0 : index
    %c0_34 = arith.constant 0 : index
    %c0_35 = arith.constant 0 : index
    %117 = vector.load %arg5[%c0_33, %c0_34, %c0_35] : memref<9x4x4xf32, #tpu.memory_space<vmem>>, vector<1x4x4xf32>
    %118 = vector.shape_cast %117 : vector<1x4x4xf32> to vector<4x4xf32>
    %119 = vector.extract_strided_slice %118 {offsets = [0, 0], sizes = [4, 1], strides = [1, 1]} : vector<4x4xf32> to vector<4x1xf32>
    %120 = vector.extract_strided_slice %77 {offsets = [0, 0], sizes = [1, 256], strides = [1, 1]} : vector<4x256xf32> to vector<1x256xf32>
    %121 = vector.broadcast %119 : vector<4x1xf32> to vector<4x256xf32>
    %122 = vector.broadcast %120 : vector<1x256xf32> to vector<4x256xf32>
    %123 = arith.mulf %121, %122 : vector<4x256xf32>
    %124 = vector.extract_strided_slice %118 {offsets = [0, 1], sizes = [4, 1], strides = [1, 1]} : vector<4x4xf32> to vector<4x1xf32>
    %125 = vector.extract_strided_slice %77 {offsets = [1, 0], sizes = [1, 256], strides = [1, 1]} : vector<4x256xf32> to vector<1x256xf32>
    %126 = vector.broadcast %124 : vector<4x1xf32> to vector<4x256xf32>
    %127 = vector.broadcast %125 : vector<1x256xf32> to vector<4x256xf32>
    %128 = arith.mulf %126, %127 : vector<4x256xf32>
    %129 = arith.addf %123, %128 : vector<4x256xf32>
    %130 = vector.extract_strided_slice %118 {offsets = [0, 2], sizes = [4, 1], strides = [1, 1]} : vector<4x4xf32> to vector<4x1xf32>
    %131 = vector.extract_strided_slice %77 {offsets = [2, 0], sizes = [1, 256], strides = [1, 1]} : vector<4x256xf32> to vector<1x256xf32>
    %132 = vector.broadcast %130 : vector<4x1xf32> to vector<4x256xf32>
    %133 = vector.broadcast %131 : vector<1x256xf32> to vector<4x256xf32>
    %134 = arith.mulf %132, %133 : vector<4x256xf32>
    %135 = arith.addf %129, %134 : vector<4x256xf32>
    %136 = vector.extract_strided_slice %118 {offsets = [0, 3], sizes = [4, 1], strides = [1, 1]} : vector<4x4xf32> to vector<4x1xf32>
    %137 = vector.extract_strided_slice %77 {offsets = [3, 0], sizes = [1, 256], strides = [1, 1]} : vector<4x256xf32> to vector<1x256xf32>
    %138 = vector.broadcast %136 : vector<4x1xf32> to vector<4x256xf32>
    %139 = vector.broadcast %137 : vector<1x256xf32> to vector<4x256xf32>
    %140 = arith.mulf %138, %139 : vector<4x256xf32>
    %141 = arith.addf %135, %140 : vector<4x256xf32>
    %c1_36 = arith.constant 1 : index
    %c0_37 = arith.constant 0 : index
    %c0_38 = arith.constant 0 : index
    %142 = vector.load %arg5[%c1_36, %c0_37, %c0_38] : memref<9x4x4xf32, #tpu.memory_space<vmem>>, vector<1x4x4xf32>
    %143 = vector.shape_cast %142 : vector<1x4x4xf32> to vector<4x4xf32>
    %144 = vector.extract_strided_slice %143 {offsets = [0, 0], sizes = [4, 1], strides = [1, 1]} : vector<4x4xf32> to vector<4x1xf32>
    %145 = vector.extract_strided_slice %82 {offsets = [0, 0], sizes = [1, 256], strides = [1, 1]} : vector<4x256xf32> to vector<1x256xf32>
    %146 = vector.broadcast %144 : vector<4x1xf32> to vector<4x256xf32>
    %147 = vector.broadcast %145 : vector<1x256xf32> to vector<4x256xf32>
    %148 = arith.mulf %146, %147 : vector<4x256xf32>
    %149 = vector.extract_strided_slice %143 {offsets = [0, 1], sizes = [4, 1], strides = [1, 1]} : vector<4x4xf32> to vector<4x1xf32>
    %150 = vector.extract_strided_slice %82 {offsets = [1, 0], sizes = [1, 256], strides = [1, 1]} : vector<4x256xf32> to vector<1x256xf32>
    %151 = vector.broadcast %149 : vector<4x1xf32> to vector<4x256xf32>
    %152 = vector.broadcast %150 : vector<1x256xf32> to vector<4x256xf32>
    %153 = arith.mulf %151, %152 : vector<4x256xf32>
    %154 = arith.addf %148, %153 : vector<4x256xf32>
    %155 = vector.extract_strided_slice %143 {offsets = [0, 2], sizes = [4, 1], strides = [1, 1]} : vector<4x4xf32> to vector<4x1xf32>
    %156 = vector.extract_strided_slice %82 {offsets = [2, 0], sizes = [1, 256], strides = [1, 1]} : vector<4x256xf32> to vector<1x256xf32>
    %157 = vector.broadcast %155 : vector<4x1xf32> to vector<4x256xf32>
    %158 = vector.broadcast %156 : vector<1x256xf32> to vector<4x256xf32>
    %159 = arith.mulf %157, %158 : vector<4x256xf32>
    %160 = arith.addf %154, %159 : vector<4x256xf32>
    %161 = vector.extract_strided_slice %143 {offsets = [0, 3], sizes = [4, 1], strides = [1, 1]} : vector<4x4xf32> to vector<4x1xf32>
    %162 = vector.extract_strided_slice %82 {offsets = [3, 0], sizes = [1, 256], strides = [1, 1]} : vector<4x256xf32> to vector<1x256xf32>
    %163 = vector.broadcast %161 : vector<4x1xf32> to vector<4x256xf32>
    %164 = vector.broadcast %162 : vector<1x256xf32> to vector<4x256xf32>
    %165 = arith.mulf %163, %164 : vector<4x256xf32>
    %166 = arith.addf %160, %165 : vector<4x256xf32>
    %167 = arith.addf %141, %166 : vector<4x256xf32>
    %c2_39 = arith.constant 2 : index
    %c0_40 = arith.constant 0 : index
    %c0_41 = arith.constant 0 : index
    %168 = vector.load %arg5[%c2_39, %c0_40, %c0_41] : memref<9x4x4xf32, #tpu.memory_space<vmem>>, vector<1x4x4xf32>
    %169 = vector.shape_cast %168 : vector<1x4x4xf32> to vector<4x4xf32>
    %170 = vector.extract_strided_slice %169 {offsets = [0, 0], sizes = [4, 1], strides = [1, 1]} : vector<4x4xf32> to vector<4x1xf32>
    %171 = vector.extract_strided_slice %87 {offsets = [0, 0], sizes = [1, 256], strides = [1, 1]} : vector<4x256xf32> to vector<1x256xf32>
    %172 = vector.broadcast %170 : vector<4x1xf32> to vector<4x256xf32>
    %173 = vector.broadcast %171 : vector<1x256xf32> to vector<4x256xf32>
    %174 = arith.mulf %172, %173 : vector<4x256xf32>
    %175 = vector.extract_strided_slice %169 {offsets = [0, 1], sizes = [4, 1], strides = [1, 1]} : vector<4x4xf32> to vector<4x1xf32>
    %176 = vector.extract_strided_slice %87 {offsets = [1, 0], sizes = [1, 256], strides = [1, 1]} : vector<4x256xf32> to vector<1x256xf32>
    %177 = vector.broadcast %175 : vector<4x1xf32> to vector<4x256xf32>
    %178 = vector.broadcast %176 : vector<1x256xf32> to vector<4x256xf32>
    %179 = arith.mulf %177, %178 : vector<4x256xf32>
    %180 = arith.addf %174, %179 : vector<4x256xf32>
    %181 = vector.extract_strided_slice %169 {offsets = [0, 2], sizes = [4, 1], strides = [1, 1]} : vector<4x4xf32> to vector<4x1xf32>
    %182 = vector.extract_strided_slice %87 {offsets = [2, 0], sizes = [1, 256], strides = [1, 1]} : vector<4x256xf32> to vector<1x256xf32>
    %183 = vector.broadcast %181 : vector<4x1xf32> to vector<4x256xf32>
    %184 = vector.broadcast %182 : vector<1x256xf32> to vector<4x256xf32>
    %185 = arith.mulf %183, %184 : vector<4x256xf32>
    %186 = arith.addf %180, %185 : vector<4x256xf32>
    %187 = vector.extract_strided_slice %169 {offsets = [0, 3], sizes = [4, 1], strides = [1, 1]} : vector<4x4xf32> to vector<4x1xf32>
    %188 = vector.extract_strided_slice %87 {offsets = [3, 0], sizes = [1, 256], strides = [1, 1]} : vector<4x256xf32> to vector<1x256xf32>
    %189 = vector.broadcast %187 : vector<4x1xf32> to vector<4x256xf32>
    %190 = vector.broadcast %188 : vector<1x256xf32> to vector<4x256xf32>
    %191 = arith.mulf %189, %190 : vector<4x256xf32>
    %192 = arith.addf %186, %191 : vector<4x256xf32>
    %193 = arith.addf %167, %192 : vector<4x256xf32>
    %c3_42 = arith.constant 3 : index
    %c0_43 = arith.constant 0 : index
    %c0_44 = arith.constant 0 : index
    %194 = vector.load %arg5[%c3_42, %c0_43, %c0_44] : memref<9x4x4xf32, #tpu.memory_space<vmem>>, vector<1x4x4xf32>
    %195 = vector.shape_cast %194 : vector<1x4x4xf32> to vector<4x4xf32>
    %196 = vector.extract_strided_slice %195 {offsets = [0, 0], sizes = [4, 1], strides = [1, 1]} : vector<4x4xf32> to vector<4x1xf32>
    %197 = vector.extract_strided_slice %92 {offsets = [0, 0], sizes = [1, 256], strides = [1, 1]} : vector<4x256xf32> to vector<1x256xf32>
    %198 = vector.broadcast %196 : vector<4x1xf32> to vector<4x256xf32>
    %199 = vector.broadcast %197 : vector<1x256xf32> to vector<4x256xf32>
    %200 = arith.mulf %198, %199 : vector<4x256xf32>
    %201 = vector.extract_strided_slice %195 {offsets = [0, 1], sizes = [4, 1], strides = [1, 1]} : vector<4x4xf32> to vector<4x1xf32>
    %202 = vector.extract_strided_slice %92 {offsets = [1, 0], sizes = [1, 256], strides = [1, 1]} : vector<4x256xf32> to vector<1x256xf32>
    %203 = vector.broadcast %201 : vector<4x1xf32> to vector<4x256xf32>
    %204 = vector.broadcast %202 : vector<1x256xf32> to vector<4x256xf32>
    %205 = arith.mulf %203, %204 : vector<4x256xf32>
    %206 = arith.addf %200, %205 : vector<4x256xf32>
    %207 = vector.extract_strided_slice %195 {offsets = [0, 2], sizes = [4, 1], strides = [1, 1]} : vector<4x4xf32> to vector<4x1xf32>
    %208 = vector.extract_strided_slice %92 {offsets = [2, 0], sizes = [1, 256], strides = [1, 1]} : vector<4x256xf32> to vector<1x256xf32>
    %209 = vector.broadcast %207 : vector<4x1xf32> to vector<4x256xf32>
    %210 = vector.broadcast %208 : vector<1x256xf32> to vector<4x256xf32>
    %211 = arith.mulf %209, %210 : vector<4x256xf32>
    %212 = arith.addf %206, %211 : vector<4x256xf32>
    %213 = vector.extract_strided_slice %195 {offsets = [0, 3], sizes = [4, 1], strides = [1, 1]} : vector<4x4xf32> to vector<4x1xf32>
    %214 = vector.extract_strided_slice %92 {offsets = [3, 0], sizes = [1, 256], strides = [1, 1]} : vector<4x256xf32> to vector<1x256xf32>
    %215 = vector.broadcast %213 : vector<4x1xf32> to vector<4x256xf32>
    %216 = vector.broadcast %214 : vector<1x256xf32> to vector<4x256xf32>
    %217 = arith.mulf %215, %216 : vector<4x256xf32>
    %218 = arith.addf %212, %217 : vector<4x256xf32>
    %219 = arith.addf %193, %218 : vector<4x256xf32>
    %c4_45 = arith.constant 4 : index
    %c0_46 = arith.constant 0 : index
    %c0_47 = arith.constant 0 : index
    %220 = vector.load %arg5[%c4_45, %c0_46, %c0_47] : memref<9x4x4xf32, #tpu.memory_space<vmem>>, vector<1x4x4xf32>
    %221 = vector.shape_cast %220 : vector<1x4x4xf32> to vector<4x4xf32>
    %222 = vector.extract_strided_slice %221 {offsets = [0, 0], sizes = [4, 1], strides = [1, 1]} : vector<4x4xf32> to vector<4x1xf32>
    %223 = vector.extract_strided_slice %96 {offsets = [0, 0], sizes = [1, 256], strides = [1, 1]} : vector<4x256xf32> to vector<1x256xf32>
    %224 = vector.broadcast %222 : vector<4x1xf32> to vector<4x256xf32>
    %225 = vector.broadcast %223 : vector<1x256xf32> to vector<4x256xf32>
    %226 = arith.mulf %224, %225 : vector<4x256xf32>
    %227 = vector.extract_strided_slice %221 {offsets = [0, 1], sizes = [4, 1], strides = [1, 1]} : vector<4x4xf32> to vector<4x1xf32>
    %228 = vector.extract_strided_slice %96 {offsets = [1, 0], sizes = [1, 256], strides = [1, 1]} : vector<4x256xf32> to vector<1x256xf32>
    %229 = vector.broadcast %227 : vector<4x1xf32> to vector<4x256xf32>
    %230 = vector.broadcast %228 : vector<1x256xf32> to vector<4x256xf32>
    %231 = arith.mulf %229, %230 : vector<4x256xf32>
    %232 = arith.addf %226, %231 : vector<4x256xf32>
    %233 = vector.extract_strided_slice %221 {offsets = [0, 2], sizes = [4, 1], strides = [1, 1]} : vector<4x4xf32> to vector<4x1xf32>
    %234 = vector.extract_strided_slice %96 {offsets = [2, 0], sizes = [1, 256], strides = [1, 1]} : vector<4x256xf32> to vector<1x256xf32>
    %235 = vector.broadcast %233 : vector<4x1xf32> to vector<4x256xf32>
    %236 = vector.broadcast %234 : vector<1x256xf32> to vector<4x256xf32>
    %237 = arith.mulf %235, %236 : vector<4x256xf32>
    %238 = arith.addf %232, %237 : vector<4x256xf32>
    %239 = vector.extract_strided_slice %221 {offsets = [0, 3], sizes = [4, 1], strides = [1, 1]} : vector<4x4xf32> to vector<4x1xf32>
    %240 = vector.extract_strided_slice %96 {offsets = [3, 0], sizes = [1, 256], strides = [1, 1]} : vector<4x256xf32> to vector<1x256xf32>
    %241 = vector.broadcast %239 : vector<4x1xf32> to vector<4x256xf32>
    %242 = vector.broadcast %240 : vector<1x256xf32> to vector<4x256xf32>
    %243 = arith.mulf %241, %242 : vector<4x256xf32>
    %244 = arith.addf %238, %243 : vector<4x256xf32>
    %245 = arith.addf %219, %244 : vector<4x256xf32>
    %c5_48 = arith.constant 5 : index
    %c0_49 = arith.constant 0 : index
    %c0_50 = arith.constant 0 : index
    %246 = vector.load %arg5[%c5_48, %c0_49, %c0_50] : memref<9x4x4xf32, #tpu.memory_space<vmem>>, vector<1x4x4xf32>
    %247 = vector.shape_cast %246 : vector<1x4x4xf32> to vector<4x4xf32>
    %248 = vector.extract_strided_slice %247 {offsets = [0, 0], sizes = [4, 1], strides = [1, 1]} : vector<4x4xf32> to vector<4x1xf32>
    %249 = vector.extract_strided_slice %101 {offsets = [0, 0], sizes = [1, 256], strides = [1, 1]} : vector<4x256xf32> to vector<1x256xf32>
    %250 = vector.broadcast %248 : vector<4x1xf32> to vector<4x256xf32>
    %251 = vector.broadcast %249 : vector<1x256xf32> to vector<4x256xf32>
    %252 = arith.mulf %250, %251 : vector<4x256xf32>
    %253 = vector.extract_strided_slice %247 {offsets = [0, 1], sizes = [4, 1], strides = [1, 1]} : vector<4x4xf32> to vector<4x1xf32>
    %254 = vector.extract_strided_slice %101 {offsets = [1, 0], sizes = [1, 256], strides = [1, 1]} : vector<4x256xf32> to vector<1x256xf32>
    %255 = vector.broadcast %253 : vector<4x1xf32> to vector<4x256xf32>
    %256 = vector.broadcast %254 : vector<1x256xf32> to vector<4x256xf32>
    %257 = arith.mulf %255, %256 : vector<4x256xf32>
    %258 = arith.addf %252, %257 : vector<4x256xf32>
    %259 = vector.extract_strided_slice %247 {offsets = [0, 2], sizes = [4, 1], strides = [1, 1]} : vector<4x4xf32> to vector<4x1xf32>
    %260 = vector.extract_strided_slice %101 {offsets = [2, 0], sizes = [1, 256], strides = [1, 1]} : vector<4x256xf32> to vector<1x256xf32>
    %261 = vector.broadcast %259 : vector<4x1xf32> to vector<4x256xf32>
    %262 = vector.broadcast %260 : vector<1x256xf32> to vector<4x256xf32>
    %263 = arith.mulf %261, %262 : vector<4x256xf32>
    %264 = arith.addf %258, %263 : vector<4x256xf32>
    %265 = vector.extract_strided_slice %247 {offsets = [0, 3], sizes = [4, 1], strides = [1, 1]} : vector<4x4xf32> to vector<4x1xf32>
    %266 = vector.extract_strided_slice %101 {offsets = [3, 0], sizes = [1, 256], strides = [1, 1]} : vector<4x256xf32> to vector<1x256xf32>
    %267 = vector.broadcast %265 : vector<4x1xf32> to vector<4x256xf32>
    %268 = vector.broadcast %266 : vector<1x256xf32> to vector<4x256xf32>
    %269 = arith.mulf %267, %268 : vector<4x256xf32>
    %270 = arith.addf %264, %269 : vector<4x256xf32>
    %271 = arith.addf %245, %270 : vector<4x256xf32>
    %c6_51 = arith.constant 6 : index
    %c0_52 = arith.constant 0 : index
    %c0_53 = arith.constant 0 : index
    %272 = vector.load %arg5[%c6_51, %c0_52, %c0_53] : memref<9x4x4xf32, #tpu.memory_space<vmem>>, vector<1x4x4xf32>
    %273 = vector.shape_cast %272 : vector<1x4x4xf32> to vector<4x4xf32>
    %274 = vector.extract_strided_slice %273 {offsets = [0, 0], sizes = [4, 1], strides = [1, 1]} : vector<4x4xf32> to vector<4x1xf32>
    %275 = vector.extract_strided_slice %106 {offsets = [0, 0], sizes = [1, 256], strides = [1, 1]} : vector<4x256xf32> to vector<1x256xf32>
    %276 = vector.broadcast %274 : vector<4x1xf32> to vector<4x256xf32>
    %277 = vector.broadcast %275 : vector<1x256xf32> to vector<4x256xf32>
    %278 = arith.mulf %276, %277 : vector<4x256xf32>
    %279 = vector.extract_strided_slice %273 {offsets = [0, 1], sizes = [4, 1], strides = [1, 1]} : vector<4x4xf32> to vector<4x1xf32>
    %280 = vector.extract_strided_slice %106 {offsets = [1, 0], sizes = [1, 256], strides = [1, 1]} : vector<4x256xf32> to vector<1x256xf32>
    %281 = vector.broadcast %279 : vector<4x1xf32> to vector<4x256xf32>
    %282 = vector.broadcast %280 : vector<1x256xf32> to vector<4x256xf32>
    %283 = arith.mulf %281, %282 : vector<4x256xf32>
    %284 = arith.addf %278, %283 : vector<4x256xf32>
    %285 = vector.extract_strided_slice %273 {offsets = [0, 2], sizes = [4, 1], strides = [1, 1]} : vector<4x4xf32> to vector<4x1xf32>
    %286 = vector.extract_strided_slice %106 {offsets = [2, 0], sizes = [1, 256], strides = [1, 1]} : vector<4x256xf32> to vector<1x256xf32>
    %287 = vector.broadcast %285 : vector<4x1xf32> to vector<4x256xf32>
    %288 = vector.broadcast %286 : vector<1x256xf32> to vector<4x256xf32>
    %289 = arith.mulf %287, %288 : vector<4x256xf32>
    %290 = arith.addf %284, %289 : vector<4x256xf32>
    %291 = vector.extract_strided_slice %273 {offsets = [0, 3], sizes = [4, 1], strides = [1, 1]} : vector<4x4xf32> to vector<4x1xf32>
    %292 = vector.extract_strided_slice %106 {offsets = [3, 0], sizes = [1, 256], strides = [1, 1]} : vector<4x256xf32> to vector<1x256xf32>
    %293 = vector.broadcast %291 : vector<4x1xf32> to vector<4x256xf32>
    %294 = vector.broadcast %292 : vector<1x256xf32> to vector<4x256xf32>
    %295 = arith.mulf %293, %294 : vector<4x256xf32>
    %296 = arith.addf %290, %295 : vector<4x256xf32>
    %297 = arith.addf %271, %296 : vector<4x256xf32>
    %c7_54 = arith.constant 7 : index
    %c0_55 = arith.constant 0 : index
    %c0_56 = arith.constant 0 : index
    %298 = vector.load %arg5[%c7_54, %c0_55, %c0_56] : memref<9x4x4xf32, #tpu.memory_space<vmem>>, vector<1x4x4xf32>
    %299 = vector.shape_cast %298 : vector<1x4x4xf32> to vector<4x4xf32>
    %300 = vector.extract_strided_slice %299 {offsets = [0, 0], sizes = [4, 1], strides = [1, 1]} : vector<4x4xf32> to vector<4x1xf32>
    %301 = vector.extract_strided_slice %111 {offsets = [0, 0], sizes = [1, 256], strides = [1, 1]} : vector<4x256xf32> to vector<1x256xf32>
    %302 = vector.broadcast %300 : vector<4x1xf32> to vector<4x256xf32>
    %303 = vector.broadcast %301 : vector<1x256xf32> to vector<4x256xf32>
    %304 = arith.mulf %302, %303 : vector<4x256xf32>
    %305 = vector.extract_strided_slice %299 {offsets = [0, 1], sizes = [4, 1], strides = [1, 1]} : vector<4x4xf32> to vector<4x1xf32>
    %306 = vector.extract_strided_slice %111 {offsets = [1, 0], sizes = [1, 256], strides = [1, 1]} : vector<4x256xf32> to vector<1x256xf32>
    %307 = vector.broadcast %305 : vector<4x1xf32> to vector<4x256xf32>
    %308 = vector.broadcast %306 : vector<1x256xf32> to vector<4x256xf32>
    %309 = arith.mulf %307, %308 : vector<4x256xf32>
    %310 = arith.addf %304, %309 : vector<4x256xf32>
    %311 = vector.extract_strided_slice %299 {offsets = [0, 2], sizes = [4, 1], strides = [1, 1]} : vector<4x4xf32> to vector<4x1xf32>
    %312 = vector.extract_strided_slice %111 {offsets = [2, 0], sizes = [1, 256], strides = [1, 1]} : vector<4x256xf32> to vector<1x256xf32>
    %313 = vector.broadcast %311 : vector<4x1xf32> to vector<4x256xf32>
    %314 = vector.broadcast %312 : vector<1x256xf32> to vector<4x256xf32>
    %315 = arith.mulf %313, %314 : vector<4x256xf32>
    %316 = arith.addf %310, %315 : vector<4x256xf32>
    %317 = vector.extract_strided_slice %299 {offsets = [0, 3], sizes = [4, 1], strides = [1, 1]} : vector<4x4xf32> to vector<4x1xf32>
    %318 = vector.extract_strided_slice %111 {offsets = [3, 0], sizes = [1, 256], strides = [1, 1]} : vector<4x256xf32> to vector<1x256xf32>
    %319 = vector.broadcast %317 : vector<4x1xf32> to vector<4x256xf32>
    %320 = vector.broadcast %318 : vector<1x256xf32> to vector<4x256xf32>
    %321 = arith.mulf %319, %320 : vector<4x256xf32>
    %322 = arith.addf %316, %321 : vector<4x256xf32>
    %323 = arith.addf %297, %322 : vector<4x256xf32>
    %c8_57 = arith.constant 8 : index
    %c0_58 = arith.constant 0 : index
    %c0_59 = arith.constant 0 : index
    %324 = vector.load %arg5[%c8_57, %c0_58, %c0_59] : memref<9x4x4xf32, #tpu.memory_space<vmem>>, vector<1x4x4xf32>
    %325 = vector.shape_cast %324 : vector<1x4x4xf32> to vector<4x4xf32>
    %326 = vector.extract_strided_slice %325 {offsets = [0, 0], sizes = [4, 1], strides = [1, 1]} : vector<4x4xf32> to vector<4x1xf32>
    %327 = vector.extract_strided_slice %116 {offsets = [0, 0], sizes = [1, 256], strides = [1, 1]} : vector<4x256xf32> to vector<1x256xf32>
    %328 = vector.broadcast %326 : vector<4x1xf32> to vector<4x256xf32>
    %329 = vector.broadcast %327 : vector<1x256xf32> to vector<4x256xf32>
    %330 = arith.mulf %328, %329 : vector<4x256xf32>
    %331 = vector.extract_strided_slice %325 {offsets = [0, 1], sizes = [4, 1], strides = [1, 1]} : vector<4x4xf32> to vector<4x1xf32>
    %332 = vector.extract_strided_slice %116 {offsets = [1, 0], sizes = [1, 256], strides = [1, 1]} : vector<4x256xf32> to vector<1x256xf32>
    %333 = vector.broadcast %331 : vector<4x1xf32> to vector<4x256xf32>
    %334 = vector.broadcast %332 : vector<1x256xf32> to vector<4x256xf32>
    %335 = arith.mulf %333, %334 : vector<4x256xf32>
    %336 = arith.addf %330, %335 : vector<4x256xf32>
    %337 = vector.extract_strided_slice %325 {offsets = [0, 2], sizes = [4, 1], strides = [1, 1]} : vector<4x4xf32> to vector<4x1xf32>
    %338 = vector.extract_strided_slice %116 {offsets = [2, 0], sizes = [1, 256], strides = [1, 1]} : vector<4x256xf32> to vector<1x256xf32>
    %339 = vector.broadcast %337 : vector<4x1xf32> to vector<4x256xf32>
    %340 = vector.broadcast %338 : vector<1x256xf32> to vector<4x256xf32>
    %341 = arith.mulf %339, %340 : vector<4x256xf32>
    %342 = arith.addf %336, %341 : vector<4x256xf32>
    %343 = vector.extract_strided_slice %325 {offsets = [0, 3], sizes = [4, 1], strides = [1, 1]} : vector<4x4xf32> to vector<4x1xf32>
    %344 = vector.extract_strided_slice %116 {offsets = [3, 0], sizes = [1, 256], strides = [1, 1]} : vector<4x256xf32> to vector<1x256xf32>
    %345 = vector.broadcast %343 : vector<4x1xf32> to vector<4x256xf32>
    %346 = vector.broadcast %344 : vector<1x256xf32> to vector<4x256xf32>
    %347 = arith.mulf %345, %346 : vector<4x256xf32>
    %348 = arith.addf %342, %347 : vector<4x256xf32>
    %349 = arith.addf %323, %348 : vector<4x256xf32>
    %cst_60 = arith.constant 2.000000e-01 : f32
    %350 = vector.broadcast %cst_60 : f32 to vector<4x256xf32>
    %351 = arith.mulf %350, %349 : vector<4x256xf32>
    %352 = arith.maximumf %349, %351 : vector<4x256xf32>
    %c0_61 = arith.constant 0 : index
    %c0_62 = arith.constant 0 : index
    %353 = vector.load %arg6[%c0_61, %c0_62] : memref<4x4xf32, #tpu.memory_space<vmem>>, vector<4x4xf32>
    %354 = vector.extract_strided_slice %353 {offsets = [0, 0], sizes = [4, 1], strides = [1, 1]} : vector<4x4xf32> to vector<4x1xf32>
    %355 = vector.extract_strided_slice %352 {offsets = [0, 0], sizes = [1, 256], strides = [1, 1]} : vector<4x256xf32> to vector<1x256xf32>
    %356 = vector.broadcast %354 : vector<4x1xf32> to vector<4x256xf32>
    %357 = vector.broadcast %355 : vector<1x256xf32> to vector<4x256xf32>
    %358 = arith.mulf %356, %357 : vector<4x256xf32>
    %359 = vector.extract_strided_slice %353 {offsets = [0, 1], sizes = [4, 1], strides = [1, 1]} : vector<4x4xf32> to vector<4x1xf32>
    %360 = vector.extract_strided_slice %352 {offsets = [1, 0], sizes = [1, 256], strides = [1, 1]} : vector<4x256xf32> to vector<1x256xf32>
    %361 = vector.broadcast %359 : vector<4x1xf32> to vector<4x256xf32>
    %362 = vector.broadcast %360 : vector<1x256xf32> to vector<4x256xf32>
    %363 = arith.mulf %361, %362 : vector<4x256xf32>
    %364 = arith.addf %358, %363 : vector<4x256xf32>
    %365 = vector.extract_strided_slice %353 {offsets = [0, 2], sizes = [4, 1], strides = [1, 1]} : vector<4x4xf32> to vector<4x1xf32>
    %366 = vector.extract_strided_slice %352 {offsets = [2, 0], sizes = [1, 256], strides = [1, 1]} : vector<4x256xf32> to vector<1x256xf32>
    %367 = vector.broadcast %365 : vector<4x1xf32> to vector<4x256xf32>
    %368 = vector.broadcast %366 : vector<1x256xf32> to vector<4x256xf32>
    %369 = arith.mulf %367, %368 : vector<4x256xf32>
    %370 = arith.addf %364, %369 : vector<4x256xf32>
    %371 = vector.extract_strided_slice %353 {offsets = [0, 3], sizes = [4, 1], strides = [1, 1]} : vector<4x4xf32> to vector<4x1xf32>
    %372 = vector.extract_strided_slice %352 {offsets = [3, 0], sizes = [1, 256], strides = [1, 1]} : vector<4x256xf32> to vector<1x256xf32>
    %373 = vector.broadcast %371 : vector<4x1xf32> to vector<4x256xf32>
    %374 = vector.broadcast %372 : vector<1x256xf32> to vector<4x256xf32>
    %375 = arith.mulf %373, %374 : vector<4x256xf32>
    %376 = arith.addf %370, %375 : vector<4x256xf32>
    %c0_63 = arith.constant 0 : index
    %c0_64 = arith.constant 0 : index
    %377 = vector.load %arg7[%c0_63, %c0_64] : memref<4x1xf32, #tpu.memory_space<vmem>>, vector<4x1xf32>
    %378 = vector.broadcast %377 : vector<4x1xf32> to vector<4x256xf32>
    %379 = arith.addf %376, %378 : vector<4x256xf32>
    %380 = arith.negf %379 : vector<4x256xf32>
    %381 = math.exp %380 : vector<4x256xf32>
    %cst_65 = arith.constant 1.000000e+00 : f32
    %382 = vector.broadcast %cst_65 : f32 to vector<4x256xf32>
    %383 = arith.addf %382, %381 : vector<4x256xf32>
    %384 = arith.divf %382, %383 : vector<4x256xf32>
    %c0_66 = arith.constant 0 : index
    %c0_67 = arith.constant 0 : index
    %c0_68 = arith.constant 0 : index
    %385 = vector.load %arg8[%c0_66, %c0_67, %c0_68] : memref<9x4x4xf32, #tpu.memory_space<vmem>>, vector<1x4x4xf32>
    %386 = vector.shape_cast %385 : vector<1x4x4xf32> to vector<4x4xf32>
    %387 = vector.extract_strided_slice %386 {offsets = [0, 0], sizes = [4, 1], strides = [1, 1]} : vector<4x4xf32> to vector<4x1xf32>
    %388 = vector.extract_strided_slice %77 {offsets = [0, 0], sizes = [1, 256], strides = [1, 1]} : vector<4x256xf32> to vector<1x256xf32>
    %389 = vector.broadcast %387 : vector<4x1xf32> to vector<4x256xf32>
    %390 = vector.broadcast %388 : vector<1x256xf32> to vector<4x256xf32>
    %391 = arith.mulf %389, %390 : vector<4x256xf32>
    %392 = vector.extract_strided_slice %386 {offsets = [0, 1], sizes = [4, 1], strides = [1, 1]} : vector<4x4xf32> to vector<4x1xf32>
    %393 = vector.extract_strided_slice %77 {offsets = [1, 0], sizes = [1, 256], strides = [1, 1]} : vector<4x256xf32> to vector<1x256xf32>
    %394 = vector.broadcast %392 : vector<4x1xf32> to vector<4x256xf32>
    %395 = vector.broadcast %393 : vector<1x256xf32> to vector<4x256xf32>
    %396 = arith.mulf %394, %395 : vector<4x256xf32>
    %397 = arith.addf %391, %396 : vector<4x256xf32>
    %398 = vector.extract_strided_slice %386 {offsets = [0, 2], sizes = [4, 1], strides = [1, 1]} : vector<4x4xf32> to vector<4x1xf32>
    %399 = vector.extract_strided_slice %77 {offsets = [2, 0], sizes = [1, 256], strides = [1, 1]} : vector<4x256xf32> to vector<1x256xf32>
    %400 = vector.broadcast %398 : vector<4x1xf32> to vector<4x256xf32>
    %401 = vector.broadcast %399 : vector<1x256xf32> to vector<4x256xf32>
    %402 = arith.mulf %400, %401 : vector<4x256xf32>
    %403 = arith.addf %397, %402 : vector<4x256xf32>
    %404 = vector.extract_strided_slice %386 {offsets = [0, 3], sizes = [4, 1], strides = [1, 1]} : vector<4x4xf32> to vector<4x1xf32>
    %405 = vector.extract_strided_slice %77 {offsets = [3, 0], sizes = [1, 256], strides = [1, 1]} : vector<4x256xf32> to vector<1x256xf32>
    %406 = vector.broadcast %404 : vector<4x1xf32> to vector<4x256xf32>
    %407 = vector.broadcast %405 : vector<1x256xf32> to vector<4x256xf32>
    %408 = arith.mulf %406, %407 : vector<4x256xf32>
    %409 = arith.addf %403, %408 : vector<4x256xf32>
    %c1_69 = arith.constant 1 : index
    %c0_70 = arith.constant 0 : index
    %c0_71 = arith.constant 0 : index
    %410 = vector.load %arg8[%c1_69, %c0_70, %c0_71] : memref<9x4x4xf32, #tpu.memory_space<vmem>>, vector<1x4x4xf32>
    %411 = vector.shape_cast %410 : vector<1x4x4xf32> to vector<4x4xf32>
    %412 = vector.extract_strided_slice %411 {offsets = [0, 0], sizes = [4, 1], strides = [1, 1]} : vector<4x4xf32> to vector<4x1xf32>
    %413 = vector.extract_strided_slice %82 {offsets = [0, 0], sizes = [1, 256], strides = [1, 1]} : vector<4x256xf32> to vector<1x256xf32>
    %414 = vector.broadcast %412 : vector<4x1xf32> to vector<4x256xf32>
    %415 = vector.broadcast %413 : vector<1x256xf32> to vector<4x256xf32>
    %416 = arith.mulf %414, %415 : vector<4x256xf32>
    %417 = vector.extract_strided_slice %411 {offsets = [0, 1], sizes = [4, 1], strides = [1, 1]} : vector<4x4xf32> to vector<4x1xf32>
    %418 = vector.extract_strided_slice %82 {offsets = [1, 0], sizes = [1, 256], strides = [1, 1]} : vector<4x256xf32> to vector<1x256xf32>
    %419 = vector.broadcast %417 : vector<4x1xf32> to vector<4x256xf32>
    %420 = vector.broadcast %418 : vector<1x256xf32> to vector<4x256xf32>
    %421 = arith.mulf %419, %420 : vector<4x256xf32>
    %422 = arith.addf %416, %421 : vector<4x256xf32>
    %423 = vector.extract_strided_slice %411 {offsets = [0, 2], sizes = [4, 1], strides = [1, 1]} : vector<4x4xf32> to vector<4x1xf32>
    %424 = vector.extract_strided_slice %82 {offsets = [2, 0], sizes = [1, 256], strides = [1, 1]} : vector<4x256xf32> to vector<1x256xf32>
    %425 = vector.broadcast %423 : vector<4x1xf32> to vector<4x256xf32>
    %426 = vector.broadcast %424 : vector<1x256xf32> to vector<4x256xf32>
    %427 = arith.mulf %425, %426 : vector<4x256xf32>
    %428 = arith.addf %422, %427 : vector<4x256xf32>
    %429 = vector.extract_strided_slice %411 {offsets = [0, 3], sizes = [4, 1], strides = [1, 1]} : vector<4x4xf32> to vector<4x1xf32>
    %430 = vector.extract_strided_slice %82 {offsets = [3, 0], sizes = [1, 256], strides = [1, 1]} : vector<4x256xf32> to vector<1x256xf32>
    %431 = vector.broadcast %429 : vector<4x1xf32> to vector<4x256xf32>
    %432 = vector.broadcast %430 : vector<1x256xf32> to vector<4x256xf32>
    %433 = arith.mulf %431, %432 : vector<4x256xf32>
    %434 = arith.addf %428, %433 : vector<4x256xf32>
    %435 = arith.addf %409, %434 : vector<4x256xf32>
    %c2_72 = arith.constant 2 : index
    %c0_73 = arith.constant 0 : index
    %c0_74 = arith.constant 0 : index
    %436 = vector.load %arg8[%c2_72, %c0_73, %c0_74] : memref<9x4x4xf32, #tpu.memory_space<vmem>>, vector<1x4x4xf32>
    %437 = vector.shape_cast %436 : vector<1x4x4xf32> to vector<4x4xf32>
    %438 = vector.extract_strided_slice %437 {offsets = [0, 0], sizes = [4, 1], strides = [1, 1]} : vector<4x4xf32> to vector<4x1xf32>
    %439 = vector.extract_strided_slice %87 {offsets = [0, 0], sizes = [1, 256], strides = [1, 1]} : vector<4x256xf32> to vector<1x256xf32>
    %440 = vector.broadcast %438 : vector<4x1xf32> to vector<4x256xf32>
    %441 = vector.broadcast %439 : vector<1x256xf32> to vector<4x256xf32>
    %442 = arith.mulf %440, %441 : vector<4x256xf32>
    %443 = vector.extract_strided_slice %437 {offsets = [0, 1], sizes = [4, 1], strides = [1, 1]} : vector<4x4xf32> to vector<4x1xf32>
    %444 = vector.extract_strided_slice %87 {offsets = [1, 0], sizes = [1, 256], strides = [1, 1]} : vector<4x256xf32> to vector<1x256xf32>
    %445 = vector.broadcast %443 : vector<4x1xf32> to vector<4x256xf32>
    %446 = vector.broadcast %444 : vector<1x256xf32> to vector<4x256xf32>
    %447 = arith.mulf %445, %446 : vector<4x256xf32>
    %448 = arith.addf %442, %447 : vector<4x256xf32>
    %449 = vector.extract_strided_slice %437 {offsets = [0, 2], sizes = [4, 1], strides = [1, 1]} : vector<4x4xf32> to vector<4x1xf32>
    %450 = vector.extract_strided_slice %87 {offsets = [2, 0], sizes = [1, 256], strides = [1, 1]} : vector<4x256xf32> to vector<1x256xf32>
    %451 = vector.broadcast %449 : vector<4x1xf32> to vector<4x256xf32>
    %452 = vector.broadcast %450 : vector<1x256xf32> to vector<4x256xf32>
    %453 = arith.mulf %451, %452 : vector<4x256xf32>
    %454 = arith.addf %448, %453 : vector<4x256xf32>
    %455 = vector.extract_strided_slice %437 {offsets = [0, 3], sizes = [4, 1], strides = [1, 1]} : vector<4x4xf32> to vector<4x1xf32>
    %456 = vector.extract_strided_slice %87 {offsets = [3, 0], sizes = [1, 256], strides = [1, 1]} : vector<4x256xf32> to vector<1x256xf32>
    %457 = vector.broadcast %455 : vector<4x1xf32> to vector<4x256xf32>
    %458 = vector.broadcast %456 : vector<1x256xf32> to vector<4x256xf32>
    %459 = arith.mulf %457, %458 : vector<4x256xf32>
    %460 = arith.addf %454, %459 : vector<4x256xf32>
    %461 = arith.addf %435, %460 : vector<4x256xf32>
    %c3_75 = arith.constant 3 : index
    %c0_76 = arith.constant 0 : index
    %c0_77 = arith.constant 0 : index
    %462 = vector.load %arg8[%c3_75, %c0_76, %c0_77] : memref<9x4x4xf32, #tpu.memory_space<vmem>>, vector<1x4x4xf32>
    %463 = vector.shape_cast %462 : vector<1x4x4xf32> to vector<4x4xf32>
    %464 = vector.extract_strided_slice %463 {offsets = [0, 0], sizes = [4, 1], strides = [1, 1]} : vector<4x4xf32> to vector<4x1xf32>
    %465 = vector.extract_strided_slice %92 {offsets = [0, 0], sizes = [1, 256], strides = [1, 1]} : vector<4x256xf32> to vector<1x256xf32>
    %466 = vector.broadcast %464 : vector<4x1xf32> to vector<4x256xf32>
    %467 = vector.broadcast %465 : vector<1x256xf32> to vector<4x256xf32>
    %468 = arith.mulf %466, %467 : vector<4x256xf32>
    %469 = vector.extract_strided_slice %463 {offsets = [0, 1], sizes = [4, 1], strides = [1, 1]} : vector<4x4xf32> to vector<4x1xf32>
    %470 = vector.extract_strided_slice %92 {offsets = [1, 0], sizes = [1, 256], strides = [1, 1]} : vector<4x256xf32> to vector<1x256xf32>
    %471 = vector.broadcast %469 : vector<4x1xf32> to vector<4x256xf32>
    %472 = vector.broadcast %470 : vector<1x256xf32> to vector<4x256xf32>
    %473 = arith.mulf %471, %472 : vector<4x256xf32>
    %474 = arith.addf %468, %473 : vector<4x256xf32>
    %475 = vector.extract_strided_slice %463 {offsets = [0, 2], sizes = [4, 1], strides = [1, 1]} : vector<4x4xf32> to vector<4x1xf32>
    %476 = vector.extract_strided_slice %92 {offsets = [2, 0], sizes = [1, 256], strides = [1, 1]} : vector<4x256xf32> to vector<1x256xf32>
    %477 = vector.broadcast %475 : vector<4x1xf32> to vector<4x256xf32>
    %478 = vector.broadcast %476 : vector<1x256xf32> to vector<4x256xf32>
    %479 = arith.mulf %477, %478 : vector<4x256xf32>
    %480 = arith.addf %474, %479 : vector<4x256xf32>
    %481 = vector.extract_strided_slice %463 {offsets = [0, 3], sizes = [4, 1], strides = [1, 1]} : vector<4x4xf32> to vector<4x1xf32>
    %482 = vector.extract_strided_slice %92 {offsets = [3, 0], sizes = [1, 256], strides = [1, 1]} : vector<4x256xf32> to vector<1x256xf32>
    %483 = vector.broadcast %481 : vector<4x1xf32> to vector<4x256xf32>
    %484 = vector.broadcast %482 : vector<1x256xf32> to vector<4x256xf32>
    %485 = arith.mulf %483, %484 : vector<4x256xf32>
    %486 = arith.addf %480, %485 : vector<4x256xf32>
    %487 = arith.addf %461, %486 : vector<4x256xf32>
    %c4_78 = arith.constant 4 : index
    %c0_79 = arith.constant 0 : index
    %c0_80 = arith.constant 0 : index
    %488 = vector.load %arg8[%c4_78, %c0_79, %c0_80] : memref<9x4x4xf32, #tpu.memory_space<vmem>>, vector<1x4x4xf32>
    %489 = vector.shape_cast %488 : vector<1x4x4xf32> to vector<4x4xf32>
    %490 = vector.extract_strided_slice %489 {offsets = [0, 0], sizes = [4, 1], strides = [1, 1]} : vector<4x4xf32> to vector<4x1xf32>
    %491 = vector.extract_strided_slice %96 {offsets = [0, 0], sizes = [1, 256], strides = [1, 1]} : vector<4x256xf32> to vector<1x256xf32>
    %492 = vector.broadcast %490 : vector<4x1xf32> to vector<4x256xf32>
    %493 = vector.broadcast %491 : vector<1x256xf32> to vector<4x256xf32>
    %494 = arith.mulf %492, %493 : vector<4x256xf32>
    %495 = vector.extract_strided_slice %489 {offsets = [0, 1], sizes = [4, 1], strides = [1, 1]} : vector<4x4xf32> to vector<4x1xf32>
    %496 = vector.extract_strided_slice %96 {offsets = [1, 0], sizes = [1, 256], strides = [1, 1]} : vector<4x256xf32> to vector<1x256xf32>
    %497 = vector.broadcast %495 : vector<4x1xf32> to vector<4x256xf32>
    %498 = vector.broadcast %496 : vector<1x256xf32> to vector<4x256xf32>
    %499 = arith.mulf %497, %498 : vector<4x256xf32>
    %500 = arith.addf %494, %499 : vector<4x256xf32>
    %501 = vector.extract_strided_slice %489 {offsets = [0, 2], sizes = [4, 1], strides = [1, 1]} : vector<4x4xf32> to vector<4x1xf32>
    %502 = vector.extract_strided_slice %96 {offsets = [2, 0], sizes = [1, 256], strides = [1, 1]} : vector<4x256xf32> to vector<1x256xf32>
    %503 = vector.broadcast %501 : vector<4x1xf32> to vector<4x256xf32>
    %504 = vector.broadcast %502 : vector<1x256xf32> to vector<4x256xf32>
    %505 = arith.mulf %503, %504 : vector<4x256xf32>
    %506 = arith.addf %500, %505 : vector<4x256xf32>
    %507 = vector.extract_strided_slice %489 {offsets = [0, 3], sizes = [4, 1], strides = [1, 1]} : vector<4x4xf32> to vector<4x1xf32>
    %508 = vector.extract_strided_slice %96 {offsets = [3, 0], sizes = [1, 256], strides = [1, 1]} : vector<4x256xf32> to vector<1x256xf32>
    %509 = vector.broadcast %507 : vector<4x1xf32> to vector<4x256xf32>
    %510 = vector.broadcast %508 : vector<1x256xf32> to vector<4x256xf32>
    %511 = arith.mulf %509, %510 : vector<4x256xf32>
    %512 = arith.addf %506, %511 : vector<4x256xf32>
    %513 = arith.addf %487, %512 : vector<4x256xf32>
    %c5_81 = arith.constant 5 : index
    %c0_82 = arith.constant 0 : index
    %c0_83 = arith.constant 0 : index
    %514 = vector.load %arg8[%c5_81, %c0_82, %c0_83] : memref<9x4x4xf32, #tpu.memory_space<vmem>>, vector<1x4x4xf32>
    %515 = vector.shape_cast %514 : vector<1x4x4xf32> to vector<4x4xf32>
    %516 = vector.extract_strided_slice %515 {offsets = [0, 0], sizes = [4, 1], strides = [1, 1]} : vector<4x4xf32> to vector<4x1xf32>
    %517 = vector.extract_strided_slice %101 {offsets = [0, 0], sizes = [1, 256], strides = [1, 1]} : vector<4x256xf32> to vector<1x256xf32>
    %518 = vector.broadcast %516 : vector<4x1xf32> to vector<4x256xf32>
    %519 = vector.broadcast %517 : vector<1x256xf32> to vector<4x256xf32>
    %520 = arith.mulf %518, %519 : vector<4x256xf32>
    %521 = vector.extract_strided_slice %515 {offsets = [0, 1], sizes = [4, 1], strides = [1, 1]} : vector<4x4xf32> to vector<4x1xf32>
    %522 = vector.extract_strided_slice %101 {offsets = [1, 0], sizes = [1, 256], strides = [1, 1]} : vector<4x256xf32> to vector<1x256xf32>
    %523 = vector.broadcast %521 : vector<4x1xf32> to vector<4x256xf32>
    %524 = vector.broadcast %522 : vector<1x256xf32> to vector<4x256xf32>
    %525 = arith.mulf %523, %524 : vector<4x256xf32>
    %526 = arith.addf %520, %525 : vector<4x256xf32>
    %527 = vector.extract_strided_slice %515 {offsets = [0, 2], sizes = [4, 1], strides = [1, 1]} : vector<4x4xf32> to vector<4x1xf32>
    %528 = vector.extract_strided_slice %101 {offsets = [2, 0], sizes = [1, 256], strides = [1, 1]} : vector<4x256xf32> to vector<1x256xf32>
    %529 = vector.broadcast %527 : vector<4x1xf32> to vector<4x256xf32>
    %530 = vector.broadcast %528 : vector<1x256xf32> to vector<4x256xf32>
    %531 = arith.mulf %529, %530 : vector<4x256xf32>
    %532 = arith.addf %526, %531 : vector<4x256xf32>
    %533 = vector.extract_strided_slice %515 {offsets = [0, 3], sizes = [4, 1], strides = [1, 1]} : vector<4x4xf32> to vector<4x1xf32>
    %534 = vector.extract_strided_slice %101 {offsets = [3, 0], sizes = [1, 256], strides = [1, 1]} : vector<4x256xf32> to vector<1x256xf32>
    %535 = vector.broadcast %533 : vector<4x1xf32> to vector<4x256xf32>
    %536 = vector.broadcast %534 : vector<1x256xf32> to vector<4x256xf32>
    %537 = arith.mulf %535, %536 : vector<4x256xf32>
    %538 = arith.addf %532, %537 : vector<4x256xf32>
    %539 = arith.addf %513, %538 : vector<4x256xf32>
    %c6_84 = arith.constant 6 : index
    %c0_85 = arith.constant 0 : index
    %c0_86 = arith.constant 0 : index
    %540 = vector.load %arg8[%c6_84, %c0_85, %c0_86] : memref<9x4x4xf32, #tpu.memory_space<vmem>>, vector<1x4x4xf32>
    %541 = vector.shape_cast %540 : vector<1x4x4xf32> to vector<4x4xf32>
    %542 = vector.extract_strided_slice %541 {offsets = [0, 0], sizes = [4, 1], strides = [1, 1]} : vector<4x4xf32> to vector<4x1xf32>
    %543 = vector.extract_strided_slice %106 {offsets = [0, 0], sizes = [1, 256], strides = [1, 1]} : vector<4x256xf32> to vector<1x256xf32>
    %544 = vector.broadcast %542 : vector<4x1xf32> to vector<4x256xf32>
    %545 = vector.broadcast %543 : vector<1x256xf32> to vector<4x256xf32>
    %546 = arith.mulf %544, %545 : vector<4x256xf32>
    %547 = vector.extract_strided_slice %541 {offsets = [0, 1], sizes = [4, 1], strides = [1, 1]} : vector<4x4xf32> to vector<4x1xf32>
    %548 = vector.extract_strided_slice %106 {offsets = [1, 0], sizes = [1, 256], strides = [1, 1]} : vector<4x256xf32> to vector<1x256xf32>
    %549 = vector.broadcast %547 : vector<4x1xf32> to vector<4x256xf32>
    %550 = vector.broadcast %548 : vector<1x256xf32> to vector<4x256xf32>
    %551 = arith.mulf %549, %550 : vector<4x256xf32>
    %552 = arith.addf %546, %551 : vector<4x256xf32>
    %553 = vector.extract_strided_slice %541 {offsets = [0, 2], sizes = [4, 1], strides = [1, 1]} : vector<4x4xf32> to vector<4x1xf32>
    %554 = vector.extract_strided_slice %106 {offsets = [2, 0], sizes = [1, 256], strides = [1, 1]} : vector<4x256xf32> to vector<1x256xf32>
    %555 = vector.broadcast %553 : vector<4x1xf32> to vector<4x256xf32>
    %556 = vector.broadcast %554 : vector<1x256xf32> to vector<4x256xf32>
    %557 = arith.mulf %555, %556 : vector<4x256xf32>
    %558 = arith.addf %552, %557 : vector<4x256xf32>
    %559 = vector.extract_strided_slice %541 {offsets = [0, 3], sizes = [4, 1], strides = [1, 1]} : vector<4x4xf32> to vector<4x1xf32>
    %560 = vector.extract_strided_slice %106 {offsets = [3, 0], sizes = [1, 256], strides = [1, 1]} : vector<4x256xf32> to vector<1x256xf32>
    %561 = vector.broadcast %559 : vector<4x1xf32> to vector<4x256xf32>
    %562 = vector.broadcast %560 : vector<1x256xf32> to vector<4x256xf32>
    %563 = arith.mulf %561, %562 : vector<4x256xf32>
    %564 = arith.addf %558, %563 : vector<4x256xf32>
    %565 = arith.addf %539, %564 : vector<4x256xf32>
    %c7_87 = arith.constant 7 : index
    %c0_88 = arith.constant 0 : index
    %c0_89 = arith.constant 0 : index
    %566 = vector.load %arg8[%c7_87, %c0_88, %c0_89] : memref<9x4x4xf32, #tpu.memory_space<vmem>>, vector<1x4x4xf32>
    %567 = vector.shape_cast %566 : vector<1x4x4xf32> to vector<4x4xf32>
    %568 = vector.extract_strided_slice %567 {offsets = [0, 0], sizes = [4, 1], strides = [1, 1]} : vector<4x4xf32> to vector<4x1xf32>
    %569 = vector.extract_strided_slice %111 {offsets = [0, 0], sizes = [1, 256], strides = [1, 1]} : vector<4x256xf32> to vector<1x256xf32>
    %570 = vector.broadcast %568 : vector<4x1xf32> to vector<4x256xf32>
    %571 = vector.broadcast %569 : vector<1x256xf32> to vector<4x256xf32>
    %572 = arith.mulf %570, %571 : vector<4x256xf32>
    %573 = vector.extract_strided_slice %567 {offsets = [0, 1], sizes = [4, 1], strides = [1, 1]} : vector<4x4xf32> to vector<4x1xf32>
    %574 = vector.extract_strided_slice %111 {offsets = [1, 0], sizes = [1, 256], strides = [1, 1]} : vector<4x256xf32> to vector<1x256xf32>
    %575 = vector.broadcast %573 : vector<4x1xf32> to vector<4x256xf32>
    %576 = vector.broadcast %574 : vector<1x256xf32> to vector<4x256xf32>
    %577 = arith.mulf %575, %576 : vector<4x256xf32>
    %578 = arith.addf %572, %577 : vector<4x256xf32>
    %579 = vector.extract_strided_slice %567 {offsets = [0, 2], sizes = [4, 1], strides = [1, 1]} : vector<4x4xf32> to vector<4x1xf32>
    %580 = vector.extract_strided_slice %111 {offsets = [2, 0], sizes = [1, 256], strides = [1, 1]} : vector<4x256xf32> to vector<1x256xf32>
    %581 = vector.broadcast %579 : vector<4x1xf32> to vector<4x256xf32>
    %582 = vector.broadcast %580 : vector<1x256xf32> to vector<4x256xf32>
    %583 = arith.mulf %581, %582 : vector<4x256xf32>
    %584 = arith.addf %578, %583 : vector<4x256xf32>
    %585 = vector.extract_strided_slice %567 {offsets = [0, 3], sizes = [4, 1], strides = [1, 1]} : vector<4x4xf32> to vector<4x1xf32>
    %586 = vector.extract_strided_slice %111 {offsets = [3, 0], sizes = [1, 256], strides = [1, 1]} : vector<4x256xf32> to vector<1x256xf32>
    %587 = vector.broadcast %585 : vector<4x1xf32> to vector<4x256xf32>
    %588 = vector.broadcast %586 : vector<1x256xf32> to vector<4x256xf32>
    %589 = arith.mulf %587, %588 : vector<4x256xf32>
    %590 = arith.addf %584, %589 : vector<4x256xf32>
    %591 = arith.addf %565, %590 : vector<4x256xf32>
    %c8_90 = arith.constant 8 : index
    %c0_91 = arith.constant 0 : index
    %c0_92 = arith.constant 0 : index
    %592 = vector.load %arg8[%c8_90, %c0_91, %c0_92] : memref<9x4x4xf32, #tpu.memory_space<vmem>>, vector<1x4x4xf32>
    %593 = vector.shape_cast %592 : vector<1x4x4xf32> to vector<4x4xf32>
    %594 = vector.extract_strided_slice %593 {offsets = [0, 0], sizes = [4, 1], strides = [1, 1]} : vector<4x4xf32> to vector<4x1xf32>
    %595 = vector.extract_strided_slice %116 {offsets = [0, 0], sizes = [1, 256], strides = [1, 1]} : vector<4x256xf32> to vector<1x256xf32>
    %596 = vector.broadcast %594 : vector<4x1xf32> to vector<4x256xf32>
    %597 = vector.broadcast %595 : vector<1x256xf32> to vector<4x256xf32>
    %598 = arith.mulf %596, %597 : vector<4x256xf32>
    %599 = vector.extract_strided_slice %593 {offsets = [0, 1], sizes = [4, 1], strides = [1, 1]} : vector<4x4xf32> to vector<4x1xf32>
    %600 = vector.extract_strided_slice %116 {offsets = [1, 0], sizes = [1, 256], strides = [1, 1]} : vector<4x256xf32> to vector<1x256xf32>
    %601 = vector.broadcast %599 : vector<4x1xf32> to vector<4x256xf32>
    %602 = vector.broadcast %600 : vector<1x256xf32> to vector<4x256xf32>
    %603 = arith.mulf %601, %602 : vector<4x256xf32>
    %604 = arith.addf %598, %603 : vector<4x256xf32>
    %605 = vector.extract_strided_slice %593 {offsets = [0, 2], sizes = [4, 1], strides = [1, 1]} : vector<4x4xf32> to vector<4x1xf32>
    %606 = vector.extract_strided_slice %116 {offsets = [2, 0], sizes = [1, 256], strides = [1, 1]} : vector<4x256xf32> to vector<1x256xf32>
    %607 = vector.broadcast %605 : vector<4x1xf32> to vector<4x256xf32>
    %608 = vector.broadcast %606 : vector<1x256xf32> to vector<4x256xf32>
    %609 = arith.mulf %607, %608 : vector<4x256xf32>
    %610 = arith.addf %604, %609 : vector<4x256xf32>
    %611 = vector.extract_strided_slice %593 {offsets = [0, 3], sizes = [4, 1], strides = [1, 1]} : vector<4x4xf32> to vector<4x1xf32>
    %612 = vector.extract_strided_slice %116 {offsets = [3, 0], sizes = [1, 256], strides = [1, 1]} : vector<4x256xf32> to vector<1x256xf32>
    %613 = vector.broadcast %611 : vector<4x1xf32> to vector<4x256xf32>
    %614 = vector.broadcast %612 : vector<1x256xf32> to vector<4x256xf32>
    %615 = arith.mulf %613, %614 : vector<4x256xf32>
    %616 = arith.addf %610, %615 : vector<4x256xf32>
    %617 = arith.addf %591, %616 : vector<4x256xf32>
    %618 = arith.mulf %617, %384 : vector<4x256xf32>
    %c17_i32_93 = arith.constant 17 : i32
    %619 = tpu.dynamic_rotate %618 by %c17_i32_93 dim 1 : vector<4x256xf32>, i32 -> vector<4x256xf32>
    %c0_94 = arith.constant 0 : index
    %c0_95 = arith.constant 0 : index
    %c0_96 = arith.constant 0 : index
    %620 = vector.load %arg2[%c0_94, %c0_95, %c0_96] : memref<9x1x256xf32, #tpu.memory_space<vmem>>, vector<1x1x256xf32>
    %621 = vector.shape_cast %620 : vector<1x1x256xf32> to vector<1x256xf32>
    %622 = vector.broadcast %621 : vector<1x256xf32> to vector<4x256xf32>
    %623 = arith.mulf %619, %622 : vector<4x256xf32>
    %c16_i32_97 = arith.constant 16 : i32
    %624 = tpu.dynamic_rotate %618 by %c16_i32_97 dim 1 : vector<4x256xf32>, i32 -> vector<4x256xf32>
    %c1_98 = arith.constant 1 : index
    %c0_99 = arith.constant 0 : index
    %c0_100 = arith.constant 0 : index
    %625 = vector.load %arg2[%c1_98, %c0_99, %c0_100] : memref<9x1x256xf32, #tpu.memory_space<vmem>>, vector<1x1x256xf32>
    %626 = vector.shape_cast %625 : vector<1x1x256xf32> to vector<1x256xf32>
    %627 = vector.broadcast %626 : vector<1x256xf32> to vector<4x256xf32>
    %628 = arith.mulf %624, %627 : vector<4x256xf32>
    %c15_i32_101 = arith.constant 15 : i32
    %629 = tpu.dynamic_rotate %618 by %c15_i32_101 dim 1 : vector<4x256xf32>, i32 -> vector<4x256xf32>
    %c2_102 = arith.constant 2 : index
    %c0_103 = arith.constant 0 : index
    %c0_104 = arith.constant 0 : index
    %630 = vector.load %arg2[%c2_102, %c0_103, %c0_104] : memref<9x1x256xf32, #tpu.memory_space<vmem>>, vector<1x1x256xf32>
    %631 = vector.shape_cast %630 : vector<1x1x256xf32> to vector<1x256xf32>
    %632 = vector.broadcast %631 : vector<1x256xf32> to vector<4x256xf32>
    %633 = arith.mulf %629, %632 : vector<4x256xf32>
    %c1_i32_105 = arith.constant 1 : i32
    %634 = tpu.dynamic_rotate %618 by %c1_i32_105 dim 1 : vector<4x256xf32>, i32 -> vector<4x256xf32>
    %c3_106 = arith.constant 3 : index
    %c0_107 = arith.constant 0 : index
    %c0_108 = arith.constant 0 : index
    %635 = vector.load %arg2[%c3_106, %c0_107, %c0_108] : memref<9x1x256xf32, #tpu.memory_space<vmem>>, vector<1x1x256xf32>
    %636 = vector.shape_cast %635 : vector<1x1x256xf32> to vector<1x256xf32>
    %637 = vector.broadcast %636 : vector<1x256xf32> to vector<4x256xf32>
    %638 = arith.mulf %634, %637 : vector<4x256xf32>
    %c4_109 = arith.constant 4 : index
    %c0_110 = arith.constant 0 : index
    %c0_111 = arith.constant 0 : index
    %639 = vector.load %arg2[%c4_109, %c0_110, %c0_111] : memref<9x1x256xf32, #tpu.memory_space<vmem>>, vector<1x1x256xf32>
    %640 = vector.shape_cast %639 : vector<1x1x256xf32> to vector<1x256xf32>
    %641 = vector.broadcast %640 : vector<1x256xf32> to vector<4x256xf32>
    %642 = arith.mulf %618, %641 : vector<4x256xf32>
    %c255_i32_112 = arith.constant 255 : i32
    %643 = tpu.dynamic_rotate %618 by %c255_i32_112 dim 1 : vector<4x256xf32>, i32 -> vector<4x256xf32>
    %c5_113 = arith.constant 5 : index
    %c0_114 = arith.constant 0 : index
    %c0_115 = arith.constant 0 : index
    %644 = vector.load %arg2[%c5_113, %c0_114, %c0_115] : memref<9x1x256xf32, #tpu.memory_space<vmem>>, vector<1x1x256xf32>
    %645 = vector.shape_cast %644 : vector<1x1x256xf32> to vector<1x256xf32>
    %646 = vector.broadcast %645 : vector<1x256xf32> to vector<4x256xf32>
    %647 = arith.mulf %643, %646 : vector<4x256xf32>
    %c241_i32_116 = arith.constant 241 : i32
    %648 = tpu.dynamic_rotate %618 by %c241_i32_116 dim 1 : vector<4x256xf32>, i32 -> vector<4x256xf32>
    %c6_117 = arith.constant 6 : index
    %c0_118 = arith.constant 0 : index
    %c0_119 = arith.constant 0 : index
    %649 = vector.load %arg2[%c6_117, %c0_118, %c0_119] : memref<9x1x256xf32, #tpu.memory_space<vmem>>, vector<1x1x256xf32>
    %650 = vector.shape_cast %649 : vector<1x1x256xf32> to vector<1x256xf32>
    %651 = vector.broadcast %650 : vector<1x256xf32> to vector<4x256xf32>
    %652 = arith.mulf %648, %651 : vector<4x256xf32>
    %c240_i32_120 = arith.constant 240 : i32
    %653 = tpu.dynamic_rotate %618 by %c240_i32_120 dim 1 : vector<4x256xf32>, i32 -> vector<4x256xf32>
    %c7_121 = arith.constant 7 : index
    %c0_122 = arith.constant 0 : index
    %c0_123 = arith.constant 0 : index
    %654 = vector.load %arg2[%c7_121, %c0_122, %c0_123] : memref<9x1x256xf32, #tpu.memory_space<vmem>>, vector<1x1x256xf32>
    %655 = vector.shape_cast %654 : vector<1x1x256xf32> to vector<1x256xf32>
    %656 = vector.broadcast %655 : vector<1x256xf32> to vector<4x256xf32>
    %657 = arith.mulf %653, %656 : vector<4x256xf32>
    %c239_i32_124 = arith.constant 239 : i32
    %658 = tpu.dynamic_rotate %618 by %c239_i32_124 dim 1 : vector<4x256xf32>, i32 -> vector<4x256xf32>
    %c8_125 = arith.constant 8 : index
    %c0_126 = arith.constant 0 : index
    %c0_127 = arith.constant 0 : index
    %659 = vector.load %arg2[%c8_125, %c0_126, %c0_127] : memref<9x1x256xf32, #tpu.memory_space<vmem>>, vector<1x1x256xf32>
    %660 = vector.shape_cast %659 : vector<1x1x256xf32> to vector<1x256xf32>
    %661 = vector.broadcast %660 : vector<1x256xf32> to vector<4x256xf32>
    %662 = arith.mulf %658, %661 : vector<4x256xf32>
    %c0_128 = arith.constant 0 : index
    %c0_129 = arith.constant 0 : index
    %c0_130 = arith.constant 0 : index
    %663 = vector.load %arg9[%c0_128, %c0_129, %c0_130] : memref<9x4x4xf32, #tpu.memory_space<vmem>>, vector<1x4x4xf32>
    %664 = vector.shape_cast %663 : vector<1x4x4xf32> to vector<4x4xf32>
    %665 = vector.extract_strided_slice %664 {offsets = [0, 0], sizes = [4, 1], strides = [1, 1]} : vector<4x4xf32> to vector<4x1xf32>
    %666 = vector.extract_strided_slice %623 {offsets = [0, 0], sizes = [1, 256], strides = [1, 1]} : vector<4x256xf32> to vector<1x256xf32>
    %667 = vector.broadcast %665 : vector<4x1xf32> to vector<4x256xf32>
    %668 = vector.broadcast %666 : vector<1x256xf32> to vector<4x256xf32>
    %669 = arith.mulf %667, %668 : vector<4x256xf32>
    %670 = vector.extract_strided_slice %664 {offsets = [0, 1], sizes = [4, 1], strides = [1, 1]} : vector<4x4xf32> to vector<4x1xf32>
    %671 = vector.extract_strided_slice %623 {offsets = [1, 0], sizes = [1, 256], strides = [1, 1]} : vector<4x256xf32> to vector<1x256xf32>
    %672 = vector.broadcast %670 : vector<4x1xf32> to vector<4x256xf32>
    %673 = vector.broadcast %671 : vector<1x256xf32> to vector<4x256xf32>
    %674 = arith.mulf %672, %673 : vector<4x256xf32>
    %675 = arith.addf %669, %674 : vector<4x256xf32>
    %676 = vector.extract_strided_slice %664 {offsets = [0, 2], sizes = [4, 1], strides = [1, 1]} : vector<4x4xf32> to vector<4x1xf32>
    %677 = vector.extract_strided_slice %623 {offsets = [2, 0], sizes = [1, 256], strides = [1, 1]} : vector<4x256xf32> to vector<1x256xf32>
    %678 = vector.broadcast %676 : vector<4x1xf32> to vector<4x256xf32>
    %679 = vector.broadcast %677 : vector<1x256xf32> to vector<4x256xf32>
    %680 = arith.mulf %678, %679 : vector<4x256xf32>
    %681 = arith.addf %675, %680 : vector<4x256xf32>
    %682 = vector.extract_strided_slice %664 {offsets = [0, 3], sizes = [4, 1], strides = [1, 1]} : vector<4x4xf32> to vector<4x1xf32>
    %683 = vector.extract_strided_slice %623 {offsets = [3, 0], sizes = [1, 256], strides = [1, 1]} : vector<4x256xf32> to vector<1x256xf32>
    %684 = vector.broadcast %682 : vector<4x1xf32> to vector<4x256xf32>
    %685 = vector.broadcast %683 : vector<1x256xf32> to vector<4x256xf32>
    %686 = arith.mulf %684, %685 : vector<4x256xf32>
    %687 = arith.addf %681, %686 : vector<4x256xf32>
    %c1_131 = arith.constant 1 : index
    %c0_132 = arith.constant 0 : index
    %c0_133 = arith.constant 0 : index
    %688 = vector.load %arg9[%c1_131, %c0_132, %c0_133] : memref<9x4x4xf32, #tpu.memory_space<vmem>>, vector<1x4x4xf32>
    %689 = vector.shape_cast %688 : vector<1x4x4xf32> to vector<4x4xf32>
    %690 = vector.extract_strided_slice %689 {offsets = [0, 0], sizes = [4, 1], strides = [1, 1]} : vector<4x4xf32> to vector<4x1xf32>
    %691 = vector.extract_strided_slice %628 {offsets = [0, 0], sizes = [1, 256], strides = [1, 1]} : vector<4x256xf32> to vector<1x256xf32>
    %692 = vector.broadcast %690 : vector<4x1xf32> to vector<4x256xf32>
    %693 = vector.broadcast %691 : vector<1x256xf32> to vector<4x256xf32>
    %694 = arith.mulf %692, %693 : vector<4x256xf32>
    %695 = vector.extract_strided_slice %689 {offsets = [0, 1], sizes = [4, 1], strides = [1, 1]} : vector<4x4xf32> to vector<4x1xf32>
    %696 = vector.extract_strided_slice %628 {offsets = [1, 0], sizes = [1, 256], strides = [1, 1]} : vector<4x256xf32> to vector<1x256xf32>
    %697 = vector.broadcast %695 : vector<4x1xf32> to vector<4x256xf32>
    %698 = vector.broadcast %696 : vector<1x256xf32> to vector<4x256xf32>
    %699 = arith.mulf %697, %698 : vector<4x256xf32>
    %700 = arith.addf %694, %699 : vector<4x256xf32>
    %701 = vector.extract_strided_slice %689 {offsets = [0, 2], sizes = [4, 1], strides = [1, 1]} : vector<4x4xf32> to vector<4x1xf32>
    %702 = vector.extract_strided_slice %628 {offsets = [2, 0], sizes = [1, 256], strides = [1, 1]} : vector<4x256xf32> to vector<1x256xf32>
    %703 = vector.broadcast %701 : vector<4x1xf32> to vector<4x256xf32>
    %704 = vector.broadcast %702 : vector<1x256xf32> to vector<4x256xf32>
    %705 = arith.mulf %703, %704 : vector<4x256xf32>
    %706 = arith.addf %700, %705 : vector<4x256xf32>
    %707 = vector.extract_strided_slice %689 {offsets = [0, 3], sizes = [4, 1], strides = [1, 1]} : vector<4x4xf32> to vector<4x1xf32>
    %708 = vector.extract_strided_slice %628 {offsets = [3, 0], sizes = [1, 256], strides = [1, 1]} : vector<4x256xf32> to vector<1x256xf32>
    %709 = vector.broadcast %707 : vector<4x1xf32> to vector<4x256xf32>
    %710 = vector.broadcast %708 : vector<1x256xf32> to vector<4x256xf32>
    %711 = arith.mulf %709, %710 : vector<4x256xf32>
    %712 = arith.addf %706, %711 : vector<4x256xf32>
    %713 = arith.addf %687, %712 : vector<4x256xf32>
    %c2_134 = arith.constant 2 : index
    %c0_135 = arith.constant 0 : index
    %c0_136 = arith.constant 0 : index
    %714 = vector.load %arg9[%c2_134, %c0_135, %c0_136] : memref<9x4x4xf32, #tpu.memory_space<vmem>>, vector<1x4x4xf32>
    %715 = vector.shape_cast %714 : vector<1x4x4xf32> to vector<4x4xf32>
    %716 = vector.extract_strided_slice %715 {offsets = [0, 0], sizes = [4, 1], strides = [1, 1]} : vector<4x4xf32> to vector<4x1xf32>
    %717 = vector.extract_strided_slice %633 {offsets = [0, 0], sizes = [1, 256], strides = [1, 1]} : vector<4x256xf32> to vector<1x256xf32>
    %718 = vector.broadcast %716 : vector<4x1xf32> to vector<4x256xf32>
    %719 = vector.broadcast %717 : vector<1x256xf32> to vector<4x256xf32>
    %720 = arith.mulf %718, %719 : vector<4x256xf32>
    %721 = vector.extract_strided_slice %715 {offsets = [0, 1], sizes = [4, 1], strides = [1, 1]} : vector<4x4xf32> to vector<4x1xf32>
    %722 = vector.extract_strided_slice %633 {offsets = [1, 0], sizes = [1, 256], strides = [1, 1]} : vector<4x256xf32> to vector<1x256xf32>
    %723 = vector.broadcast %721 : vector<4x1xf32> to vector<4x256xf32>
    %724 = vector.broadcast %722 : vector<1x256xf32> to vector<4x256xf32>
    %725 = arith.mulf %723, %724 : vector<4x256xf32>
    %726 = arith.addf %720, %725 : vector<4x256xf32>
    %727 = vector.extract_strided_slice %715 {offsets = [0, 2], sizes = [4, 1], strides = [1, 1]} : vector<4x4xf32> to vector<4x1xf32>
    %728 = vector.extract_strided_slice %633 {offsets = [2, 0], sizes = [1, 256], strides = [1, 1]} : vector<4x256xf32> to vector<1x256xf32>
    %729 = vector.broadcast %727 : vector<4x1xf32> to vector<4x256xf32>
    %730 = vector.broadcast %728 : vector<1x256xf32> to vector<4x256xf32>
    %731 = arith.mulf %729, %730 : vector<4x256xf32>
    %732 = arith.addf %726, %731 : vector<4x256xf32>
    %733 = vector.extract_strided_slice %715 {offsets = [0, 3], sizes = [4, 1], strides = [1, 1]} : vector<4x4xf32> to vector<4x1xf32>
    %734 = vector.extract_strided_slice %633 {offsets = [3, 0], sizes = [1, 256], strides = [1, 1]} : vector<4x256xf32> to vector<1x256xf32>
    %735 = vector.broadcast %733 : vector<4x1xf32> to vector<4x256xf32>
    %736 = vector.broadcast %734 : vector<1x256xf32> to vector<4x256xf32>
    %737 = arith.mulf %735, %736 : vector<4x256xf32>
    %738 = arith.addf %732, %737 : vector<4x256xf32>
    %739 = arith.addf %713, %738 : vector<4x256xf32>
    %c3_137 = arith.constant 3 : index
    %c0_138 = arith.constant 0 : index
    %c0_139 = arith.constant 0 : index
    %740 = vector.load %arg9[%c3_137, %c0_138, %c0_139] : memref<9x4x4xf32, #tpu.memory_space<vmem>>, vector<1x4x4xf32>
    %741 = vector.shape_cast %740 : vector<1x4x4xf32> to vector<4x4xf32>
    %742 = vector.extract_strided_slice %741 {offsets = [0, 0], sizes = [4, 1], strides = [1, 1]} : vector<4x4xf32> to vector<4x1xf32>
    %743 = vector.extract_strided_slice %638 {offsets = [0, 0], sizes = [1, 256], strides = [1, 1]} : vector<4x256xf32> to vector<1x256xf32>
    %744 = vector.broadcast %742 : vector<4x1xf32> to vector<4x256xf32>
    %745 = vector.broadcast %743 : vector<1x256xf32> to vector<4x256xf32>
    %746 = arith.mulf %744, %745 : vector<4x256xf32>
    %747 = vector.extract_strided_slice %741 {offsets = [0, 1], sizes = [4, 1], strides = [1, 1]} : vector<4x4xf32> to vector<4x1xf32>
    %748 = vector.extract_strided_slice %638 {offsets = [1, 0], sizes = [1, 256], strides = [1, 1]} : vector<4x256xf32> to vector<1x256xf32>
    %749 = vector.broadcast %747 : vector<4x1xf32> to vector<4x256xf32>
    %750 = vector.broadcast %748 : vector<1x256xf32> to vector<4x256xf32>
    %751 = arith.mulf %749, %750 : vector<4x256xf32>
    %752 = arith.addf %746, %751 : vector<4x256xf32>
    %753 = vector.extract_strided_slice %741 {offsets = [0, 2], sizes = [4, 1], strides = [1, 1]} : vector<4x4xf32> to vector<4x1xf32>
    %754 = vector.extract_strided_slice %638 {offsets = [2, 0], sizes = [1, 256], strides = [1, 1]} : vector<4x256xf32> to vector<1x256xf32>
    %755 = vector.broadcast %753 : vector<4x1xf32> to vector<4x256xf32>
    %756 = vector.broadcast %754 : vector<1x256xf32> to vector<4x256xf32>
    %757 = arith.mulf %755, %756 : vector<4x256xf32>
    %758 = arith.addf %752, %757 : vector<4x256xf32>
    %759 = vector.extract_strided_slice %741 {offsets = [0, 3], sizes = [4, 1], strides = [1, 1]} : vector<4x4xf32> to vector<4x1xf32>
    %760 = vector.extract_strided_slice %638 {offsets = [3, 0], sizes = [1, 256], strides = [1, 1]} : vector<4x256xf32> to vector<1x256xf32>
    %761 = vector.broadcast %759 : vector<4x1xf32> to vector<4x256xf32>
    %762 = vector.broadcast %760 : vector<1x256xf32> to vector<4x256xf32>
    %763 = arith.mulf %761, %762 : vector<4x256xf32>
    %764 = arith.addf %758, %763 : vector<4x256xf32>
    %765 = arith.addf %739, %764 : vector<4x256xf32>
    %c4_140 = arith.constant 4 : index
    %c0_141 = arith.constant 0 : index
    %c0_142 = arith.constant 0 : index
    %766 = vector.load %arg9[%c4_140, %c0_141, %c0_142] : memref<9x4x4xf32, #tpu.memory_space<vmem>>, vector<1x4x4xf32>
    %767 = vector.shape_cast %766 : vector<1x4x4xf32> to vector<4x4xf32>
    %768 = vector.extract_strided_slice %767 {offsets = [0, 0], sizes = [4, 1], strides = [1, 1]} : vector<4x4xf32> to vector<4x1xf32>
    %769 = vector.extract_strided_slice %642 {offsets = [0, 0], sizes = [1, 256], strides = [1, 1]} : vector<4x256xf32> to vector<1x256xf32>
    %770 = vector.broadcast %768 : vector<4x1xf32> to vector<4x256xf32>
    %771 = vector.broadcast %769 : vector<1x256xf32> to vector<4x256xf32>
    %772 = arith.mulf %770, %771 : vector<4x256xf32>
    %773 = vector.extract_strided_slice %767 {offsets = [0, 1], sizes = [4, 1], strides = [1, 1]} : vector<4x4xf32> to vector<4x1xf32>
    %774 = vector.extract_strided_slice %642 {offsets = [1, 0], sizes = [1, 256], strides = [1, 1]} : vector<4x256xf32> to vector<1x256xf32>
    %775 = vector.broadcast %773 : vector<4x1xf32> to vector<4x256xf32>
    %776 = vector.broadcast %774 : vector<1x256xf32> to vector<4x256xf32>
    %777 = arith.mulf %775, %776 : vector<4x256xf32>
    %778 = arith.addf %772, %777 : vector<4x256xf32>
    %779 = vector.extract_strided_slice %767 {offsets = [0, 2], sizes = [4, 1], strides = [1, 1]} : vector<4x4xf32> to vector<4x1xf32>
    %780 = vector.extract_strided_slice %642 {offsets = [2, 0], sizes = [1, 256], strides = [1, 1]} : vector<4x256xf32> to vector<1x256xf32>
    %781 = vector.broadcast %779 : vector<4x1xf32> to vector<4x256xf32>
    %782 = vector.broadcast %780 : vector<1x256xf32> to vector<4x256xf32>
    %783 = arith.mulf %781, %782 : vector<4x256xf32>
    %784 = arith.addf %778, %783 : vector<4x256xf32>
    %785 = vector.extract_strided_slice %767 {offsets = [0, 3], sizes = [4, 1], strides = [1, 1]} : vector<4x4xf32> to vector<4x1xf32>
    %786 = vector.extract_strided_slice %642 {offsets = [3, 0], sizes = [1, 256], strides = [1, 1]} : vector<4x256xf32> to vector<1x256xf32>
    %787 = vector.broadcast %785 : vector<4x1xf32> to vector<4x256xf32>
    %788 = vector.broadcast %786 : vector<1x256xf32> to vector<4x256xf32>
    %789 = arith.mulf %787, %788 : vector<4x256xf32>
    %790 = arith.addf %784, %789 : vector<4x256xf32>
    %791 = arith.addf %765, %790 : vector<4x256xf32>
    %c5_143 = arith.constant 5 : index
    %c0_144 = arith.constant 0 : index
    %c0_145 = arith.constant 0 : index
    %792 = vector.load %arg9[%c5_143, %c0_144, %c0_145] : memref<9x4x4xf32, #tpu.memory_space<vmem>>, vector<1x4x4xf32>
    %793 = vector.shape_cast %792 : vector<1x4x4xf32> to vector<4x4xf32>
    %794 = vector.extract_strided_slice %793 {offsets = [0, 0], sizes = [4, 1], strides = [1, 1]} : vector<4x4xf32> to vector<4x1xf32>
    %795 = vector.extract_strided_slice %647 {offsets = [0, 0], sizes = [1, 256], strides = [1, 1]} : vector<4x256xf32> to vector<1x256xf32>
    %796 = vector.broadcast %794 : vector<4x1xf32> to vector<4x256xf32>
    %797 = vector.broadcast %795 : vector<1x256xf32> to vector<4x256xf32>
    %798 = arith.mulf %796, %797 : vector<4x256xf32>
    %799 = vector.extract_strided_slice %793 {offsets = [0, 1], sizes = [4, 1], strides = [1, 1]} : vector<4x4xf32> to vector<4x1xf32>
    %800 = vector.extract_strided_slice %647 {offsets = [1, 0], sizes = [1, 256], strides = [1, 1]} : vector<4x256xf32> to vector<1x256xf32>
    %801 = vector.broadcast %799 : vector<4x1xf32> to vector<4x256xf32>
    %802 = vector.broadcast %800 : vector<1x256xf32> to vector<4x256xf32>
    %803 = arith.mulf %801, %802 : vector<4x256xf32>
    %804 = arith.addf %798, %803 : vector<4x256xf32>
    %805 = vector.extract_strided_slice %793 {offsets = [0, 2], sizes = [4, 1], strides = [1, 1]} : vector<4x4xf32> to vector<4x1xf32>
    %806 = vector.extract_strided_slice %647 {offsets = [2, 0], sizes = [1, 256], strides = [1, 1]} : vector<4x256xf32> to vector<1x256xf32>
    %807 = vector.broadcast %805 : vector<4x1xf32> to vector<4x256xf32>
    %808 = vector.broadcast %806 : vector<1x256xf32> to vector<4x256xf32>
    %809 = arith.mulf %807, %808 : vector<4x256xf32>
    %810 = arith.addf %804, %809 : vector<4x256xf32>
    %811 = vector.extract_strided_slice %793 {offsets = [0, 3], sizes = [4, 1], strides = [1, 1]} : vector<4x4xf32> to vector<4x1xf32>
    %812 = vector.extract_strided_slice %647 {offsets = [3, 0], sizes = [1, 256], strides = [1, 1]} : vector<4x256xf32> to vector<1x256xf32>
    %813 = vector.broadcast %811 : vector<4x1xf32> to vector<4x256xf32>
    %814 = vector.broadcast %812 : vector<1x256xf32> to vector<4x256xf32>
    %815 = arith.mulf %813, %814 : vector<4x256xf32>
    %816 = arith.addf %810, %815 : vector<4x256xf32>
    %817 = arith.addf %791, %816 : vector<4x256xf32>
    %c6_146 = arith.constant 6 : index
    %c0_147 = arith.constant 0 : index
    %c0_148 = arith.constant 0 : index
    %818 = vector.load %arg9[%c6_146, %c0_147, %c0_148] : memref<9x4x4xf32, #tpu.memory_space<vmem>>, vector<1x4x4xf32>
    %819 = vector.shape_cast %818 : vector<1x4x4xf32> to vector<4x4xf32>
    %820 = vector.extract_strided_slice %819 {offsets = [0, 0], sizes = [4, 1], strides = [1, 1]} : vector<4x4xf32> to vector<4x1xf32>
    %821 = vector.extract_strided_slice %652 {offsets = [0, 0], sizes = [1, 256], strides = [1, 1]} : vector<4x256xf32> to vector<1x256xf32>
    %822 = vector.broadcast %820 : vector<4x1xf32> to vector<4x256xf32>
    %823 = vector.broadcast %821 : vector<1x256xf32> to vector<4x256xf32>
    %824 = arith.mulf %822, %823 : vector<4x256xf32>
    %825 = vector.extract_strided_slice %819 {offsets = [0, 1], sizes = [4, 1], strides = [1, 1]} : vector<4x4xf32> to vector<4x1xf32>
    %826 = vector.extract_strided_slice %652 {offsets = [1, 0], sizes = [1, 256], strides = [1, 1]} : vector<4x256xf32> to vector<1x256xf32>
    %827 = vector.broadcast %825 : vector<4x1xf32> to vector<4x256xf32>
    %828 = vector.broadcast %826 : vector<1x256xf32> to vector<4x256xf32>
    %829 = arith.mulf %827, %828 : vector<4x256xf32>
    %830 = arith.addf %824, %829 : vector<4x256xf32>
    %831 = vector.extract_strided_slice %819 {offsets = [0, 2], sizes = [4, 1], strides = [1, 1]} : vector<4x4xf32> to vector<4x1xf32>
    %832 = vector.extract_strided_slice %652 {offsets = [2, 0], sizes = [1, 256], strides = [1, 1]} : vector<4x256xf32> to vector<1x256xf32>
    %833 = vector.broadcast %831 : vector<4x1xf32> to vector<4x256xf32>
    %834 = vector.broadcast %832 : vector<1x256xf32> to vector<4x256xf32>
    %835 = arith.mulf %833, %834 : vector<4x256xf32>
    %836 = arith.addf %830, %835 : vector<4x256xf32>
    %837 = vector.extract_strided_slice %819 {offsets = [0, 3], sizes = [4, 1], strides = [1, 1]} : vector<4x4xf32> to vector<4x1xf32>
    %838 = vector.extract_strided_slice %652 {offsets = [3, 0], sizes = [1, 256], strides = [1, 1]} : vector<4x256xf32> to vector<1x256xf32>
    %839 = vector.broadcast %837 : vector<4x1xf32> to vector<4x256xf32>
    %840 = vector.broadcast %838 : vector<1x256xf32> to vector<4x256xf32>
    %841 = arith.mulf %839, %840 : vector<4x256xf32>
    %842 = arith.addf %836, %841 : vector<4x256xf32>
    %843 = arith.addf %817, %842 : vector<4x256xf32>
    %c7_149 = arith.constant 7 : index
    %c0_150 = arith.constant 0 : index
    %c0_151 = arith.constant 0 : index
    %844 = vector.load %arg9[%c7_149, %c0_150, %c0_151] : memref<9x4x4xf32, #tpu.memory_space<vmem>>, vector<1x4x4xf32>
    %845 = vector.shape_cast %844 : vector<1x4x4xf32> to vector<4x4xf32>
    %846 = vector.extract_strided_slice %845 {offsets = [0, 0], sizes = [4, 1], strides = [1, 1]} : vector<4x4xf32> to vector<4x1xf32>
    %847 = vector.extract_strided_slice %657 {offsets = [0, 0], sizes = [1, 256], strides = [1, 1]} : vector<4x256xf32> to vector<1x256xf32>
    %848 = vector.broadcast %846 : vector<4x1xf32> to vector<4x256xf32>
    %849 = vector.broadcast %847 : vector<1x256xf32> to vector<4x256xf32>
    %850 = arith.mulf %848, %849 : vector<4x256xf32>
    %851 = vector.extract_strided_slice %845 {offsets = [0, 1], sizes = [4, 1], strides = [1, 1]} : vector<4x4xf32> to vector<4x1xf32>
    %852 = vector.extract_strided_slice %657 {offsets = [1, 0], sizes = [1, 256], strides = [1, 1]} : vector<4x256xf32> to vector<1x256xf32>
    %853 = vector.broadcast %851 : vector<4x1xf32> to vector<4x256xf32>
    %854 = vector.broadcast %852 : vector<1x256xf32> to vector<4x256xf32>
    %855 = arith.mulf %853, %854 : vector<4x256xf32>
    %856 = arith.addf %850, %855 : vector<4x256xf32>
    %857 = vector.extract_strided_slice %845 {offsets = [0, 2], sizes = [4, 1], strides = [1, 1]} : vector<4x4xf32> to vector<4x1xf32>
    %858 = vector.extract_strided_slice %657 {offsets = [2, 0], sizes = [1, 256], strides = [1, 1]} : vector<4x256xf32> to vector<1x256xf32>
    %859 = vector.broadcast %857 : vector<4x1xf32> to vector<4x256xf32>
    %860 = vector.broadcast %858 : vector<1x256xf32> to vector<4x256xf32>
    %861 = arith.mulf %859, %860 : vector<4x256xf32>
    %862 = arith.addf %856, %861 : vector<4x256xf32>
    %863 = vector.extract_strided_slice %845 {offsets = [0, 3], sizes = [4, 1], strides = [1, 1]} : vector<4x4xf32> to vector<4x1xf32>
    %864 = vector.extract_strided_slice %657 {offsets = [3, 0], sizes = [1, 256], strides = [1, 1]} : vector<4x256xf32> to vector<1x256xf32>
    %865 = vector.broadcast %863 : vector<4x1xf32> to vector<4x256xf32>
    %866 = vector.broadcast %864 : vector<1x256xf32> to vector<4x256xf32>
    %867 = arith.mulf %865, %866 : vector<4x256xf32>
    %868 = arith.addf %862, %867 : vector<4x256xf32>
    %869 = arith.addf %843, %868 : vector<4x256xf32>
    %c8_152 = arith.constant 8 : index
    %c0_153 = arith.constant 0 : index
    %c0_154 = arith.constant 0 : index
    %870 = vector.load %arg9[%c8_152, %c0_153, %c0_154] : memref<9x4x4xf32, #tpu.memory_space<vmem>>, vector<1x4x4xf32>
    %871 = vector.shape_cast %870 : vector<1x4x4xf32> to vector<4x4xf32>
    %872 = vector.extract_strided_slice %871 {offsets = [0, 0], sizes = [4, 1], strides = [1, 1]} : vector<4x4xf32> to vector<4x1xf32>
    %873 = vector.extract_strided_slice %662 {offsets = [0, 0], sizes = [1, 256], strides = [1, 1]} : vector<4x256xf32> to vector<1x256xf32>
    %874 = vector.broadcast %872 : vector<4x1xf32> to vector<4x256xf32>
    %875 = vector.broadcast %873 : vector<1x256xf32> to vector<4x256xf32>
    %876 = arith.mulf %874, %875 : vector<4x256xf32>
    %877 = vector.extract_strided_slice %871 {offsets = [0, 1], sizes = [4, 1], strides = [1, 1]} : vector<4x4xf32> to vector<4x1xf32>
    %878 = vector.extract_strided_slice %662 {offsets = [1, 0], sizes = [1, 256], strides = [1, 1]} : vector<4x256xf32> to vector<1x256xf32>
    %879 = vector.broadcast %877 : vector<4x1xf32> to vector<4x256xf32>
    %880 = vector.broadcast %878 : vector<1x256xf32> to vector<4x256xf32>
    %881 = arith.mulf %879, %880 : vector<4x256xf32>
    %882 = arith.addf %876, %881 : vector<4x256xf32>
    %883 = vector.extract_strided_slice %871 {offsets = [0, 2], sizes = [4, 1], strides = [1, 1]} : vector<4x4xf32> to vector<4x1xf32>
    %884 = vector.extract_strided_slice %662 {offsets = [2, 0], sizes = [1, 256], strides = [1, 1]} : vector<4x256xf32> to vector<1x256xf32>
    %885 = vector.broadcast %883 : vector<4x1xf32> to vector<4x256xf32>
    %886 = vector.broadcast %884 : vector<1x256xf32> to vector<4x256xf32>
    %887 = arith.mulf %885, %886 : vector<4x256xf32>
    %888 = arith.addf %882, %887 : vector<4x256xf32>
    %889 = vector.extract_strided_slice %871 {offsets = [0, 3], sizes = [4, 1], strides = [1, 1]} : vector<4x4xf32> to vector<4x1xf32>
    %890 = vector.extract_strided_slice %662 {offsets = [3, 0], sizes = [1, 256], strides = [1, 1]} : vector<4x256xf32> to vector<1x256xf32>
    %891 = vector.broadcast %889 : vector<4x1xf32> to vector<4x256xf32>
    %892 = vector.broadcast %890 : vector<1x256xf32> to vector<4x256xf32>
    %893 = arith.mulf %891, %892 : vector<4x256xf32>
    %894 = arith.addf %888, %893 : vector<4x256xf32>
    %895 = arith.addf %869, %894 : vector<4x256xf32>
    %c0_155 = arith.constant 0 : index
    %c0_156 = arith.constant 0 : index
    %c0_157 = arith.constant 0 : index
    %896 = vector.load %arg10[%c0_155, %c0_156, %c0_157] : memref<9x4x4xf32, #tpu.memory_space<vmem>>, vector<1x4x4xf32>
    %897 = vector.shape_cast %896 : vector<1x4x4xf32> to vector<4x4xf32>
    %898 = vector.extract_strided_slice %897 {offsets = [0, 0], sizes = [4, 1], strides = [1, 1]} : vector<4x4xf32> to vector<4x1xf32>
    %899 = vector.extract_strided_slice %77 {offsets = [0, 0], sizes = [1, 256], strides = [1, 1]} : vector<4x256xf32> to vector<1x256xf32>
    %900 = vector.broadcast %898 : vector<4x1xf32> to vector<4x256xf32>
    %901 = vector.broadcast %899 : vector<1x256xf32> to vector<4x256xf32>
    %902 = arith.mulf %900, %901 : vector<4x256xf32>
    %903 = vector.extract_strided_slice %897 {offsets = [0, 1], sizes = [4, 1], strides = [1, 1]} : vector<4x4xf32> to vector<4x1xf32>
    %904 = vector.extract_strided_slice %77 {offsets = [1, 0], sizes = [1, 256], strides = [1, 1]} : vector<4x256xf32> to vector<1x256xf32>
    %905 = vector.broadcast %903 : vector<4x1xf32> to vector<4x256xf32>
    %906 = vector.broadcast %904 : vector<1x256xf32> to vector<4x256xf32>
    %907 = arith.mulf %905, %906 : vector<4x256xf32>
    %908 = arith.addf %902, %907 : vector<4x256xf32>
    %909 = vector.extract_strided_slice %897 {offsets = [0, 2], sizes = [4, 1], strides = [1, 1]} : vector<4x4xf32> to vector<4x1xf32>
    %910 = vector.extract_strided_slice %77 {offsets = [2, 0], sizes = [1, 256], strides = [1, 1]} : vector<4x256xf32> to vector<1x256xf32>
    %911 = vector.broadcast %909 : vector<4x1xf32> to vector<4x256xf32>
    %912 = vector.broadcast %910 : vector<1x256xf32> to vector<4x256xf32>
    %913 = arith.mulf %911, %912 : vector<4x256xf32>
    %914 = arith.addf %908, %913 : vector<4x256xf32>
    %915 = vector.extract_strided_slice %897 {offsets = [0, 3], sizes = [4, 1], strides = [1, 1]} : vector<4x4xf32> to vector<4x1xf32>
    %916 = vector.extract_strided_slice %77 {offsets = [3, 0], sizes = [1, 256], strides = [1, 1]} : vector<4x256xf32> to vector<1x256xf32>
    %917 = vector.broadcast %915 : vector<4x1xf32> to vector<4x256xf32>
    %918 = vector.broadcast %916 : vector<1x256xf32> to vector<4x256xf32>
    %919 = arith.mulf %917, %918 : vector<4x256xf32>
    %920 = arith.addf %914, %919 : vector<4x256xf32>
    %c1_158 = arith.constant 1 : index
    %c0_159 = arith.constant 0 : index
    %c0_160 = arith.constant 0 : index
    %921 = vector.load %arg10[%c1_158, %c0_159, %c0_160] : memref<9x4x4xf32, #tpu.memory_space<vmem>>, vector<1x4x4xf32>
    %922 = vector.shape_cast %921 : vector<1x4x4xf32> to vector<4x4xf32>
    %923 = vector.extract_strided_slice %922 {offsets = [0, 0], sizes = [4, 1], strides = [1, 1]} : vector<4x4xf32> to vector<4x1xf32>
    %924 = vector.extract_strided_slice %82 {offsets = [0, 0], sizes = [1, 256], strides = [1, 1]} : vector<4x256xf32> to vector<1x256xf32>
    %925 = vector.broadcast %923 : vector<4x1xf32> to vector<4x256xf32>
    %926 = vector.broadcast %924 : vector<1x256xf32> to vector<4x256xf32>
    %927 = arith.mulf %925, %926 : vector<4x256xf32>
    %928 = vector.extract_strided_slice %922 {offsets = [0, 1], sizes = [4, 1], strides = [1, 1]} : vector<4x4xf32> to vector<4x1xf32>
    %929 = vector.extract_strided_slice %82 {offsets = [1, 0], sizes = [1, 256], strides = [1, 1]} : vector<4x256xf32> to vector<1x256xf32>
    %930 = vector.broadcast %928 : vector<4x1xf32> to vector<4x256xf32>
    %931 = vector.broadcast %929 : vector<1x256xf32> to vector<4x256xf32>
    %932 = arith.mulf %930, %931 : vector<4x256xf32>
    %933 = arith.addf %927, %932 : vector<4x256xf32>
    %934 = vector.extract_strided_slice %922 {offsets = [0, 2], sizes = [4, 1], strides = [1, 1]} : vector<4x4xf32> to vector<4x1xf32>
    %935 = vector.extract_strided_slice %82 {offsets = [2, 0], sizes = [1, 256], strides = [1, 1]} : vector<4x256xf32> to vector<1x256xf32>
    %936 = vector.broadcast %934 : vector<4x1xf32> to vector<4x256xf32>
    %937 = vector.broadcast %935 : vector<1x256xf32> to vector<4x256xf32>
    %938 = arith.mulf %936, %937 : vector<4x256xf32>
    %939 = arith.addf %933, %938 : vector<4x256xf32>
    %940 = vector.extract_strided_slice %922 {offsets = [0, 3], sizes = [4, 1], strides = [1, 1]} : vector<4x4xf32> to vector<4x1xf32>
    %941 = vector.extract_strided_slice %82 {offsets = [3, 0], sizes = [1, 256], strides = [1, 1]} : vector<4x256xf32> to vector<1x256xf32>
    %942 = vector.broadcast %940 : vector<4x1xf32> to vector<4x256xf32>
    %943 = vector.broadcast %941 : vector<1x256xf32> to vector<4x256xf32>
    %944 = arith.mulf %942, %943 : vector<4x256xf32>
    %945 = arith.addf %939, %944 : vector<4x256xf32>
    %946 = arith.addf %920, %945 : vector<4x256xf32>
    %c2_161 = arith.constant 2 : index
    %c0_162 = arith.constant 0 : index
    %c0_163 = arith.constant 0 : index
    %947 = vector.load %arg10[%c2_161, %c0_162, %c0_163] : memref<9x4x4xf32, #tpu.memory_space<vmem>>, vector<1x4x4xf32>
    %948 = vector.shape_cast %947 : vector<1x4x4xf32> to vector<4x4xf32>
    %949 = vector.extract_strided_slice %948 {offsets = [0, 0], sizes = [4, 1], strides = [1, 1]} : vector<4x4xf32> to vector<4x1xf32>
    %950 = vector.extract_strided_slice %87 {offsets = [0, 0], sizes = [1, 256], strides = [1, 1]} : vector<4x256xf32> to vector<1x256xf32>
    %951 = vector.broadcast %949 : vector<4x1xf32> to vector<4x256xf32>
    %952 = vector.broadcast %950 : vector<1x256xf32> to vector<4x256xf32>
    %953 = arith.mulf %951, %952 : vector<4x256xf32>
    %954 = vector.extract_strided_slice %948 {offsets = [0, 1], sizes = [4, 1], strides = [1, 1]} : vector<4x4xf32> to vector<4x1xf32>
    %955 = vector.extract_strided_slice %87 {offsets = [1, 0], sizes = [1, 256], strides = [1, 1]} : vector<4x256xf32> to vector<1x256xf32>
    %956 = vector.broadcast %954 : vector<4x1xf32> to vector<4x256xf32>
    %957 = vector.broadcast %955 : vector<1x256xf32> to vector<4x256xf32>
    %958 = arith.mulf %956, %957 : vector<4x256xf32>
    %959 = arith.addf %953, %958 : vector<4x256xf32>
    %960 = vector.extract_strided_slice %948 {offsets = [0, 2], sizes = [4, 1], strides = [1, 1]} : vector<4x4xf32> to vector<4x1xf32>
    %961 = vector.extract_strided_slice %87 {offsets = [2, 0], sizes = [1, 256], strides = [1, 1]} : vector<4x256xf32> to vector<1x256xf32>
    %962 = vector.broadcast %960 : vector<4x1xf32> to vector<4x256xf32>
    %963 = vector.broadcast %961 : vector<1x256xf32> to vector<4x256xf32>
    %964 = arith.mulf %962, %963 : vector<4x256xf32>
    %965 = arith.addf %959, %964 : vector<4x256xf32>
    %966 = vector.extract_strided_slice %948 {offsets = [0, 3], sizes = [4, 1], strides = [1, 1]} : vector<4x4xf32> to vector<4x1xf32>
    %967 = vector.extract_strided_slice %87 {offsets = [3, 0], sizes = [1, 256], strides = [1, 1]} : vector<4x256xf32> to vector<1x256xf32>
    %968 = vector.broadcast %966 : vector<4x1xf32> to vector<4x256xf32>
    %969 = vector.broadcast %967 : vector<1x256xf32> to vector<4x256xf32>
    %970 = arith.mulf %968, %969 : vector<4x256xf32>
    %971 = arith.addf %965, %970 : vector<4x256xf32>
    %972 = arith.addf %946, %971 : vector<4x256xf32>
    %c3_164 = arith.constant 3 : index
    %c0_165 = arith.constant 0 : index
    %c0_166 = arith.constant 0 : index
    %973 = vector.load %arg10[%c3_164, %c0_165, %c0_166] : memref<9x4x4xf32, #tpu.memory_space<vmem>>, vector<1x4x4xf32>
    %974 = vector.shape_cast %973 : vector<1x4x4xf32> to vector<4x4xf32>
    %975 = vector.extract_strided_slice %974 {offsets = [0, 0], sizes = [4, 1], strides = [1, 1]} : vector<4x4xf32> to vector<4x1xf32>
    %976 = vector.extract_strided_slice %92 {offsets = [0, 0], sizes = [1, 256], strides = [1, 1]} : vector<4x256xf32> to vector<1x256xf32>
    %977 = vector.broadcast %975 : vector<4x1xf32> to vector<4x256xf32>
    %978 = vector.broadcast %976 : vector<1x256xf32> to vector<4x256xf32>
    %979 = arith.mulf %977, %978 : vector<4x256xf32>
    %980 = vector.extract_strided_slice %974 {offsets = [0, 1], sizes = [4, 1], strides = [1, 1]} : vector<4x4xf32> to vector<4x1xf32>
    %981 = vector.extract_strided_slice %92 {offsets = [1, 0], sizes = [1, 256], strides = [1, 1]} : vector<4x256xf32> to vector<1x256xf32>
    %982 = vector.broadcast %980 : vector<4x1xf32> to vector<4x256xf32>
    %983 = vector.broadcast %981 : vector<1x256xf32> to vector<4x256xf32>
    %984 = arith.mulf %982, %983 : vector<4x256xf32>
    %985 = arith.addf %979, %984 : vector<4x256xf32>
    %986 = vector.extract_strided_slice %974 {offsets = [0, 2], sizes = [4, 1], strides = [1, 1]} : vector<4x4xf32> to vector<4x1xf32>
    %987 = vector.extract_strided_slice %92 {offsets = [2, 0], sizes = [1, 256], strides = [1, 1]} : vector<4x256xf32> to vector<1x256xf32>
    %988 = vector.broadcast %986 : vector<4x1xf32> to vector<4x256xf32>
    %989 = vector.broadcast %987 : vector<1x256xf32> to vector<4x256xf32>
    %990 = arith.mulf %988, %989 : vector<4x256xf32>
    %991 = arith.addf %985, %990 : vector<4x256xf32>
    %992 = vector.extract_strided_slice %974 {offsets = [0, 3], sizes = [4, 1], strides = [1, 1]} : vector<4x4xf32> to vector<4x1xf32>
    %993 = vector.extract_strided_slice %92 {offsets = [3, 0], sizes = [1, 256], strides = [1, 1]} : vector<4x256xf32> to vector<1x256xf32>
    %994 = vector.broadcast %992 : vector<4x1xf32> to vector<4x256xf32>
    %995 = vector.broadcast %993 : vector<1x256xf32> to vector<4x256xf32>
    %996 = arith.mulf %994, %995 : vector<4x256xf32>
    %997 = arith.addf %991, %996 : vector<4x256xf32>
    %998 = arith.addf %972, %997 : vector<4x256xf32>
    %c4_167 = arith.constant 4 : index
    %c0_168 = arith.constant 0 : index
    %c0_169 = arith.constant 0 : index
    %999 = vector.load %arg10[%c4_167, %c0_168, %c0_169] : memref<9x4x4xf32, #tpu.memory_space<vmem>>, vector<1x4x4xf32>
    %1000 = vector.shape_cast %999 : vector<1x4x4xf32> to vector<4x4xf32>
    %1001 = vector.extract_strided_slice %1000 {offsets = [0, 0], sizes = [4, 1], strides = [1, 1]} : vector<4x4xf32> to vector<4x1xf32>
    %1002 = vector.extract_strided_slice %96 {offsets = [0, 0], sizes = [1, 256], strides = [1, 1]} : vector<4x256xf32> to vector<1x256xf32>
    %1003 = vector.broadcast %1001 : vector<4x1xf32> to vector<4x256xf32>
    %1004 = vector.broadcast %1002 : vector<1x256xf32> to vector<4x256xf32>
    %1005 = arith.mulf %1003, %1004 : vector<4x256xf32>
    %1006 = vector.extract_strided_slice %1000 {offsets = [0, 1], sizes = [4, 1], strides = [1, 1]} : vector<4x4xf32> to vector<4x1xf32>
    %1007 = vector.extract_strided_slice %96 {offsets = [1, 0], sizes = [1, 256], strides = [1, 1]} : vector<4x256xf32> to vector<1x256xf32>
    %1008 = vector.broadcast %1006 : vector<4x1xf32> to vector<4x256xf32>
    %1009 = vector.broadcast %1007 : vector<1x256xf32> to vector<4x256xf32>
    %1010 = arith.mulf %1008, %1009 : vector<4x256xf32>
    %1011 = arith.addf %1005, %1010 : vector<4x256xf32>
    %1012 = vector.extract_strided_slice %1000 {offsets = [0, 2], sizes = [4, 1], strides = [1, 1]} : vector<4x4xf32> to vector<4x1xf32>
    %1013 = vector.extract_strided_slice %96 {offsets = [2, 0], sizes = [1, 256], strides = [1, 1]} : vector<4x256xf32> to vector<1x256xf32>
    %1014 = vector.broadcast %1012 : vector<4x1xf32> to vector<4x256xf32>
    %1015 = vector.broadcast %1013 : vector<1x256xf32> to vector<4x256xf32>
    %1016 = arith.mulf %1014, %1015 : vector<4x256xf32>
    %1017 = arith.addf %1011, %1016 : vector<4x256xf32>
    %1018 = vector.extract_strided_slice %1000 {offsets = [0, 3], sizes = [4, 1], strides = [1, 1]} : vector<4x4xf32> to vector<4x1xf32>
    %1019 = vector.extract_strided_slice %96 {offsets = [3, 0], sizes = [1, 256], strides = [1, 1]} : vector<4x256xf32> to vector<1x256xf32>
    %1020 = vector.broadcast %1018 : vector<4x1xf32> to vector<4x256xf32>
    %1021 = vector.broadcast %1019 : vector<1x256xf32> to vector<4x256xf32>
    %1022 = arith.mulf %1020, %1021 : vector<4x256xf32>
    %1023 = arith.addf %1017, %1022 : vector<4x256xf32>
    %1024 = arith.addf %998, %1023 : vector<4x256xf32>
    %c5_170 = arith.constant 5 : index
    %c0_171 = arith.constant 0 : index
    %c0_172 = arith.constant 0 : index
    %1025 = vector.load %arg10[%c5_170, %c0_171, %c0_172] : memref<9x4x4xf32, #tpu.memory_space<vmem>>, vector<1x4x4xf32>
    %1026 = vector.shape_cast %1025 : vector<1x4x4xf32> to vector<4x4xf32>
    %1027 = vector.extract_strided_slice %1026 {offsets = [0, 0], sizes = [4, 1], strides = [1, 1]} : vector<4x4xf32> to vector<4x1xf32>
    %1028 = vector.extract_strided_slice %101 {offsets = [0, 0], sizes = [1, 256], strides = [1, 1]} : vector<4x256xf32> to vector<1x256xf32>
    %1029 = vector.broadcast %1027 : vector<4x1xf32> to vector<4x256xf32>
    %1030 = vector.broadcast %1028 : vector<1x256xf32> to vector<4x256xf32>
    %1031 = arith.mulf %1029, %1030 : vector<4x256xf32>
    %1032 = vector.extract_strided_slice %1026 {offsets = [0, 1], sizes = [4, 1], strides = [1, 1]} : vector<4x4xf32> to vector<4x1xf32>
    %1033 = vector.extract_strided_slice %101 {offsets = [1, 0], sizes = [1, 256], strides = [1, 1]} : vector<4x256xf32> to vector<1x256xf32>
    %1034 = vector.broadcast %1032 : vector<4x1xf32> to vector<4x256xf32>
    %1035 = vector.broadcast %1033 : vector<1x256xf32> to vector<4x256xf32>
    %1036 = arith.mulf %1034, %1035 : vector<4x256xf32>
    %1037 = arith.addf %1031, %1036 : vector<4x256xf32>
    %1038 = vector.extract_strided_slice %1026 {offsets = [0, 2], sizes = [4, 1], strides = [1, 1]} : vector<4x4xf32> to vector<4x1xf32>
    %1039 = vector.extract_strided_slice %101 {offsets = [2, 0], sizes = [1, 256], strides = [1, 1]} : vector<4x256xf32> to vector<1x256xf32>
    %1040 = vector.broadcast %1038 : vector<4x1xf32> to vector<4x256xf32>
    %1041 = vector.broadcast %1039 : vector<1x256xf32> to vector<4x256xf32>
    %1042 = arith.mulf %1040, %1041 : vector<4x256xf32>
    %1043 = arith.addf %1037, %1042 : vector<4x256xf32>
    %1044 = vector.extract_strided_slice %1026 {offsets = [0, 3], sizes = [4, 1], strides = [1, 1]} : vector<4x4xf32> to vector<4x1xf32>
    %1045 = vector.extract_strided_slice %101 {offsets = [3, 0], sizes = [1, 256], strides = [1, 1]} : vector<4x256xf32> to vector<1x256xf32>
    %1046 = vector.broadcast %1044 : vector<4x1xf32> to vector<4x256xf32>
    %1047 = vector.broadcast %1045 : vector<1x256xf32> to vector<4x256xf32>
    %1048 = arith.mulf %1046, %1047 : vector<4x256xf32>
    %1049 = arith.addf %1043, %1048 : vector<4x256xf32>
    %1050 = arith.addf %1024, %1049 : vector<4x256xf32>
    %c6_173 = arith.constant 6 : index
    %c0_174 = arith.constant 0 : index
    %c0_175 = arith.constant 0 : index
    %1051 = vector.load %arg10[%c6_173, %c0_174, %c0_175] : memref<9x4x4xf32, #tpu.memory_space<vmem>>, vector<1x4x4xf32>
    %1052 = vector.shape_cast %1051 : vector<1x4x4xf32> to vector<4x4xf32>
    %1053 = vector.extract_strided_slice %1052 {offsets = [0, 0], sizes = [4, 1], strides = [1, 1]} : vector<4x4xf32> to vector<4x1xf32>
    %1054 = vector.extract_strided_slice %106 {offsets = [0, 0], sizes = [1, 256], strides = [1, 1]} : vector<4x256xf32> to vector<1x256xf32>
    %1055 = vector.broadcast %1053 : vector<4x1xf32> to vector<4x256xf32>
    %1056 = vector.broadcast %1054 : vector<1x256xf32> to vector<4x256xf32>
    %1057 = arith.mulf %1055, %1056 : vector<4x256xf32>
    %1058 = vector.extract_strided_slice %1052 {offsets = [0, 1], sizes = [4, 1], strides = [1, 1]} : vector<4x4xf32> to vector<4x1xf32>
    %1059 = vector.extract_strided_slice %106 {offsets = [1, 0], sizes = [1, 256], strides = [1, 1]} : vector<4x256xf32> to vector<1x256xf32>
    %1060 = vector.broadcast %1058 : vector<4x1xf32> to vector<4x256xf32>
    %1061 = vector.broadcast %1059 : vector<1x256xf32> to vector<4x256xf32>
    %1062 = arith.mulf %1060, %1061 : vector<4x256xf32>
    %1063 = arith.addf %1057, %1062 : vector<4x256xf32>
    %1064 = vector.extract_strided_slice %1052 {offsets = [0, 2], sizes = [4, 1], strides = [1, 1]} : vector<4x4xf32> to vector<4x1xf32>
    %1065 = vector.extract_strided_slice %106 {offsets = [2, 0], sizes = [1, 256], strides = [1, 1]} : vector<4x256xf32> to vector<1x256xf32>
    %1066 = vector.broadcast %1064 : vector<4x1xf32> to vector<4x256xf32>
    %1067 = vector.broadcast %1065 : vector<1x256xf32> to vector<4x256xf32>
    %1068 = arith.mulf %1066, %1067 : vector<4x256xf32>
    %1069 = arith.addf %1063, %1068 : vector<4x256xf32>
    %1070 = vector.extract_strided_slice %1052 {offsets = [0, 3], sizes = [4, 1], strides = [1, 1]} : vector<4x4xf32> to vector<4x1xf32>
    %1071 = vector.extract_strided_slice %106 {offsets = [3, 0], sizes = [1, 256], strides = [1, 1]} : vector<4x256xf32> to vector<1x256xf32>
    %1072 = vector.broadcast %1070 : vector<4x1xf32> to vector<4x256xf32>
    %1073 = vector.broadcast %1071 : vector<1x256xf32> to vector<4x256xf32>
    %1074 = arith.mulf %1072, %1073 : vector<4x256xf32>
    %1075 = arith.addf %1069, %1074 : vector<4x256xf32>
    %1076 = arith.addf %1050, %1075 : vector<4x256xf32>
    %c7_176 = arith.constant 7 : index
    %c0_177 = arith.constant 0 : index
    %c0_178 = arith.constant 0 : index
    %1077 = vector.load %arg10[%c7_176, %c0_177, %c0_178] : memref<9x4x4xf32, #tpu.memory_space<vmem>>, vector<1x4x4xf32>
    %1078 = vector.shape_cast %1077 : vector<1x4x4xf32> to vector<4x4xf32>
    %1079 = vector.extract_strided_slice %1078 {offsets = [0, 0], sizes = [4, 1], strides = [1, 1]} : vector<4x4xf32> to vector<4x1xf32>
    %1080 = vector.extract_strided_slice %111 {offsets = [0, 0], sizes = [1, 256], strides = [1, 1]} : vector<4x256xf32> to vector<1x256xf32>
    %1081 = vector.broadcast %1079 : vector<4x1xf32> to vector<4x256xf32>
    %1082 = vector.broadcast %1080 : vector<1x256xf32> to vector<4x256xf32>
    %1083 = arith.mulf %1081, %1082 : vector<4x256xf32>
    %1084 = vector.extract_strided_slice %1078 {offsets = [0, 1], sizes = [4, 1], strides = [1, 1]} : vector<4x4xf32> to vector<4x1xf32>
    %1085 = vector.extract_strided_slice %111 {offsets = [1, 0], sizes = [1, 256], strides = [1, 1]} : vector<4x256xf32> to vector<1x256xf32>
    %1086 = vector.broadcast %1084 : vector<4x1xf32> to vector<4x256xf32>
    %1087 = vector.broadcast %1085 : vector<1x256xf32> to vector<4x256xf32>
    %1088 = arith.mulf %1086, %1087 : vector<4x256xf32>
    %1089 = arith.addf %1083, %1088 : vector<4x256xf32>
    %1090 = vector.extract_strided_slice %1078 {offsets = [0, 2], sizes = [4, 1], strides = [1, 1]} : vector<4x4xf32> to vector<4x1xf32>
    %1091 = vector.extract_strided_slice %111 {offsets = [2, 0], sizes = [1, 256], strides = [1, 1]} : vector<4x256xf32> to vector<1x256xf32>
    %1092 = vector.broadcast %1090 : vector<4x1xf32> to vector<4x256xf32>
    %1093 = vector.broadcast %1091 : vector<1x256xf32> to vector<4x256xf32>
    %1094 = arith.mulf %1092, %1093 : vector<4x256xf32>
    %1095 = arith.addf %1089, %1094 : vector<4x256xf32>
    %1096 = vector.extract_strided_slice %1078 {offsets = [0, 3], sizes = [4, 1], strides = [1, 1]} : vector<4x4xf32> to vector<4x1xf32>
    %1097 = vector.extract_strided_slice %111 {offsets = [3, 0], sizes = [1, 256], strides = [1, 1]} : vector<4x256xf32> to vector<1x256xf32>
    %1098 = vector.broadcast %1096 : vector<4x1xf32> to vector<4x256xf32>
    %1099 = vector.broadcast %1097 : vector<1x256xf32> to vector<4x256xf32>
    %1100 = arith.mulf %1098, %1099 : vector<4x256xf32>
    %1101 = arith.addf %1095, %1100 : vector<4x256xf32>
    %1102 = arith.addf %1076, %1101 : vector<4x256xf32>
    %c8_179 = arith.constant 8 : index
    %c0_180 = arith.constant 0 : index
    %c0_181 = arith.constant 0 : index
    %1103 = vector.load %arg10[%c8_179, %c0_180, %c0_181] : memref<9x4x4xf32, #tpu.memory_space<vmem>>, vector<1x4x4xf32>
    %1104 = vector.shape_cast %1103 : vector<1x4x4xf32> to vector<4x4xf32>
    %1105 = vector.extract_strided_slice %1104 {offsets = [0, 0], sizes = [4, 1], strides = [1, 1]} : vector<4x4xf32> to vector<4x1xf32>
    %1106 = vector.extract_strided_slice %116 {offsets = [0, 0], sizes = [1, 256], strides = [1, 1]} : vector<4x256xf32> to vector<1x256xf32>
    %1107 = vector.broadcast %1105 : vector<4x1xf32> to vector<4x256xf32>
    %1108 = vector.broadcast %1106 : vector<1x256xf32> to vector<4x256xf32>
    %1109 = arith.mulf %1107, %1108 : vector<4x256xf32>
    %1110 = vector.extract_strided_slice %1104 {offsets = [0, 1], sizes = [4, 1], strides = [1, 1]} : vector<4x4xf32> to vector<4x1xf32>
    %1111 = vector.extract_strided_slice %116 {offsets = [1, 0], sizes = [1, 256], strides = [1, 1]} : vector<4x256xf32> to vector<1x256xf32>
    %1112 = vector.broadcast %1110 : vector<4x1xf32> to vector<4x256xf32>
    %1113 = vector.broadcast %1111 : vector<1x256xf32> to vector<4x256xf32>
    %1114 = arith.mulf %1112, %1113 : vector<4x256xf32>
    %1115 = arith.addf %1109, %1114 : vector<4x256xf32>
    %1116 = vector.extract_strided_slice %1104 {offsets = [0, 2], sizes = [4, 1], strides = [1, 1]} : vector<4x4xf32> to vector<4x1xf32>
    %1117 = vector.extract_strided_slice %116 {offsets = [2, 0], sizes = [1, 256], strides = [1, 1]} : vector<4x256xf32> to vector<1x256xf32>
    %1118 = vector.broadcast %1116 : vector<4x1xf32> to vector<4x256xf32>
    %1119 = vector.broadcast %1117 : vector<1x256xf32> to vector<4x256xf32>
    %1120 = arith.mulf %1118, %1119 : vector<4x256xf32>
    %1121 = arith.addf %1115, %1120 : vector<4x256xf32>
    %1122 = vector.extract_strided_slice %1104 {offsets = [0, 3], sizes = [4, 1], strides = [1, 1]} : vector<4x4xf32> to vector<4x1xf32>
    %1123 = vector.extract_strided_slice %116 {offsets = [3, 0], sizes = [1, 256], strides = [1, 1]} : vector<4x256xf32> to vector<1x256xf32>
    %1124 = vector.broadcast %1122 : vector<4x1xf32> to vector<4x256xf32>
    %1125 = vector.broadcast %1123 : vector<1x256xf32> to vector<4x256xf32>
    %1126 = arith.mulf %1124, %1125 : vector<4x256xf32>
    %1127 = arith.addf %1121, %1126 : vector<4x256xf32>
    %1128 = arith.addf %1102, %1127 : vector<4x256xf32>
    %1129 = vector.broadcast %71 : vector<1x1xf32> to vector<4x256xf32>
    %1130 = arith.mulf %895, %1129 : vector<4x256xf32>
    %1131 = vector.broadcast %72 : vector<1x1xf32> to vector<4x256xf32>
    %1132 = arith.mulf %1128, %1131 : vector<4x256xf32>
    %1133 = arith.addf %1130, %1132 : vector<4x256xf32>
    %cst_182 = arith.constant 2.000000e-01 : f32
    %1134 = vector.broadcast %cst_182 : f32 to vector<4x256xf32>
    %1135 = arith.mulf %1134, %1133 : vector<4x256xf32>
    %1136 = arith.maximumf %1133, %1135 : vector<4x256xf32>
    %c0_183 = arith.constant 0 : index
    %c0_184 = arith.constant 0 : index
    %1137 = vector.load %arg4[%c0_183, %c0_184] : memref<4x4xf32, #tpu.memory_space<vmem>>, vector<4x4xf32>
    %1138 = vector.extract_strided_slice %1137 {offsets = [0, 0], sizes = [4, 1], strides = [1, 1]} : vector<4x4xf32> to vector<4x1xf32>
    %1139 = vector.extract_strided_slice %1136 {offsets = [0, 0], sizes = [1, 256], strides = [1, 1]} : vector<4x256xf32> to vector<1x256xf32>
    %1140 = vector.broadcast %1138 : vector<4x1xf32> to vector<4x256xf32>
    %1141 = vector.broadcast %1139 : vector<1x256xf32> to vector<4x256xf32>
    %1142 = arith.mulf %1140, %1141 : vector<4x256xf32>
    %1143 = vector.extract_strided_slice %1137 {offsets = [0, 1], sizes = [4, 1], strides = [1, 1]} : vector<4x4xf32> to vector<4x1xf32>
    %1144 = vector.extract_strided_slice %1136 {offsets = [1, 0], sizes = [1, 256], strides = [1, 1]} : vector<4x256xf32> to vector<1x256xf32>
    %1145 = vector.broadcast %1143 : vector<4x1xf32> to vector<4x256xf32>
    %1146 = vector.broadcast %1144 : vector<1x256xf32> to vector<4x256xf32>
    %1147 = arith.mulf %1145, %1146 : vector<4x256xf32>
    %1148 = arith.addf %1142, %1147 : vector<4x256xf32>
    %1149 = vector.extract_strided_slice %1137 {offsets = [0, 2], sizes = [4, 1], strides = [1, 1]} : vector<4x4xf32> to vector<4x1xf32>
    %1150 = vector.extract_strided_slice %1136 {offsets = [2, 0], sizes = [1, 256], strides = [1, 1]} : vector<4x256xf32> to vector<1x256xf32>
    %1151 = vector.broadcast %1149 : vector<4x1xf32> to vector<4x256xf32>
    %1152 = vector.broadcast %1150 : vector<1x256xf32> to vector<4x256xf32>
    %1153 = arith.mulf %1151, %1152 : vector<4x256xf32>
    %1154 = arith.addf %1148, %1153 : vector<4x256xf32>
    %1155 = vector.extract_strided_slice %1137 {offsets = [0, 3], sizes = [4, 1], strides = [1, 1]} : vector<4x4xf32> to vector<4x1xf32>
    %1156 = vector.extract_strided_slice %1136 {offsets = [3, 0], sizes = [1, 256], strides = [1, 1]} : vector<4x256xf32> to vector<1x256xf32>
    %1157 = vector.broadcast %1155 : vector<4x1xf32> to vector<4x256xf32>
    %1158 = vector.broadcast %1156 : vector<1x256xf32> to vector<4x256xf32>
    %1159 = arith.mulf %1157, %1158 : vector<4x256xf32>
    %1160 = arith.addf %1154, %1159 : vector<4x256xf32>
    %1161 = arith.addf %1160, %1 : vector<4x256xf32>
    %c0_185 = arith.constant 0 : index
    %c0_186 = arith.constant 0 : index
    %c0_187 = arith.constant 0 : index
    %1162 = vector.load %arg13[%c0_185, %c0_186, %c0_187] : memref<1x4x256xf32, #tpu.memory_space<vmem>>, vector<1x4x256xf32>
    %1163 = vector.shape_cast %1162 : vector<1x4x256xf32> to vector<4x256xf32>
    %1164 = vector.shape_cast %1161 : vector<4x256xf32> to vector<1x4x256xf32>
    tpu.vector_store %arg13[%c0_185, %c0_186, %c0_187], %1164 {strides = array<i32>} : memref<1x4x256xf32, #tpu.memory_space<vmem>>, vector<1x4x256xf32>,
    return
  }
  func.func @transform_0(%arg0: i32) -> (i32, i32, i32) {
    %c0_i32 = arith.constant 0 : i32
    %c0_i32_0 = arith.constant 0 : i32
    %c0_i32_1 = arith.constant 0 : i32
    return %arg0, %c0_i32, %c0_i32_0 : i32, i32, i32
  }
  func.func @transform_1(%arg0: i32) -> (i32, i32, i32) {
    %c0_i32 = arith.constant 0 : i32
    %c0_i32_0 = arith.constant 0 : i32
    %c0_i32_1 = arith.constant 0 : i32
    %c0_i32_2 = arith.constant 0 : i32
    return %c0_i32, %c0_i32_0, %c0_i32_1 : i32, i32, i32
  }
  func.func @transform_2(%arg0: i32) -> (i32, i32) {
    %c0_i32 = arith.constant 0 : i32
    %c0_i32_0 = arith.constant 0 : i32
    %c0_i32_1 = arith.constant 0 : i32
    return %c0_i32, %c0_i32_0 : i32, i32
  }
  func.func @transform_3(%arg0: i32) -> (i32, i32) {
    %c0_i32 = arith.constant 0 : i32
    %c0_i32_0 = arith.constant 0 : i32
    %c0_i32_1 = arith.constant 0 : i32
    return %c0_i32, %c0_i32_0 : i32, i32
  }
  func.func @transform_4(%arg0: i32) -> (i32, i32, i32) {
    %c0_i32 = arith.constant 0 : i32
    %c0_i32_0 = arith.constant 0 : i32
    %c0_i32_1 = arith.constant 0 : i32
    %c0_i32_2 = arith.constant 0 : i32
    return %c0_i32, %c0_i32_0, %c0_i32_1 : i32, i32, i32
  }
  func.func @transform_5(%arg0: i32) -> (i32, i32) {
    %c0_i32 = arith.constant 0 : i32
    %c0_i32_0 = arith.constant 0 : i32
    %c0_i32_1 = arith.constant 0 : i32
    return %c0_i32, %c0_i32_0 : i32, i32
  }
  func.func @transform_6(%arg0: i32) -> (i32, i32) {
    %c0_i32 = arith.constant 0 : i32
    %c0_i32_0 = arith.constant 0 : i32
    %c0_i32_1 = arith.constant 0 : i32
    return %c0_i32, %c0_i32_0 : i32, i32
  }
  func.func @transform_7(%arg0: i32) -> (i32, i32, i32) {
    %c0_i32 = arith.constant 0 : i32
    %c0_i32_0 = arith.constant 0 : i32
    %c0_i32_1 = arith.constant 0 : i32
    %c0_i32_2 = arith.constant 0 : i32
    return %c0_i32, %c0_i32_0, %c0_i32_1 : i32, i32, i32
  }
  func.func @transform_8(%arg0: i32) -> (i32, i32, i32) {
    %c0_i32 = arith.constant 0 : i32
    %c0_i32_0 = arith.constant 0 : i32
    %c0_i32_1 = arith.constant 0 : i32
    %c0_i32_2 = arith.constant 0 : i32
    return %c0_i32, %c0_i32_0, %c0_i32_1 : i32, i32, i32
  }
  func.func @transform_9(%arg0: i32) -> (i32, i32, i32) {
    %c0_i32 = arith.constant 0 : i32
    %c0_i32_0 = arith.constant 0 : i32
    %c0_i32_1 = arith.constant 0 : i32
    %c0_i32_2 = arith.constant 0 : i32
    return %c0_i32, %c0_i32_0, %c0_i32_1 : i32, i32, i32
  }
  func.func @transform_10(%arg0: i32) -> (i32, i32) {
    %c0_i32 = arith.constant 0 : i32
    %c0_i32_0 = arith.constant 0 : i32
    %c0_i32_1 = arith.constant 0 : i32
    return %c0_i32, %c0_i32_0 : i32, i32
  }
  func.func @transform_11(%arg0: i32) -> (i32, i32) {
    %c0_i32 = arith.constant 0 : i32
    %c0_i32_0 = arith.constant 0 : i32
    %c0_i32_1 = arith.constant 0 : i32
    return %c0_i32, %c0_i32_0 : i32, i32
  }
  func.func @transform_12(%arg0: i32) -> (i32, i32, i32) {
    %c0_i32 = arith.constant 0 : i32
    %c0_i32_0 = arith.constant 0 : i32
    %c0_i32_1 = arith.constant 0 : i32
    return %arg0, %c0_i32, %c0_i32_0 : i32, i32, i32
  }
}

</mosaic_0001>

<bundles_post_ra>
// kernel: tpu_custom_call.1
= control target key start
LH: loop header
LB: loop body
LE: loop exit
PB: predicated region body
PF: predicated region fallthrough
CT: control target
= control target key end

     0   :  { %s5449_s0 = inlined_call_operand.vmem [shape: f32[2,4,256], index: 0, kind: input, shape index: {}]   ;;  %s5450_s1 = inlined_call_operand.vmem [shape: f32[9,1,256], index: 1, kind: input, shape index: {}]   ;;  %s5451_s2 = inlined_call_operand.vmem [shape: f32[4,4], index: 2, kind: input, shape index: {}]   ;;  %s5452_s3 = inlined_call_operand.vmem [shape: f32[4,4], index: 3, kind: input, shape index: {}]   ;;  %s5453_s4 = inlined_call_operand.vmem [shape: f32[9,4,4], index: 4, kind: input, shape index: {}]   ;;  %s5454_s5 = inlined_call_operand.vmem [shape: f32[4,4], index: 5, kind: input, shape index: {}]   ;;  %s5455_s6 = inlined_call_operand.vmem [shape: f32[4,1], index: 6, kind: input, shape index: {}]   ;;  %s5456_s7 = inlined_call_operand.vmem [shape: f32[9,4,4], index: 7, kind: input, shape index: {}]   ;;  %s5457_s8 = inlined_call_operand.vmem [shape: f32[9,4,4], index: 8, kind: input, shape index: {}]   ;;  %s5458_s9 = inlined_call_operand.vmem [shape: f32[9,4,4], index: 9, kind: input, shape index: {}]   ;;  %s5459_s10 = inlined_call_operand.vmem [shape: f32[1,4], index: 10, kind: input, shape index: {}]   ;;  %s5460_s11 = inlined_call_operand.vmem [shape: f32[2,1], index: 11, kind: input, shape index: {}]   ;;  %s5461_s12 = inlined_call_operand.hbm [shape: f32[2,4,256], index: 12, kind: output, shape index: {}]  }
   0x1   :  { %5688 = sst [smem:[#allocation157_spill]] %s5449_s0 }
   0x2   :  { %5689 = sst [smem:[#allocation158_spill]] %s5451_s2 }
   0x3   :  { %5690 = sst [smem:[#allocation159_spill]] %s5453_s4 }
   0x4   :  { %17 = vsyncpa [#allocation3], 0 }
   0x5   :  { %19 = vsyncpa [#allocation3 + $0x1], 0  ;;  %s3329_s21 = smov 0   ;;  %s3331_s22 = smov 0  }
   0x6   :  { %s3333_s23 = smov 0   ;;  %s3335_s24 = smov 0  }
   0x7 LB: > { %s3350_s25 = sadd.s32 4294967295, %s3247_s24   ;;  %s2941_s26 = sadd.s32 4294967294, %s3247_s24   ;;  %s3247_s24 = sphi %s3335_s24, %s6144_s24   ;;  %s3243_s23 = sphi %s3333_s23, %s6143_s23   ;;  %s3239_s22 = sphi %s3331_s22, %s6142_s22   ;;  %s3235_s21 = sphi %s3329_s21, %s6141_s21  }
   0x8   : > { %s3354_s27 = sadd.s32 1, %s3247_s24   ;;  %s289_s28 = sadd.s32 1, %s3243_s23 }
   0x9   : > { %s286_s29 = ssub.s32 %s3247_s24, %s3354_s27  ;;  %p299_p0 = scmp.ne.s32.totalorder %s3243_s23, %s3239_s22 }
   0xa   : > { %p287_p1 = scmp.eq.s32.totalorder %s286_s29, 0  ;;  %p300_p2 = scmp.eq.s32.totalorder %s3350_s25, 1 }
   0xb   : > { %p305_p3 = scmp.ne.s32.totalorder %s3239_s22, %s3235_s21  ;;  %p306_p4 = scmp.eq.s32.totalorder %s2941_s26, 1 }
   0xc   : > { %s3365_s30 = scalar_select %p287_p1, %s3243_s23, %s289_s28  }
   0xd   : > { %p3367_p5 = por %p300_p2, %p299_p0  ;;  %p3371_p6 = por %p306_p4, %p305_p3 }
   0xe   : > { %p2944_p7 = scmp.ge.s32.totalorder %s3247_s24, 1  ;;  %p365_p8 = scmp.lt.s32.totalorder %s3247_s24, 3 }
  0x10   : > { %p366_p9 = pnand %p2944_p7, %p365_p8 }
  0x12   : > { %369 = sbr.rel (%p366_p9) target bundleno = 1245 (0x4dd), region = 68 }
  0x19   : > { %s5693_s2 = sld [smem:[#allocation158_spill]]  ;;  %v5478_v1 = vmov 0   ;;  %v5484_v2 = vmov 2   ;;  %v5480_v3 = vmov 1   ;;  %v5482_v4 = vmov 3   ;;  %p407_p10 = scmp.lt.s32.totalorder %s3350_s25, 1 }
  0x1a   : > { %3058 = vset.pattern.permute.xlu0 %v5478_v1  ;;  %3060 = vset.pattern.permute.xlu1 %v5484_v2  ;;  %v5486_v5 = vlaneseq  ;;  %s5694_s0 = sld [smem:[#allocation157_spill]]  ;;  %vm522_vm0 = vcmask 1043456   ;;  %s5476_s28 = smov 17   ;;  %vm576_vm1 = vcmask 1024  }
  0x1b   : > { %s408_s17 = scalar_select %p407_p10, %s3350_s25, 1 }
  0x1c   : > { %v421_v6 = vshrl.u32 %v5486_v5, 7  ;;  %s5462_s29 = smov 16   ;;  %s5464_s15 = smov 15  }
  0x1d   : > { %s2995_s18 = sshll.u32 %s408_s17, 3  ;;  %s5468_s16 = smov 1  }
  0x1e   : > { %v3393_v7 = vsub.s32 0, %v421_v6  ;;  %v426_v8 = vsub.s32 4, %v421_v6  ;;  %v3395_v9 = vsub.s32 1, %v421_v6  ;;  %v450_v10 = vsub.s32 5, %v421_v6  ;;  %s5474_s17 = smov 127   ;;  %s5472_s19 = smov 112  }
  0x1f   : > { %v413_v0 = vld [vmem:[%s5693_s2] sm:$0xf]  ;;  %v3397_v11 = vsub.s32 2, %v421_v6  ;;  %v476_v13 = vsub.s32 6, %v421_v6  ;;  %v3400_v14 = vsub.s32 3, %v421_v6  ;;  %v502_v15 = vsub.s32 7, %v421_v6 }
  0x20   : > { %416 = vperm.xlu0 %3058, %v413_v0   ;;  %467 = vperm.xlu1 %3060, %v413_v0   ;;  %s3391_s26 = scalar_lea.vmem %s5694_s0, %s2995_s18  ;;  %5695 = vst [vmem:[#allocation5_spill] sm:$0xff] %v3393_v7  ;;  %5696 = vst [vmem:[#allocation6_spill] sm:$0xff] %v3395_v9  ;;  %s5466_s18 = smov 113  }
  0x21   : > { %5697 = vst [vmem:[#allocation7_spill] sm:$0xff] %v3397_v11  ;;  %v412_v12 = vld [vmem:[%s3391_s26] sm:$0xff]  ;;  %5698 = vst [vmem:[#allocation8_spill] sm:$0xff] %v3400_v14  ;;  %s5470_s20 = smov 111   ;;  %s5699_s4 = sld [smem:[#allocation159_spill]] }
  0x22   : > { %v423_v16 = vrot.slane %v412_v12, %v3393_v7  ;;  %v427_v17 = vrot.slane %v412_v12, %v426_v8  ;;  %v447_v18 = vrot.slane %v412_v12, %v3395_v9  ;;  %v451_v19 = vrot.slane %v412_v12, %v450_v10  ;;  %v530_v8 = vld [vmem:[%s5459_s10] sm:$0x1]  ;;  %s6026_s0 = smov 127  }
  0x23   : > { %v473_v20 = vrot.slane %v412_v12, %v3397_v11  ;;  %v477_v21 = vrot.slane %v412_v12, %v476_v13  ;;  %v499_v24 = vrot.slane %v412_v12, %v3400_v14  ;;  %v503_v25 = vrot.slane %v412_v12, %v502_v15 }
  0x24   : > { %3059 = vset.pattern.permute.xlu0 %v5480_v3  ;;  %3061 = vset.pattern.permute.xlu1 %v5482_v4  ;;  %v433_v26 = vrot.slane %v423_v16, %v3393_v7  ;;  %v437_v27 = vrot.slane %v427_v17, %v3393_v7  ;;  %v457_v28 = vrot.slane %v447_v18, %v3395_v9 }
  0x25   : > { %441 = vperm.xlu0 %3059, %v413_v0   ;;  %493 = vperm.xlu1 %3061, %v413_v0   ;;  %v461_v29 = vrot.slane %v451_v19, %v3395_v9  ;;  %v483_v30 = vrot.slane %v473_v20, %v3397_v11  ;;  %v487_v31 = vrot.slane %v477_v21, %v3397_v11 }
  0x26   : > { %v509_v32 = vrot.slane %v499_v24, %v3400_v14  ;;  %v513_v33 = vrot.slane %v503_v25, %v3400_v14  ;;  %v1464_v25 = vld [vmem:[%s5455_s6] sm:$0xf] }
  0x27   : > { %v3441_v57 = vld [vmem:[%s5699_s4] sm:$0xf]  ;;  %v3449_v58 = vld [vmem:[%s5699_s4 + $0x4] sm:$0xf]  ;;  %v3460_v59 = vld [vmem:[%s5699_s4 + $0x8] sm:$0xf] }
  0x28   : > { %v3471_v60 = vld [vmem:[%s5699_s4 + $0xc] sm:$0xf]  ;;  %v3480_v61 = vld [vmem:[%s5699_s4 + $0x10] sm:$0xf]  ;;  %v3491_v62 = vld [vmem:[%s5699_s4 + $0x14] sm:$0xf] }
  0x29   : > { %3062 = vset.pattern.permute.xlu1 %v5478_v1  ;;  %v3502_v63 = vld [vmem:[%s5699_s4 + $0x18] sm:$0xf]  ;;  %v3511_v0 = vld [vmem:[%s5699_s4 + $0x1c] sm:$0xf]  ;;  %v3531_v20 = vld [vmem:[%s5699_s4 + $0x20] sm:$0xf] }
  0x9f   : > { %v417_v22 = vpop.permute.xlu0 %416  ;;  %v468_v23 = vpop.permute.xlu1 %467 }
  0xa0   : > { %v438_v36 = vmul.f32 %v433_v26, %v417_v22  ;;  %v439_v37 = vmul.f32 %v437_v27, %v417_v22  ;;  %v488_v40 = vmul.f32 %v483_v30, %v468_v23  ;;  %v489_v41 = vmul.f32 %v487_v31, %v468_v23  ;;  %v3552_v23 = vld [vmem:[%s5454_s5] sm:$0xf]  ;;  %v3595_v31 = vld [vmem:[%s5456_s7 + $0x4] sm:$0xf] }
  0xa1   : > { %v3577_v27 = vld [vmem:[%s5456_s7] sm:$0xf] }
  0xa4   : > { %v442_v34 = vpop.permute.xlu0 %441  ;;  %v494_v35 = vpop.permute.xlu1 %493 }
  0xa5   : > { %v462_v38 = vmul.f32 %v457_v28, %v442_v34  ;;  %v463_v39 = vmul.f32 %v461_v29, %v442_v34  ;;  %v514_v44 = vmul.f32 %v509_v32, %v494_v35  ;;  %v515_v45 = vmul.f32 %v513_v33, %v494_v35  ;;  %v3606_v33 = vld [vmem:[%s5456_s7 + $0x8] sm:$0xf] }
  0xa7   : > { %v464_v42 = vadd.f32 %v462_v38, %v438_v36  ;;  %v465_v43 = vadd.f32 %v463_v39, %v439_v37  ;;  %v3623_v37 = vld [vmem:[%s5456_s7 + $0xc] sm:$0xf] }
  0xa9   : > { %v490_v46 = vadd.f32 %v488_v40, %v464_v42  ;;  %v491_v47 = vadd.f32 %v489_v41, %v465_v43  ;;  %v3638_v40 = vld [vmem:[%s5456_s7 + $0x10] sm:$0xf]  ;;  %v3651_v43 = vld [vmem:[%s5456_s7 + $0x14] sm:$0xf] }
  0xab   : > { %v516_v48 = vadd.f32 %v514_v44, %v490_v46  ;;  %v517_v49 = vadd.f32 %v515_v45, %v491_v47 }
  0xad   : > { %v518_v50 = vmul.f32 0.2, %v516_v48  ;;  %v519_v51 = vmul.f32 0.2, %v517_v49 }
  0xaf   : > { %v3414_v52 = vmax.f32 %v516_v48, %v518_v50  ;;  %v3416_v53 = vmax.f32 %v517_v49, %v519_v51  ;;  %v2971_v48 = vld [vmem:[%s5456_s7 + $0x18] sm:$0xf] }
  0xb1   : > { %v523_v54 = vsel %vm522_vm0, %v3414_v52, 0.0  ;;  %v524_v55 = vsel %vm522_vm0, %v3416_v53, 0.0 }
  0xb2   : > { %v525_v56 = vadd.f32 %v524_v55, %v523_v54 }
  0xb4   : > { %526 = vadd.xlane.f32.xlu1 %v525_v56 }
  0xc5   : > { %604 = vrot.lane.b32.xlu1 %v3414_v52, %s5476_s28 }
  0xc9   : > { %627 = vrot.lane.b32.xlu1 %v3414_v52, %s5462_s29 }
  0xcd   : > { %629 = vrot.lane.b32.xlu1 %v3416_v53, %s5462_s29  ;;  %s5702_s29 = smov 113  }
  0xd1   : > { %649 = vrot.lane.b32.xlu1 %v3414_v52, %s5464_s15  ;;  %s3262_s15 = smov 125  }
  0xd5   : > { %671 = vrot.lane.b32.xlu1 %v3414_v52, %s5468_s16  ;;  %s5700_s16 = smov 15  }
  0xd9   : > { %708 = vrot.lane.b32.xlu1 %v3414_v52, %s5474_s17 }
  0xdd   : > { %730 = vrot.lane.b32.xlu1 %v3414_v52, %s5466_s18  ;;  %s5701_s18 = smov 1  }
  0xe1   : > { %752 = vrot.lane.b32.xlu1 %v3414_v52, %s5472_s19  ;;  %s3261_s19 = smov 126  }
  0xe5   : > { %774 = vrot.lane.b32.xlu1 %v3414_v52, %s5470_s20  ;;  %s6025_s20 = smov 16  }
  0xe9   : > { %799 = vperm.xlu1 %3062, %v3441_v57  }
  0xed   : > { %3063 = vset.pattern.permute.xlu1 %v5484_v2 }
  0xee   : > { %829 = vperm.xlu1 %3063, %v3441_v57  }
  0xf2   : > { %3064 = vset.pattern.permute.xlu1 %v5478_v1 }
  0xf3   : > { %864 = vperm.xlu1 %3064, %v3449_v58  }
  0xf7   : > { %3065 = vset.pattern.permute.xlu1 %v5480_v3 }
  0xf8   : > { %878 = vperm.xlu1 %3065, %v3449_v58  }
  0xfc   : > { %3066 = vset.pattern.permute.xlu1 %v5482_v4 }
  0xfd   : > { %910 = vperm.xlu1 %3066, %v3449_v58  }
 0x101   : > { %3067 = vset.pattern.permute.xlu1 %v5478_v1 }
 0x102   : > { %931 = vperm.xlu1 %3067, %v3460_v59  }
 0x106   : > { %3068 = vset.pattern.permute.xlu1 %v5484_v2 }
 0x107   : > { %961 = vperm.xlu1 %3068, %v3460_v59  }
 0x10b   : > { %3069 = vset.pattern.permute.xlu1 %v5482_v4 }
 0x10c   : > { %977 = vperm.xlu1 %3069, %v3460_v59  }
 0x110   : > { %3070 = vset.pattern.permute.xlu1 %v5480_v3 }
 0x111   : > { %1012 = vperm.xlu1 %3070, %v3471_v60  }
 0x115   : > { %3071 = vset.pattern.permute.xlu1 %v5484_v2 }
 0x116   : > { %1028 = vperm.xlu1 %3071, %v3471_v60  }
 0x11a   : > { %3072 = vset.pattern.permute.xlu1 %v5478_v1 }
 0x11b   : > { %1065 = vperm.xlu1 %3072, %v3480_v61  }
 0x11f   : > { %3073 = vset.pattern.permute.xlu1 %v5480_v3 }
 0x120   : > { %1079 = vperm.xlu1 %3073, %v3480_v61  }
 0x124   : > { %3074 = vset.pattern.permute.xlu1 %v5482_v4 }
 0x125   : > { %1111 = vperm.xlu1 %3074, %v3480_v61  }
 0x129   : > { %3075 = vset.pattern.permute.xlu1 %v5478_v1 }
 0x12a   : > { %1132 = vperm.xlu1 %3075, %v3491_v62  }
 0x12e   : > { %3076 = vset.pattern.permute.xlu1 %v5484_v2 }
 0x12f   : > { %1162 = vperm.xlu1 %3076, %v3491_v62  }
 0x133   : > { %3077 = vset.pattern.permute.xlu1 %v5482_v4 }
 0x134   : > { %1178 = vperm.xlu1 %3077, %v3491_v62  }
 0x138   : > { %3078 = vset.pattern.permute.xlu1 %v5480_v3 }
 0x139   : > { %1213 = vperm.xlu1 %3078, %v3502_v63  }
 0x13d   : > { %3079 = vset.pattern.permute.xlu1 %v5484_v2 }
 0x13e   : > { %1229 = vperm.xlu1 %3079, %v3502_v63  }
 0x141   : > { %v527_v6 = vpop.xlane.xlu1 %526 }
 0x142   : > { %v529_v10 = vmul.f32 0.00390625, %v527_v6  ;;  %3080 = vset.pattern.permute.xlu1 %v5478_v1  ;;  %v567_v6 = vld [vmem:[%s5460_s11] sm:$0x3] }
 0x143   : > { %1266 = vperm.xlu1 %3080, %v3511_v0  }
 0x144   : > { %v536_v12 = vrot.slane %v529_v10, %v3395_v9  ;;  %v3519_v13 = vmul.f32 %v530_v8, %v529_v10  ;;  %v547_v16 = vrot.slane %v529_v10, %v3397_v11  ;;  %v558_v18 = vrot.slane %v529_v10, %v3400_v14 }
 0x145   : > { %v3538_v21 = vpop.permute.xlu1 %604 }
 0x146   : > { %v538_v15 = vmul.f32 %v536_v12, %v530_v8  ;;  %v549_v17 = vmul.f32 %v547_v16, %v530_v8  ;;  %v560_v19 = vmul.f32 %v558_v18, %v530_v8 }
 0x147   : > { %3081 = vset.pattern.permute.xlu1 %v5480_v3 }
 0x148   : > { %1280 = vperm.xlu1 %3081, %v3511_v0   ;;  %540 = vrot.lane.b32.xlu0 %v538_v15, %s5474_s17  ;;  %v3685_v15 = vld [vmem:[%s5456_s7 + $0x1c] sm:$0xf] }
 0x149   : > { %v3547_v22 = vpop.permute.xlu1 %627 }
 0x14c   : > { %3082 = vset.pattern.permute.xlu1 %v5482_v4  ;;  %551 = vrot.lane.b32.xlu0 %v549_v17, %s3261_s19  ;;  %s6024_s19 = smov 17  }
 0x14d   : > { %1312 = vperm.xlu1 %3082, %v3511_v0   ;;  %v3558_v24 = vpop.permute.xlu1 %629 }
 0x150   : > { %562 = vrot.lane.b32.xlu0 %v560_v19, %s3262_s15  ;;  %s5703_s15 = smov 112   ;;  %v2973_v19 = vld [vmem:[%s5456_s7 + $0x20] sm:$0xf] }
 0x151   : > { %3083 = vset.pattern.permute.xlu1 %v5478_v1  ;;  %v3569_v26 = vpop.permute.xlu1 %649 }
 0x152   : > { %1333 = vperm.xlu1 %3083, %v3531_v20  }
 0x154   : > { %606 = vrot.lane.b32.xlu0 %v3416_v53, %s5476_s28 }
 0x155   : > { %v3579_v28 = vpop.permute.xlu1 %671 }
 0x156   : > { %3084 = vset.pattern.permute.xlu1 %v5484_v2 }
 0x157   : > { %1363 = vperm.xlu1 %3084, %v3531_v20  }
 0x158   : > { %651 = vrot.lane.b32.xlu0 %v3416_v53, %s5700_s16 }
 0x159   : > { %v3586_v29 = vpop.permute.xlu1 %708 }
 0x15b   : > { %3085 = vset.pattern.permute.xlu1 %v5482_v4 }
 0x15c   : > { %1379 = vperm.xlu1 %3085, %v3531_v20   ;;  %673 = vrot.lane.b32.xlu0 %v3416_v53, %s5701_s18 }
 0x15d   : > { %v3590_v30 = vpop.permute.xlu1 %730 }
 0x160   : > { %3086 = vset.pattern.permute.xlu1 %v5480_v3  ;;  %710 = vrot.lane.b32.xlu0 %v3416_v53, %s5474_s17  ;;  %s5704_s17 = smov 111  }
 0x161   : > { %1417 = vperm.xlu1 %3086, %v3552_v23   ;;  %v3599_v32 = vpop.permute.xlu1 %752 }
 0x164   : > { %732 = vrot.lane.b32.xlu0 %v3416_v53, %s5702_s29 }
 0x165   : > { %3087 = vset.pattern.permute.xlu1 %v5484_v2  ;;  %v3608_v34 = vpop.permute.xlu1 %774 }
 0x166   : > { %1433 = vperm.xlu1 %3087, %v3552_v23  }
 0x168   : > { %754 = vrot.lane.b32.xlu0 %v3416_v53, %s5703_s15 }
 0x169   : > { %v3613_v35 = vpop.permute.xlu1 %799 }
 0x16a   : > { %3088 = vset.pattern.permute.xlu1 %v5478_v1 }
 0x16b   : > { %1467 = vperm.xlu1 %3088, %v1464_v25  }
 0x16c   : > { %776 = vrot.lane.b32.xlu0 %v3416_v53, %s5704_s17 }
 0x16d   : > { %v3618_v36 = vpop.permute.xlu1 %829 }
 0x16f   : > { %1487 = vperm.xlu1 %3088, %v3577_v27  }
 0x170   : > { %813 = vperm.xlu0 %3059, %v3441_v57  }
 0x172   : > { %v3627_v38 = vpop.permute.xlu1 %864 }
 0x173   : > { %3089 = vset.pattern.permute.xlu1 %v5484_v2 }
 0x174   : > { %1501 = vperm.xlu1 %3089, %v3577_v27   ;;  %945 = vperm.xlu0 %3059, %v3460_v59  }
 0x177   : > { %v3631_v39 = vpop.permute.xlu1 %878 }
 0x178   : > { %3090 = vset.pattern.permute.xlu1 %v5482_v4 }
 0x179   : > { %1509 = vperm.xlu1 %3090, %v3577_v27  }
 0x17c   : > { %v3640_v41 = vpop.permute.xlu1 %910 }
 0x17d   : > { %3091 = vset.pattern.permute.xlu1 %v5480_v3 }
 0x17e   : > { %1526 = vperm.xlu1 %3091, %v3595_v31  }
 0x181   : > { %v3644_v42 = vpop.permute.xlu1 %931 }
 0x182   : > { %3092 = vset.pattern.permute.xlu1 %v5484_v2 }
 0x183   : > { %1534 = vperm.xlu1 %3092, %v3595_v31  }
 0x186   : > { %v3653_v44 = vpop.permute.xlu1 %961 }
 0x187   : > { %3093 = vset.pattern.permute.xlu1 %v5478_v1 }
 0x188   : > { %1555 = vperm.xlu1 %3093, %v3606_v33  }
 0x18b   : > { %v3658_v45 = vpop.permute.xlu1 %977 }
 0x18c   : > { %3094 = vset.pattern.permute.xlu1 %v5480_v3 }
 0x18d   : > { %1561 = vperm.xlu1 %3094, %v3606_v33  }
 0x190   : > { %v3663_v47 = vpop.permute.xlu1 %1012 }
 0x191   : > { %3095 = vset.pattern.permute.xlu1 %v5482_v4  ;;  %5705 = vst [vmem:[#allocation9_spill] sm:$0xff] %v3663_v47 }
 0x192   : > { %1577 = vperm.xlu1 %3095, %v3606_v33  }
 0x195   : > { %v3670_v51 = vpop.permute.xlu1 %1028 }
 0x196   : > { %3096 = vset.pattern.permute.xlu1 %v5478_v1  ;;  %5706 = vst [vmem:[#allocation10_spill] sm:$0xff] %v3670_v51 }
 0x197   : > { %1590 = vperm.xlu1 %3096, %v3623_v37  }
 0x19a   : > { %v3676_v8 = vpop.permute.xlu1 %1065 }
 0x19b   : > { %3097 = vset.pattern.permute.xlu1 %v5484_v2 }
 0x19c   : > { %1604 = vperm.xlu1 %3097, %v3623_v37  }
 0x19f   : > { %v3687_v16 = vpop.permute.xlu1 %1079 }
 0x1a0   : > { %3098 = vset.pattern.permute.xlu1 %v5482_v4 }
 0x1a1   : > { %1612 = vperm.xlu1 %3098, %v3623_v37  }
 0x1a4   : > { %v3694_v18 = vpop.permute.xlu1 %1111 }
 0x1a5   : > { %3099 = vset.pattern.permute.xlu1 %v5480_v3 }
 0x1a6   : > { %1631 = vperm.xlu1 %3099, %v3638_v40  }
 0x1a9   : > { %v3700_v25 = vpop.permute.xlu1 %1132 }
 0x1aa   : > { %3100 = vset.pattern.permute.xlu1 %v5484_v2 }
 0x1ab   : > { %1639 = vperm.xlu1 %3100, %v3638_v40  }
 0x1af   : > { %3101 = vset.pattern.permute.xlu1 %v5478_v1 }
 0x1b0   : > { %1660 = vperm.xlu1 %3101, %v3651_v43  }
 0x1b4   : > { %3102 = vset.pattern.permute.xlu1 %v5480_v3 }
 0x1b5   : > { %1666 = vperm.xlu1 %3102, %v3651_v43  }
 0x1b9   : > { %3103 = vset.pattern.permute.xlu1 %v5482_v4 }
 0x1ba   : > { %v541_v46 = vpop.permute.xlu0 %540  ;;  %1682 = vperm.xlu1 %3103, %v3651_v43  }
 0x1bb   : > { %v543_v50 = vadd.f32 %v541_v46, %v3519_v13  ;;  %v3704_v46 = vpop.permute.xlu1 %1162 }
 0x1bc   : > { %5708 = vst [vmem:[#allocation12_spill] sm:$0xff] %v3704_v46 }
 0x1be   : > { %v552_v49 = vpop.permute.xlu0 %551  ;;  %3104 = vset.pattern.permute.xlu1 %v5478_v1 }
 0x1bf   : > { %1695 = vperm.xlu1 %3104, %v2971_v48   ;;  %v554_v54 = vadd.f32 %v552_v49, %v543_v50  ;;  %v3707_v49 = vpop.permute.xlu1 %1178 }
 0x1c0   : > { %5709 = vst [vmem:[#allocation13_spill] sm:$0xff] %v3707_v49 }
 0x1c2   : > { %v563_v55 = vpop.permute.xlu0 %562 }
 0x1c3   : > { %v565_v56 = vadd.f32 %v563_v55, %v554_v54  ;;  %3106 = vset.pattern.permute.xlu1 %v5484_v2  ;;  %v3712_v50 = vpop.permute.xlu1 %1213 }
 0x1c4   : > { %1709 = vperm.xlu1 %3106, %v2971_v48   ;;  %5710 = vst [vmem:[#allocation14_spill] sm:$0xff] %v3712_v50 }
 0x1c5   : > { %v566_v59 = vmax.f32 %v565_v56, 0.0 }
 0x1c7   : > { %v572_v10 = vrot.slane %v566_v59, %v3393_v7  ;;  %v3715_v54 = vpop.permute.xlu1 %1229 }
 0x1c8   : > { %3107 = vset.pattern.permute.xlu1 %v5482_v4  ;;  %5711 = vst [vmem:[#allocation15_spill] sm:$0xff] %v3715_v54 }
 0x1c9   : > { %1717 = vperm.xlu1 %3107, %v2971_v48   ;;  %v574_v12 = vmul.f32 %v572_v10, %v567_v6  ;;  %v3749_v10 = vpop.permute.xlu0 %606 }
 0x1cb   : > { %v3680_v13 = vmul.f32 0.033333335, %v574_v12  ;;  %v3718_v55 = vpop.permute.xlu1 %1266 }
 0x1cc   : > { %5712 = vst [vmem:[#allocation16_spill] sm:$0xff] %v3718_v55 }
 0x1cd   : > { %5707 = vst [vmem:[#allocation11_spill] sm:$0xff] %v3680_v13  ;;  %3109 = vset.pattern.permute.xlu1 %v5480_v3  ;;  %v577_v17 = vsel %vm576_vm1, %v3680_v13, -inf  ;;  %v5732_v13 = vlaneseq }
 0x1ce   : > { %578 = vmax.xlane.f32.xlu0 %v577_v17  ;;  %1736 = vperm.xlu1 %3109, %v3685_v15  }
 0x1d2   : > { %3110 = vset.pattern.permute.xlu1 %v5484_v2 }
 0x1d3   : > { %1744 = vperm.xlu1 %3110, %v3685_v15  }
 0x1d7   : > { %3111 = vset.pattern.permute.xlu1 %v5478_v1 }
 0x1d8   : > { %1765 = vperm.xlu1 %3111, %v2973_v19  }
 0x1dc   : > { %3112 = vset.pattern.permute.xlu1 %v5480_v3 }
 0x1dd   : > { %1771 = vperm.xlu1 %3112, %v2973_v19  }
 0x1e1   : > { %3114 = vset.pattern.permute.xlu1 %v5482_v4 }
 0x1e2   : > { %1787 = vperm.xlu1 %3114, %v2973_v19  }
 0x1e4   : > { %1146 = vperm.xlu0 %3059, %v3491_v62   ;;  %v3722_v62 = vpop.permute.xlu1 %1280 }
 0x1e5   : > { %5713 = vst [vmem:[#allocation17_spill] sm:$0xff] %v3722_v62 }
 0x1e6   : > { %3115 = vset.pattern.permute.xlu1 %v5478_v1 }
 0x1e8   : > { %1347 = vperm.xlu0 %3059, %v3531_v20   ;;  %v3725_v20 = vpop.permute.xlu1 %1312 }
 0x1e9   : > { %5714 = vst [vmem:[#allocation18_spill] sm:$0xff] %v3725_v20 }
 0x1ec   : > { %1493 = vperm.xlu0 %3059, %v3577_v27   ;;  %v3729_v27 = vpop.permute.xlu1 %1333 }
 0x1ed   : > { %5715 = vst [vmem:[#allocation19_spill] sm:$0xff] %v3729_v27 }
 0x1f0   : > { %1596 = vperm.xlu0 %3059, %v3623_v37   ;;  %v3732_v37 = vpop.permute.xlu1 %1363 }
 0x1f1   : > { %5716 = vst [vmem:[#allocation20_spill] sm:$0xff] %v3732_v37 }
 0x1f4   : > { %1701 = vperm.xlu0 %3059, %v2971_v48   ;;  %v3737_v48 = vpop.permute.xlu1 %1379 }
 0x1f5   : > { %5717 = vst [vmem:[#allocation21_spill] sm:$0xff] %v3737_v48 }
 0x1f8   : > { %3105 = vset.pattern.permute.xlu0 %v5478_v1  ;;  %v3740_v56 = vpop.permute.xlu1 %1417 }
 0x1f9   : > { %998 = vperm.xlu0 %3105, %v3471_v60   ;;  %5718 = vst [vmem:[#allocation22_spill] sm:$0xff] %v3740_v56 }
 0x1fc   : > { %v3744_v59 = vpop.permute.xlu1 %1433 }
 0x1fd   : > { %1199 = vperm.xlu0 %3105, %v3502_v63   ;;  %5719 = vst [vmem:[#allocation23_spill] sm:$0xff] %v3744_v59 }
 0x200   : > { %v3747_v6 = vpop.permute.xlu1 %1467 }
 0x201   : > { %1403 = vperm.xlu0 %3105, %v3552_v23   ;;  %5720 = vst [vmem:[#allocation24_spill] sm:$0xff] %v3747_v6  ;;  %v3797_v6 = vand.u32 127, %v5732_v13 }
 0x203   : > { %5733 = vst [vmem:[#allocation36_spill] sm:$0xff] %v3797_v6  ;;  %vm631_vm2 = vcmp.lt.s32.totalorder %v3797_v6, 16  ;;  %vm610_vm3 = vcmp.lt.s32.totalorder %v3797_v6, 17  ;;  %vm653_vm4 = vcmp.lt.s32.totalorder %v3797_v6, 15  ;;  %vm675_vm5 = vcmp.lt.s32.totalorder %v3797_v6, 1 }
 0x204   : > { %v612_v48 = vsel %vm610_vm3, %v3749_v10, %v3538_v21  ;;  %vm712_vm6 = vcmp.lt.s32.totalorder %v3797_v6, 127  ;;  %vm734_vm7 = vcmp.lt.s32.totalorder %v3797_v6, 113  ;;  %vm756_vm8 = vcmp.lt.s32.totalorder %v3797_v6, 112 }
 0x205   : > { %1520 = vperm.xlu0 %3105, %v3595_v31   ;;  %vm778_vm9 = vcmp.lt.s32.totalorder %v3797_v6, 111 }
 0x209   : > { %1625 = vperm.xlu0 %3105, %v3638_v40  }
 0x20d   : > { %1730 = vperm.xlu0 %3105, %v3685_v15  }
 0x211   : > { %3108 = vset.pattern.permute.xlu0 %v5484_v2 }
 0x212   : > { %894 = vperm.xlu0 %3108, %v3449_v58   ;;  %v3752_v58 = vpop.permute.xlu1 %1487 }
 0x213   : > { %5721 = vst [vmem:[#allocation25_spill] sm:$0xff] %v3752_v58  ;;  %v2950_v58 = vld [vmem:[%s5450_s1 + $0x6] sm:$0x3] }
 0x216   : > { %1095 = vperm.xlu0 %3108, %v3480_v61   ;;  %v3755_v61 = vpop.permute.xlu0 %651 }
 0x21a   : > { %1296 = vperm.xlu0 %3108, %v3511_v0   ;;  %v3758_v0 = vpop.permute.xlu1 %1501 }
 0x21b   : > { %5722 = vst [vmem:[#allocation26_spill] sm:$0xff] %v3758_v0 }
 0x21e   : > { %1569 = vperm.xlu0 %3108, %v3606_v33   ;;  %v3761_v33 = vpop.permute.xlu0 %673 }
 0x222   : > { %1674 = vperm.xlu0 %3108, %v3651_v43   ;;  %v3763_v43 = vpop.permute.xlu1 %1509  ;;  %v3766_v12 = vpop.permute.xlu0 %710 }
 0x223   : > { %5723 = vst [vmem:[#allocation27_spill] sm:$0xff] %v3763_v43 }
 0x226   : > { %1779 = vperm.xlu0 %3108, %v2973_v19   ;;  %v3769_v17 = vpop.permute.xlu1 %1526 }
 0x227   : > { %5724 = vst [vmem:[#allocation28_spill] sm:$0xff] %v3769_v17 }
 0x22a   : > { %3113 = vset.pattern.permute.xlu0 %v5482_v4 }
 0x22b   : > { %845 = vperm.xlu0 %3113, %v3441_v57   ;;  %v3772_v57 = vpop.permute.xlu0 %732 }
 0x22f   : > { %1044 = vperm.xlu0 %3113, %v3471_v60   ;;  %v3774_v60 = vpop.permute.xlu1 %1534 }
 0x230   : > { %5725 = vst [vmem:[#allocation29_spill] sm:$0xff] %v3774_v60  ;;  %v2948_v60 = vld [vmem:[%s5450_s1 + $0x2] sm:$0x3] }
 0x233   : > { %1245 = vperm.xlu0 %3113, %v3502_v63   ;;  %v3777_v63 = vpop.permute.xlu0 %754  ;;  %v3779_v19 = vpop.permute.xlu1 %1555 }
 0x234   : > { %5726 = vst [vmem:[#allocation30_spill] sm:$0xff] %v3779_v19 }
 0x237   : > { %1449 = vperm.xlu0 %3113, %v3552_v23   ;;  %v3781_v1 = vpop.permute.xlu0 %776  ;;  %v3783_v23 = vpop.permute.xlu1 %1561 }
 0x238   : > { %5727 = vst [vmem:[#allocation31_spill] sm:$0xff] %v3783_v23 }
 0x23b   : > { %1542 = vperm.xlu0 %3113, %v3595_v31   ;;  %v3785_v3 = vpop.permute.xlu0 %813  ;;  %v3787_v31 = vpop.permute.xlu1 %1577 }
 0x23c   : > { %5728 = vst [vmem:[#allocation32_spill] sm:$0xff] %v3785_v3  ;;  %5729 = vst [vmem:[#allocation33_spill] sm:$0xff] %v3787_v31 }
 0x23f   : > { %1647 = vperm.xlu0 %3113, %v3638_v40   ;;  %v3789_v4 = vpop.permute.xlu0 %945  ;;  %v2951_v40 = vld [vmem:[%s5450_s1 + $0x8] sm:$0x3]  ;;  %v3794_v2 = vpop.permute.xlu1 %1590 }
 0x240   : > { %5730 = vst [vmem:[#allocation34_spill] sm:$0xff] %v3789_v4  ;;  %5731 = vst [vmem:[#allocation35_spill] sm:$0xff] %v3794_v2  ;;  %v3800_v59 = vrot.slane %v2951_v40, %v3393_v7  ;;  %v3803_v56 = vrot.slane %v2951_v40, %v3395_v9  ;;  %v3816_v40 = vrot.slane %v2948_v60, %v3393_v7 }
 0x242   : > { %5734 = vst [vmem:[#allocation37_spill] sm:$0xff] %v3800_v59  ;;  %5735 = vst [vmem:[#allocation38_spill] sm:$0xff] %v3803_v56  ;;  %v706_v13 = vmul.f32 %v3800_v59, %v3414_v52  ;;  %v707_v19 = vmul.f32 %v3803_v56, %v3416_v53  ;;  %v633_v52 = vsel %vm631_vm2, %v3558_v24, %v3547_v22  ;;  %v613_v56 = vld [vmem:[%s5450_s1] sm:$0x3]  ;;  %v2949_v59 = vld [vmem:[%s5450_s1 + $0x4] sm:$0x3] }
 0x243   : > { %1752 = vperm.xlu0 %3113, %v3685_v15   ;;  %v3809_v2 = vpop.permute.xlu1 %1604  ;;  %5737 = vst [vmem:[#allocation40_spill] sm:$0xff] %v3816_v40 }
 0x244   : > { %5736 = vst [vmem:[#allocation39_spill] sm:$0xff] %v3809_v2  ;;  %v632_v2 = vsel %vm631_vm2, %v3547_v22, %v3558_v24  ;;  %v647_v22 = vmul.f32 %v3816_v40, %v633_v52  ;;  %v3849_v0 = vrot.slane %v707_v19, %v3395_v9  ;;  %v3852_v23 = vrot.slane %v706_v13, %v3400_v14 }
 0x245   : > { %v3869_v52 = vrot.slane %v707_v19, %v3397_v11  ;;  %v3879_v40 = vrot.slane %v2949_v59, %v3393_v7 }
 0x246   : > { %5743 = vst [vmem:[#allocation46_spill] sm:$0xff] %v3849_v0  ;;  %5744 = vst [vmem:[#allocation47_spill] sm:$0xff] %v3852_v23  ;;  %v3915_v20 = vrot.slane %v647_v22, %v3400_v14  ;;  %v3936_v62 = vrot.slane %v647_v22, %v3397_v11 }
 0x247   : > { %v3857_v37 = vpop.permute.xlu1 %1612  ;;  %5749 = vst [vmem:[#allocation52_spill] sm:$0xff] %v3869_v52  ;;  %5752 = vst [vmem:[#allocation55_spill] sm:$0xff] %v3879_v40 }
 0x248   : > { %5745 = vst [vmem:[#allocation48_spill] sm:$0xff] %v3857_v37  ;;  %v2953_v37 = vld [vmem:[%s5450_s1 + $0xc] sm:$0x3]  ;;  %5761 = vst [vmem:[#allocation64_spill] sm:$0xff] %v3915_v20 }
 0x249   : > { %5765 = vst [vmem:[#allocation68_spill] sm:$0xff] %v3936_v62  ;;  %v3946_v46 = vrot.slane %v2953_v37, %v3393_v7  ;;  %v3949_v47 = vrot.slane %v2953_v37, %v3395_v9  ;;  %v655_v37 = vsel %vm653_vm4, %v3755_v61, %v3569_v26  ;;  %v1091_v62 = vmul.f32 %v3849_v0, %v3687_v16 }
 0x24b   : > { %v3941_v51 = vpop.permute.xlu1 %1631  ;;  %5768 = vst [vmem:[#allocation71_spill] sm:$0xff] %v3946_v46  ;;  %5769 = vst [vmem:[#allocation72_spill] sm:$0xff] %v3949_v47 }
 0x24c   : > { %5767 = vst [vmem:[#allocation70_spill] sm:$0xff] %v3941_v51 }
 0x25b   : > { %v579_v15 = vpop.xlane.xlu0 %578 }
 0x25c   : > { %v580_v5 = vrot.slane %v579_v15, 4 }
 0x25e   : > { %v581_v31 = vmax.f32 %v579_v15, %v580_v5  ;;  %v3819_v5 = vrot.slane %v2948_v60, %v3395_v9  ;;  %v3838_v60 = vrot.slane %v706_v13, %v3395_v9 }
 0x260   : > { %v582_v17 = vrot.slane %v581_v31, 2  ;;  %5738 = vst [vmem:[#allocation41_spill] sm:$0xff] %v3819_v5  ;;  %5742 = vst [vmem:[#allocation45_spill] sm:$0xff] %v3838_v60  ;;  %v648_v24 = vmul.f32 %v3819_v5, %v632_v2  ;;  %v3866_v2 = vrot.slane %v706_v13, %v3397_v11  ;;  %v3875_v5 = vrot.slane %v613_v56, %v3395_v9 }
 0x262   : > { %v583_v43 = vmax.f32 %v581_v31, %v582_v17  ;;  %v3832_v17 = vrot.slane %v706_v13, %v3393_v7  ;;  %v3835_v31 = vrot.slane %v707_v19, %v3393_v7  ;;  %5748 = vst [vmem:[#allocation51_spill] sm:$0xff] %v3866_v2  ;;  %5751 = vst [vmem:[#allocation54_spill] sm:$0xff] %v3875_v5  ;;  %v2952_v13 = vld [vmem:[%s5450_s1 + $0xa] sm:$0x3] }
 0x263   : > { %v3821_v15 = vpop.permute.xlu0 %1146  ;;  %v3885_v2 = vrot.slane %v2949_v59, %v3395_v9  ;;  %v3898_v52 = vrot.slane %v648_v24, %v3393_v7  ;;  %v3904_v59 = vrot.slane %v648_v24, %v3395_v9  ;;  %v3918_v27 = vrot.slane %v648_v24, %v3400_v14 }
 0x264   : > { %5739 = vst [vmem:[#allocation42_spill] sm:$0xff] %v3821_v15  ;;  %v584_v53 = vrot.slane %v583_v43, 1  ;;  %5740 = vst [vmem:[#allocation43_spill] sm:$0xff] %v3832_v17  ;;  %v3926_v3 = vrot.slane %v2952_v13, %v3393_v7  ;;  %v3933_v55 = vrot.slane %v2952_v13, %v3395_v9  ;;  %v3939_v4 = vrot.slane %v648_v24, %v3397_v11 }
 0x265   : > { %5741 = vst [vmem:[#allocation44_spill] sm:$0xff] %v3835_v31  ;;  %5753 = vst [vmem:[#allocation56_spill] sm:$0xff] %v3885_v2  ;;  %v890_v24 = vmul.f32 %v3904_v59, %v3631_v39 }
 0x266   : > { %v585_v15 = vmax.f32 %v583_v43, %v584_v53  ;;  %v3862_v43 = vrot.slane %v707_v19, %v3400_v14  ;;  %v3872_v53 = vrot.slane %v613_v56, %v3393_v7  ;;  %v3889_v19 = vrot.slane %v2950_v58, %v3393_v7  ;;  %5757 = vst [vmem:[#allocation60_spill] sm:$0xff] %v3898_v52 }
 0x267   : > { %v3859_v54 = vpop.permute.xlu0 %1347  ;;  %v3892_v56 = vrot.slane %v2950_v58, %v3395_v9  ;;  %5759 = vst [vmem:[#allocation62_spill] sm:$0xff] %v3904_v59  ;;  %v2954_v58 = vld [vmem:[%s5450_s1 + $0xe] sm:$0x3]  ;;  %5762 = vst [vmem:[#allocation65_spill] sm:$0xff] %v3918_v27 }
 0x268   : > { %5746 = vst [vmem:[#allocation49_spill] sm:$0xff] %v3859_v54  ;;  %5747 = vst [vmem:[#allocation50_spill] sm:$0xff] %v3862_v43  ;;  %v3901_v54 = vrot.slane %v647_v22, %v3395_v9  ;;  %v625_v13 = vmul.f32 %v3872_v53, %v612_v48  ;;  %v876_v48 = vmul.f32 %v3898_v52, %v3627_v38 }
 0x269   : > { %2997 = vpush %v585_v15  ;;  %5750 = vst [vmem:[#allocation53_spill] sm:$0xff] %v3872_v53  ;;  %v3895_v15 = vrot.slane %v647_v22, %v3393_v7  ;;  %v3980_v53 = vrot.slane %v2954_v58, %v3395_v9 }
 0x26a   : > { %5754 = vst [vmem:[#allocation57_spill] sm:$0xff] %v3889_v19  ;;  %5755 = vst [vmem:[#allocation58_spill] sm:$0xff] %v3892_v56  ;;  %v889_v50 = vmul.f32 %v3901_v54, %v3631_v39  ;;  %v654_v39 = vsel %vm653_vm4, %v3569_v26, %v3755_v61  ;;  %v1077_v26 = vmul.f32 %v3835_v31, %v3676_v8 }
 0x26b   : > { %5756 = vst [vmem:[#allocation59_spill] sm:$0xff] %v3895_v15  ;;  %5758 = vst [vmem:[#allocation61_spill] sm:$0xff] %v3901_v54  ;;  %v3912_v49 = vpop.permute.xlu0 %1493  ;;  %v875_v22 = vmul.f32 %v3895_v15, %v3627_v38  ;;  %v669_v61 = vmul.f32 %v3879_v40, %v655_v37  ;;  %v3996_v38 = vadd.f32 %v890_v24, %v876_v48 }
 0x26c   : > { %5760 = vst [vmem:[#allocation63_spill] sm:$0xff] %v3912_v49  ;;  %5763 = vst [vmem:[#allocation66_spill] sm:$0xff] %v3926_v3  ;;  %v611_v49 = vsel %vm610_vm3, %v3538_v21, %v3749_v10  ;;  %v3952_v21 = vrot.slane %v2954_v58, %v3393_v7  ;;  %v2955_v10 = vld [vmem:[%s5450_s1 + $0x10] sm:$0x3]  ;;  %v4000_v58 = vmul.f32 %v3915_v20, %v3640_v41 }
 0x26d   : > { %5764 = vst [vmem:[#allocation67_spill] sm:$0xff] %v3933_v55  ;;  %5766 = vst [vmem:[#allocation69_spill] sm:$0xff] %v3939_v4  ;;  %v1090_v4 = vmul.f32 %v3838_v60, %v3687_v16  ;;  %v626_v15 = vmul.f32 %v3875_v5, %v611_v49  ;;  %v3986_v60 = vrot.slane %v2955_v10, %v3395_v9 }
 0x26e   : > { %5770 = vst [vmem:[#allocation73_spill] sm:$0xff] %v3952_v21  ;;  %5772 = vst [vmem:[#allocation75_spill] sm:$0xff] %v3980_v53  ;;  %v3988_v16 = vadd.f32 %v889_v50, %v875_v22  ;;  %v1076_v49 = vmul.f32 %v3832_v17, %v3676_v8  ;;  %v4004_v50 = vrot.slane %v625_v13, %v3393_v7  ;;  %v4006_v22 = vpop.permute.xlu1 %1639 }
 0x26f   : > { %v3966_v51 = vpop.permute.xlu0 %1596  ;;  %5774 = vst [vmem:[#allocation77_spill] sm:$0xff] %v3986_v60  ;;  %5776 = vst [vmem:[#allocation79_spill] sm:$0xff] %v3996_v38  ;;  %v4012_v8 = vmul.f32 %v3918_v27, %v3640_v41  ;;  %v4016_v24 = vadd.f32 %v1091_v62, %v1077_v26  ;;  %v4019_v48 = vrot.slane %v626_v15, %v3393_v7 }
 0x270   : > { %5771 = vst [vmem:[#allocation74_spill] sm:$0xff] %v3966_v51  ;;  %v3983_v51 = vrot.slane %v2955_v10, %v3393_v7  ;;  %5775 = vst [vmem:[#allocation78_spill] sm:$0xff] %v3988_v16  ;;  %v670_v10 = vmul.f32 %v3885_v2, %v654_v39  ;;  %v4014_v37 = vadd.f32 %v1090_v4, %v1076_v49 }
 0x271   : > { %5777 = vst [vmem:[#allocation80_spill] sm:$0xff] %v4000_v58  ;;  %5778 = vst [vmem:[#allocation81_spill] sm:$0xff] %v4004_v50  ;;  %v4023_v39 = vmul.f32 %v3852_v23, %v3694_v18  ;;  %v4027_v2 = vmul.f32 %v3862_v43, %v3694_v18  ;;  %v676_v41 = vsel %vm675_vm5, %v3579_v28, %v3761_v33 }
 0x272   : > { %5773 = vst [vmem:[#allocation76_spill] sm:$0xff] %v3983_v51  ;;  %5779 = vst [vmem:[#allocation82_spill] sm:$0xff] %v4006_v22  ;;  %v677_v4 = vsel %vm675_vm5, %v3761_v33, %v3579_v28  ;;  %v4039_v62 = vrot.slane %v625_v13, %v3395_v9  ;;  %v4042_v49 = vrot.slane %v626_v15, %v3395_v9 }
 0x273   : > { %v4008_v5 = vpop.permute.xlu0 %1701  ;;  %5781 = vst [vmem:[#allocation84_spill] sm:$0xff] %v4012_v8  ;;  %5782 = vst [vmem:[#allocation85_spill] sm:$0xff] %v4014_v37  ;;  %v4045_v18 = vrot.slane %v669_v61, %v3393_v7  ;;  %v4048_v26 = vrot.slane %v625_v13, %v3397_v11  ;;  %v713_v40 = vsel %vm712_vm6, %v3586_v29, %v3766_v12 }
 0x274   : > { %5780 = vst [vmem:[#allocation83_spill] sm:$0xff] %v4008_v5  ;;  %5783 = vst [vmem:[#allocation86_spill] sm:$0xff] %v4016_v24  ;;  %v714_v28 = vsel %vm712_vm6, %v3766_v12, %v3586_v29  ;;  %v4060_v33 = vmul.f32 %v4004_v50, %v3613_v35  ;;  %v4063_v43 = vrot.slane %v670_v10, %v3393_v7 }
 0x275   : > { %5784 = vst [vmem:[#allocation87_spill] sm:$0xff] %v4019_v48  ;;  %5785 = vst [vmem:[#allocation88_spill] sm:$0xff] %v4023_v39  ;;  %v691_v23 = vmul.f32 %v3889_v19, %v677_v4  ;;  %v692_v27 = vmul.f32 %v3892_v56, %v676_v41  ;;  %v4070_v20 = vmul.f32 %v4019_v48, %v3613_v35  ;;  %v4089_v56 = vpop.permute.xlu1 %1660 }
 0x276   : > { %5786 = vst [vmem:[#allocation89_spill] sm:$0xff] %v4027_v2  ;;  %5787 = vst [vmem:[#allocation90_spill] sm:$0xff] %v4039_v62  ;;  %v4073_v31 = vrot.slane %v626_v15, %v3397_v11  ;;  %v4078_v12 = vrot.slane %v669_v61, %v3395_v9  ;;  %v4081_v17 = vrot.slane %v670_v10, %v3395_v9 }
 0x277   : > { %5788 = vst [vmem:[#allocation91_spill] sm:$0xff] %v4042_v49  ;;  %5789 = vst [vmem:[#allocation92_spill] sm:$0xff] %v4045_v18  ;;  %v4084_v4 = vrot.slane %v625_v13, %v3400_v14  ;;  %v4087_v41 = vrot.slane %v626_v15, %v3400_v14  ;;  %v728_v35 = vmul.f32 %v3926_v3, %v713_v40 }
 0x278   : > { %5790 = vst [vmem:[#allocation93_spill] sm:$0xff] %v4048_v26  ;;  %5791 = vst [vmem:[#allocation94_spill] sm:$0xff] %v4063_v43  ;;  %v4075_v29 = vpop.permute.xlu0 %998  ;;  %v729_v19 = vmul.f32 %v3933_v55, %v714_v28  ;;  %v4095_v2 = vmul.f32 %v4045_v18, %v3644_v42  ;;  %v4098_v39 = vrot.slane %v669_v61, %v3400_v14 }
 0x279   : > { %5792 = vst [vmem:[#allocation95_spill] sm:$0xff] %v4073_v31  ;;  %5793 = vst [vmem:[#allocation96_spill] sm:$0xff] %v4075_v29  ;;  %v4102_v13 = vmul.f32 %v4063_v43, %v3644_v42  ;;  %v4105_v15 = vrot.slane %v670_v10, %v3400_v14  ;;  %v4108_v24 = vrot.slane %v669_v61, %v3397_v11  ;;  %v4154_v16 = vpop.permute.xlu1 %1666 }
 0x27a   : > { %5794 = vst [vmem:[#allocation97_spill] sm:$0xff] %v4078_v12  ;;  %5795 = vst [vmem:[#allocation98_spill] sm:$0xff] %v4081_v17  ;;  %v4111_v40 = vrot.slane %v670_v10, %v3397_v11  ;;  %v4114_v28 = vrot.slane %v691_v23, %v3393_v7  ;;  %v4117_v55 = vrot.slane %v692_v27, %v3393_v7 }
 0x27b   : > { %5796 = vst [vmem:[#allocation99_spill] sm:$0xff] %v4084_v4  ;;  %5797 = vst [vmem:[#allocation100_spill] sm:$0xff] %v4087_v41  ;;  %v4120_v3 = vrot.slane %v691_v23, %v3397_v11  ;;  %v4126_v37 = vmul.f32 %v4048_v26, %v3618_v36  ;;  %v735_v61 = vsel %vm734_vm7, %v3590_v30, %v3772_v57 }
 0x27c   : > { %5798 = vst [vmem:[#allocation101_spill] sm:$0xff] %v4089_v56  ;;  %5799 = vst [vmem:[#allocation102_spill] sm:$0xff] %v4098_v39  ;;  %v4122_v42 = vpop.permute.xlu0 %1199  ;;  %v4133_v10 = vrot.slane %v692_v27, %v3397_v11  ;;  %v4136_v52 = vrot.slane %v691_v23, %v3400_v14  ;;  %v4139_v8 = vrot.slane %v692_v27, %v3400_v14 }
 0x27d   : > { %5800 = vst [vmem:[#allocation103_spill] sm:$0xff] %v4105_v15  ;;  %5801 = vst [vmem:[#allocation104_spill] sm:$0xff] %v4108_v24  ;;  %v736_v58 = vsel %vm734_vm7, %v3772_v57, %v3590_v30  ;;  %v4149_v5 = vrot.slane %v729_v19, %v3393_v7  ;;  %v4152_v38 = vrot.slane %v691_v23, %v3395_v9 }
 0x27e   : > { %5802 = vst [vmem:[#allocation105_spill] sm:$0xff] %v4111_v40  ;;  %5803 = vst [vmem:[#allocation106_spill] sm:$0xff] %v4114_v28  ;;  %v4157_v29 = vrot.slane %v692_v27, %v3395_v9  ;;  %v4161_v22 = vmul.f32 %v4108_v24, %v3653_v44  ;;  %v4165_v30 = vmul.f32 %v4111_v40, %v3653_v44 }
 0x27f   : > { %5804 = vst [vmem:[#allocation107_spill] sm:$0xff] %v4117_v55  ;;  %5805 = vst [vmem:[#allocation108_spill] sm:$0xff] %v4120_v3  ;;  %v4169_v57 = vmul.f32 %v4073_v31, %v3618_v36  ;;  %v750_v23 = vmul.f32 %v3946_v46, %v735_v61  ;;  %v757_v27 = vsel %vm756_vm8, %v3599_v32, %v3777_v63 }
 0x280   : > { %5806 = vst [vmem:[#allocation109_spill] sm:$0xff] %v4122_v42  ;;  %5807 = vst [vmem:[#allocation110_spill] sm:$0xff] %v4133_v10  ;;  %v4146_v42 = vrot.slane %v728_v35, %v3393_v7  ;;  %v758_v24 = vsel %vm756_vm8, %v3777_v63, %v3599_v32  ;;  %v4180_v0 = vpop.permute.xlu0 %1403  ;;  %v4184_v44 = vmul.f32 %v4098_v39, %v3658_v45 }
 0x281   : > { %5808 = vst [vmem:[#allocation111_spill] sm:$0xff] %v4136_v52  ;;  %5809 = vst [vmem:[#allocation112_spill] sm:$0xff] %v4139_v8  ;;  %v751_v36 = vmul.f32 %v3949_v47, %v736_v58  ;;  %v4188_v61 = vrot.slane %v728_v35, %v3395_v9  ;;  %v4191_v46 = vrot.slane %v729_v19, %v3395_v9 }
 0x282   : > { %5810 = vst [vmem:[#allocation113_spill] sm:$0xff] %v4146_v42  ;;  %5811 = vst [vmem:[#allocation114_spill] sm:$0xff] %v4149_v5  ;;  %v4194_v40 = vrot.slane %v728_v35, %v3400_v14  ;;  %v4197_v56 = vrot.slane %v729_v19, %v3400_v14  ;;  %v4201_v32 = vmul.f32 %v4146_v42, %v3700_v25 }
 0x283   : > { %5812 = vst [vmem:[#allocation115_spill] sm:$0xff] %v4152_v38  ;;  %5813 = vst [vmem:[#allocation116_spill] sm:$0xff] %v4157_v29  ;;  %v4205_v63 = vmul.f32 %v4149_v5, %v3700_v25  ;;  %v4208_v58 = vrot.slane %v728_v35, %v3397_v11  ;;  %v772_v47 = vmul.f32 %v3952_v21, %v757_v27  ;;  %v4236_v21 = vpop.permute.xlu1 %1682 }
 0x284   : > { %5814 = vst [vmem:[#allocation117_spill] sm:$0xff] %v4180_v0  ;;  %5815 = vst [vmem:[#allocation118_spill] sm:$0xff] %v4188_v61  ;;  %v773_v0 = vmul.f32 %v3980_v53, %v758_v24  ;;  %v779_v8 = vsel %vm778_vm9, %v3608_v34, %v3781_v1  ;;  %v4221_v25 = vrot.slane %v750_v23, %v3393_v7  ;;  %v4231_v27 = vpop.permute.xlu0 %1520 }
 0x285   : > { %5816 = vst [vmem:[#allocation119_spill] sm:$0xff] %v4191_v46  ;;  %5817 = vst [vmem:[#allocation120_spill] sm:$0xff] %v4194_v40  ;;  %v4234_v53 = vrot.slane %v729_v19, %v3397_v11  ;;  %v4245_v6 = vrot.slane %v751_v36, %v3397_v11  ;;  %v4253_v19 = vrot.slane %v750_v23, %v3400_v14 }
 0x286   : > { %5818 = vst [vmem:[#allocation121_spill] sm:$0xff] %v4197_v56  ;;  %5819 = vst [vmem:[#allocation122_spill] sm:$0xff] %v4201_v32  ;;  %v780_v32 = vsel %vm778_vm9, %v3781_v1, %v3608_v34  ;;  %v4239_v1 = vrot.slane %v751_v36, %v3393_v7  ;;  %v4242_v34 = vrot.slane %v750_v23, %v3397_v11 }
 0x287   : > { %5820 = vst [vmem:[#allocation123_spill] sm:$0xff] %v4205_v63  ;;  %5821 = vst [vmem:[#allocation124_spill] sm:$0xff] %v4208_v58  ;;  %v5823_v63 = vld [vmem:[#allocation9_spill] sm:$0xff] }
 0x288   : > { %5822 = vst [vmem:[#allocation125_spill] sm:$0xff] %v4221_v25  ;;  %v4225_v35 = vmul.f32 %v4152_v38, %v5823_v63  ;;  %v4229_v24 = vmul.f32 %v4157_v29, %v5823_v63  ;;  %5826 = vst [vmem:[#allocation127_spill] sm:$0xff] %v4231_v27  ;;  %v794_v63 = vmul.f32 %v3983_v51, %v779_v8  ;;  %v5838_v29 = vld [vmem:[#allocation12_spill] sm:$0xff] }
 0x289   : > { %5827 = vst [vmem:[#allocation128_spill] sm:$0xff] %v4234_v53  ;;  %5828 = vst [vmem:[#allocation129_spill] sm:$0xff] %v4236_v21  ;;  %v795_v27 = vmul.f32 %v3986_v60, %v780_v32  ;;  %v4262_v25 = vrot.slane %v772_v47, %v3395_v9  ;;  %v4265_v21 = vrot.slane %v773_v0, %v3395_v9  ;;  %v4271_v32 = vpop.permute.xlu0 %1625 }
 0x28a   : > { %5824 = vst [vmem:[#allocation9_spill] sm:$0xff] %v4225_v35  ;;  %5825 = vst [vmem:[#allocation126_spill] sm:$0xff] %v4229_v24  ;;  %v4248_v35 = vrot.slane %v750_v23, %v3395_v9  ;;  %v4256_v24 = vrot.slane %v751_v36, %v3395_v9  ;;  %v4269_v8 = vmul.f32 %v4208_v58, %v5838_v29 }
 0x28b   : > { %5829 = vst [vmem:[#allocation130_spill] sm:$0xff] %v4239_v1  ;;  %5830 = vst [vmem:[#allocation131_spill] sm:$0xff] %v4242_v34  ;;  %v4259_v1 = vrot.slane %v751_v36, %v3400_v14  ;;  %v4274_v23 = vrot.slane %v772_v47, %v3393_v7  ;;  %v4277_v60 = vrot.slane %v773_v0, %v3393_v7 }
 0x28c   : > { %5831 = vst [vmem:[#allocation132_spill] sm:$0xff] %v4245_v6  ;;  %5832 = vst [vmem:[#allocation133_spill] sm:$0xff] %v4248_v35  ;;  %v4281_v36 = vmul.f32 %v4234_v53, %v5838_v29  ;;  %v4285_v51 = vmul.f32 %v4105_v15, %v3658_v45  ;;  %v4291_v58 = vrot.slane %v773_v0, %v3397_v11 }
 0x28d   : > { %5833 = vst [vmem:[#allocation134_spill] sm:$0xff] %v4253_v19  ;;  %5834 = vst [vmem:[#allocation135_spill] sm:$0xff] %v4256_v24  ;;  %v5848_v19 = vld [vmem:[#allocation10_spill] sm:$0xff]  ;;  %v4302_v29 = vrot.slane %v794_v63, %v3400_v14  ;;  %v4305_v45 = vrot.slane %v795_v27, %v3400_v14  ;;  %v4308_v53 = vrot.slane %v794_v63, %v3393_v7  ;;  %v4327_v46 = vpop.permute.xlu0 %1730 }
 0x28e   : > { %5835 = vst [vmem:[#allocation136_spill] sm:$0xff] %v4259_v1  ;;  %5836 = vst [vmem:[#allocation137_spill] sm:$0xff] %v4262_v25  ;;  %v4288_v1 = vrot.slane %v772_v47, %v3397_v11  ;;  %v4299_v38 = vmul.f32 %v4120_v3, %v5848_v19  ;;  %v4325_v52 = vrot.slane %v795_v27, %v3393_v7 }
 0x28f   : > { %5837 = vst [vmem:[#allocation138_spill] sm:$0xff] %v4265_v21  ;;  %5839 = vst [vmem:[#allocation12_spill] sm:$0xff] %v4269_v8  ;;  %v4341_v7 = vrot.slane %v794_v63, %v3395_v9 }
 0x290   : > { %5840 = vst [vmem:[#allocation139_spill] sm:$0xff] %v4271_v32  ;;  %5841 = vst [vmem:[#allocation140_spill] sm:$0xff] %v4274_v23  ;;  %v5846_v32 = vld [vmem:[#allocation14_spill] sm:$0xff] }
 0x291   : > { %5842 = vst [vmem:[#allocation141_spill] sm:$0xff] %v4277_v60  ;;  %5843 = vst [vmem:[#allocation142_spill] sm:$0xff] %v4281_v36  ;;  %v4295_v8 = vmul.f32 %v4248_v35, %v5846_v32  ;;  %v5856_v36 = vld [vmem:[#allocation17_spill] sm:$0xff] }
 0x292   : > { %5844 = vst [vmem:[#allocation143_spill] sm:$0xff] %v4288_v1  ;;  %5845 = vst [vmem:[#allocation144_spill] sm:$0xff] %v4291_v58  ;;  %v4312_v58 = vmul.f32 %v4256_v24, %v5846_v32  ;;  %v5854_v1 = vld [vmem:[#allocation34_spill] sm:$0xff]  ;;  %v1291_v5 = vmul.f32 %v4262_v25, %v5856_v36  ;;  %v1292_v42 = vmul.f32 %v4265_v21, %v5856_v36  ;;  %v5859_v32 = vld [vmem:[#allocation16_spill] sm:$0xff] }
 0x293   : > { %5847 = vst [vmem:[#allocation14_spill] sm:$0xff] %v4295_v8  ;;  %5849 = vst [vmem:[#allocation10_spill] sm:$0xff] %v4299_v38  ;;  %v956_v8 = vmul.f32 %v4078_v12, %v5854_v1  ;;  %v957_v35 = vmul.f32 %v4081_v17, %v5854_v1  ;;  %v4318_v38 = vpop.permute.xlu1 %1695  ;;  %v1278_v24 = vmul.f32 %v4277_v60, %v5859_v32  ;;  %v5864_v21 = vld [vmem:[#allocation21_spill] sm:$0xff]  ;;  %v5867_v60 = vld [vmem:[#allocation19_spill] sm:$0xff] }
 0x294   : > { %5850 = vst [vmem:[#allocation145_spill] sm:$0xff] %v4302_v29  ;;  %5851 = vst [vmem:[#allocation146_spill] sm:$0xff] %v4305_v45  ;;  %v4334_v1 = vrot.slane %v772_v47, %v3400_v14  ;;  %v4352_v47 = vmul.f32 %v4305_v45, %v5864_v21 }
 0x295   : > { %5852 = vst [vmem:[#allocation147_spill] sm:$0xff] %v4308_v53  ;;  %5853 = vst [vmem:[#allocation148_spill] sm:$0xff] %v4312_v58  ;;  %v1277_v58 = vmul.f32 %v4274_v23, %v5859_v32  ;;  %v4348_v23 = vmul.f32 %v4302_v29, %v5864_v21  ;;  %v4355_v32 = vrot.slane %v795_v27, %v3395_v9 }
 0x296   : > { %5855 = vst [vmem:[#allocation34_spill] sm:$0xff] %v4318_v38  ;;  %5857 = vst [vmem:[#allocation17_spill] sm:$0xff] %v4325_v52  ;;  %v5861_v38 = vld [vmem:[#allocation32_spill] sm:$0xff]  ;;  %v4367_v29 = vrot.slane %v795_v27, %v3397_v11  ;;  %v4371_v21 = vmul.f32 %v4325_v52, %v5867_v60  ;;  %v4375_v9 = vadd.f32 %v1292_v42, %v1278_v24  ;;  %v4385_v27 = vpop.permute.xlu0 %894  ;;  %v5875_v42 = vld [vmem:[#allocation13_spill] sm:$0xff] }
 0x297   : > { %5858 = vst [vmem:[#allocation149_spill] sm:$0xff] %v4327_v46  ;;  %5860 = vst [vmem:[#allocation16_spill] sm:$0xff] %v4334_v1  ;;  %v824_v25 = vmul.f32 %v4039_v62, %v5861_v38  ;;  %v825_v36 = vmul.f32 %v4042_v49, %v5861_v38  ;;  %v4344_v46 = vrot.slane %v773_v0, %v3400_v14  ;;  %v5879_v24 = vld [vmem:[#allocation20_spill] sm:$0xff] }
 0x298   : > { %5862 = vst [vmem:[#allocation32_spill] sm:$0xff] %v4341_v7  ;;  %5865 = vst [vmem:[#allocation21_spill] sm:$0xff] %v4352_v47  ;;  %v4359_v38 = vmul.f32 %v4308_v53, %v5867_v60  ;;  %v958_v49 = vadd.f32 %v956_v8, %v4095_v2  ;;  %v959_v0 = vadd.f32 %v957_v35, %v4102_v13  ;;  %v5872_v53 = vld [vmem:[#allocation18_spill] sm:$0xff]  ;;  %v4383_v35 = vpop.permute.xlu1 %1709 }
 0x299   : > { %5863 = vst [vmem:[#allocation150_spill] sm:$0xff] %v4344_v46  ;;  %5866 = vst [vmem:[#allocation151_spill] sm:$0xff] %v4355_v32  ;;  %v4364_v14 = vrot.slane %v794_v63, %v3397_v11  ;;  %v4373_v45 = vadd.f32 %v1291_v5, %v1277_v58  ;;  %v4379_v47 = vmul.f32 %v4334_v1, %v5872_v53  ;;  %v5882_v11 = vld [vmem:[#allocation26_spill] sm:$0xff] }
 0x29a   : > { %5869 = vst [vmem:[#allocation152_spill] sm:$0xff] %v4367_v29  ;;  %5871 = vst [vmem:[#allocation154_spill] sm:$0xff] %v4375_v9  ;;  %v826_v2 = vadd.f32 %v824_v25, %v4060_v33  ;;  %v827_v13 = vadd.f32 %v825_v36, %v4070_v20  ;;  %v4389_v60 = vmul.f32 %v4344_v46, %v5872_v53  ;;  %v5876_v20 = vld [vmem:[#allocation15_spill] sm:$0xff] }
 0x29b   : > { %5868 = vst [vmem:[#allocation19_spill] sm:$0xff] %v4364_v14  ;;  %5870 = vst [vmem:[#allocation153_spill] sm:$0xff] %v4373_v45  ;;  %v4393_v5 = vmul.f32 %v4133_v10, %v5848_v19  ;;  %v4397_v58 = vmul.f32 %v4194_v40, %v5875_v42  ;;  %v4401_v33 = vmul.f32 %v4197_v56, %v5875_v42  ;;  %v5880_v42 = vld [vmem:[#allocation25_spill] sm:$0xff] }
 0x29c   : > { %5873 = vst [vmem:[#allocation18_spill] sm:$0xff] %v4379_v47  ;;  %5874 = vst [vmem:[#allocation155_spill] sm:$0xff] %v4389_v60  ;;  %v4405_v25 = vmul.f32 %v4242_v34, %v5876_v20  ;;  %v4409_v53 = vmul.f32 %v4245_v6, %v5876_v20  ;;  %v4413_v63 = vmul.f32 %v4364_v14, %v5879_v24  ;;  %v5881_v20 = vld [vmem:[#allocation31_spill] sm:$0xff]  ;;  %v5909_v60 = vld [vmem:[#allocation101_spill] sm:$0xff] }
 0x29d   : > { %v4417_v19 = vmul.f32 %v4367_v29, %v5879_v24  ;;  %v974_v8 = vadd.f32 %v4161_v22, %v958_v49  ;;  %v975_v36 = vadd.f32 %v4165_v30, %v959_v0  ;;  %v1490_v52 = vmul.f32 %v5880_v42, %v4004_v50  ;;  %v4437_v49 = vpop.permute.xlu0 %1095 }
 0x29e   : > { %5877 = vst [vmem:[#allocation13_spill] sm:$0xff] %v4405_v25  ;;  %5878 = vst [vmem:[#allocation15_spill] sm:$0xff] %v4409_v53  ;;  %v1491_v46 = vmul.f32 %v5880_v42, %v4019_v48  ;;  %v1564_v1 = vmul.f32 %v5881_v20, %v4078_v12  ;;  %v1565_v14 = vmul.f32 %v5881_v20, %v4081_v17  ;;  %v5883_v42 = vld [vmem:[#allocation27_spill] sm:$0xff]  ;;  %v5884_v17 = vld [vmem:[#allocation30_spill] sm:$0xff] }
 0x29f   : > { %v4431_v24 = vmul.f32 %v5882_v11, %v4048_v26  ;;  %v4435_v22 = vmul.f32 %v5882_v11, %v4073_v31  ;;  %v4440_v30 = vadd.f32 %v4126_v37, %v826_v2  ;;  %v4443_v0 = vadd.f32 %v4169_v57, %v827_v13  ;;  %v5885_v37 = vld [vmem:[#allocation28_spill] sm:$0xff]  ;;  %v1718_v13 = vpop.permute.xlu1 %1717  ;;  %v5913_v53 = vld [vmem:[#allocation70_spill] sm:$0xff] }
 0x2a0   : > { %v4447_v12 = vmul.f32 %v5883_v42, %v4084_v4  ;;  %v4451_v20 = vmul.f32 %v5883_v42, %v4087_v41  ;;  %v1558_v11 = vmul.f32 %v5884_v17, %v4045_v18  ;;  %v1559_v31 = vmul.f32 %v5884_v17, %v4063_v43  ;;  %v5890_v48 = vld [vmem:[#allocation68_spill] sm:$0xff]  ;;  %v5891_v18 = vld [vmem:[#allocation29_spill] sm:$0xff] }
 0x2a1   : > { %v4459_v2 = vmul.f32 %v5885_v37, %v3901_v54  ;;  %v4463_v57 = vmul.f32 %v5885_v37, %v3904_v59  ;;  %v4466_v26 = vadd.f32 %v4184_v44, %v974_v8  ;;  %v4469_v42 = vadd.f32 %v4285_v51, %v975_v36  ;;  %v5893_v17 = vld [vmem:[#allocation69_spill] sm:$0xff]  ;;  %v5900_v44 = vld [vmem:[#allocation35_spill] sm:$0xff] }
 0x2a2   : > { %v4473_v50 = vmul.f32 %v5891_v18, %v5890_v48  ;;  %v4477_v43 = vmul.f32 %v5891_v18, %v5893_v17  ;;  %v4479_v54 = vadd.f32 %v1564_v1, %v1558_v11  ;;  %v4481_v29 = vadd.f32 %v1565_v14, %v1559_v31  ;;  %v5897_v37 = vld [vmem:[#allocation33_spill] sm:$0xff]  ;;  %v4495_v18 = vpop.permute.xlu0 %1296  ;;  %v5902_v1 = vld [vmem:[#allocation39_spill] sm:$0xff] }
 0x2a3   : > { %5886 = vst [vmem:[#allocation20_spill] sm:$0xff] %v4459_v2  ;;  %5887 = vst [vmem:[#allocation25_spill] sm:$0xff] %v4463_v57  ;;  %v4485_v59 = vmul.f32 %v5897_v37, %v4098_v39  ;;  %v4489_v51 = vmul.f32 %v5897_v37, %v4105_v15  ;;  %v1593_v8 = vmul.f32 %v5900_v44, %v4114_v28  ;;  %v5903_v39 = vld [vmem:[#allocation119_spill] sm:$0xff] }
 0x2a4   : > { %5888 = vst [vmem:[#allocation31_spill] sm:$0xff] %v4466_v26  ;;  %5889 = vst [vmem:[#allocation26_spill] sm:$0xff] %v4469_v42  ;;  %v1594_v36 = vmul.f32 %v5900_v44, %v4117_v55  ;;  %v1607_v14 = vmul.f32 %v5902_v1, %v4120_v3  ;;  %v1608_v31 = vmul.f32 %v5902_v1, %v4133_v10  ;;  %v5904_v15 = vld [vmem:[#allocation111_spill] sm:$0xff]  ;;  %v5908_v10 = vld [vmem:[#allocation113_spill] sm:$0xff] }
 0x2a5   : > { %5892 = vst [vmem:[#allocation27_spill] sm:$0xff] %v4473_v50  ;;  %5894 = vst [vmem:[#allocation30_spill] sm:$0xff] %v4477_v43  ;;  %v1669_v11 = vmul.f32 %v4154_v16, %v4188_v61  ;;  %v1670_v37 = vmul.f32 %v4154_v16, %v5903_v39  ;;  %v1663_v47 = vmul.f32 %v5909_v60, %v5908_v10  ;;  %v5910_v43 = vld [vmem:[#allocation114_spill] sm:$0xff]  ;;  %v5911_v50 = vld [vmem:[#allocation49_spill] sm:$0xff] }
 0x2a6   : > { %5895 = vst [vmem:[#allocation28_spill] sm:$0xff] %v4479_v54  ;;  %5896 = vst [vmem:[#allocation29_spill] sm:$0xff] %v4481_v29  ;;  %v5906_v29 = vld [vmem:[#allocation112_spill] sm:$0xff]  ;;  %v5907_v54 = vld [vmem:[#allocation42_spill] sm:$0xff]  ;;  %v1664_v16 = vmul.f32 %v5909_v60, %v5910_v43  ;;  %v1358_v9 = vmul.f32 %v4341_v7, %v5911_v50  ;;  %v1359_v45 = vmul.f32 %v4355_v32, %v5911_v50  ;;  %v4537_v43 = vpop.permute.xlu0 %1569 }
 0x2a7   : > { %5898 = vst [vmem:[#allocation33_spill] sm:$0xff] %v4485_v59  ;;  %5899 = vst [vmem:[#allocation156_spill] sm:$0xff] %v4489_v51  ;;  %v5905_v51 = vld [vmem:[#allocation48_spill] sm:$0xff]  ;;  %v1157_v3 = vmul.f32 %v4188_v61, %v5907_v54  ;;  %v1158_v1 = vmul.f32 %v5903_v39, %v5907_v54  ;;  %v5915_v61 = vld [vmem:[#allocation46_spill] sm:$0xff]  ;;  %v1737_v54 = vpop.permute.xlu1 %1736 }
 0x2a8   : > { %5901 = vst [vmem:[#allocation35_spill] sm:$0xff] %v4495_v18  ;;  %v4507_v59 = vmul.f32 %v5905_v51, %v5904_v15  ;;  %v4511_v44 = vmul.f32 %v5905_v51, %v5906_v29  ;;  %v5912_v51 = vld [vmem:[#allocation45_spill] sm:$0xff]  ;;  %v4531_v57 = vmul.f32 %v5913_v53, %v5915_v61  ;;  %v5917_v10 = vld [vmem:[#allocation63_spill] sm:$0xff]  ;;  %5919 = vst [vmem:[#allocation42_spill] sm:$0xff] %v4537_v43 }
 0x2a9   : > { %v4527_v25 = vmul.f32 %v5913_v53, %v5912_v51  ;;  %v1496_v39 = vmul.f32 %v5917_v10, %v4039_v62  ;;  %v5918_v2 = vld [vmem:[#allocation91_spill] sm:$0xff]  ;;  %v5921_v42 = vld [vmem:[#allocation82_spill] sm:$0xff]  ;;  %v5923_v32 = vld [vmem:[#allocation52_spill] sm:$0xff]  ;;  %v4549_v53 = vadd.f32 %v1670_v37, %v1664_v16 }
 0x2aa   : > { %5916 = vst [vmem:[#allocation48_spill] sm:$0xff] %v4531_v57  ;;  %v1497_v60 = vmul.f32 %v5917_v10, %v5918_v2  ;;  %v5920_v7 = vld [vmem:[#allocation51_spill] sm:$0xff]  ;;  %v4545_v51 = vmul.f32 %v5921_v42, %v5923_v32  ;;  %v5924_v61 = vld [vmem:[#allocation122_spill] sm:$0xff]  ;;  %v5928_v43 = vld [vmem:[#allocation116_spill] sm:$0xff] }
 0x2ab   : > { %5914 = vst [vmem:[#allocation39_spill] sm:$0xff] %v4527_v25  ;;  %v4541_v50 = vmul.f32 %v5921_v42, %v5920_v7  ;;  %v4547_v25 = vadd.f32 %v1669_v11, %v1663_v47  ;;  %v1159_v57 = vadd.f32 %v1157_v3, %v5924_v61  ;;  %v5925_v62 = vld [vmem:[#allocation123_spill] sm:$0xff]  ;;  %v5927_v10 = vld [vmem:[#allocation74_spill] sm:$0xff]  ;;  %v1360_v42 = vadd.f32 %v1358_v9, %v4359_v38  ;;  %v5931_v61 = vld [vmem:[#allocation125_spill] sm:$0xff] }
 0x2ac   : > { %v1160_v26 = vadd.f32 %v1158_v1, %v5925_v62  ;;  %v5926_v18 = vld [vmem:[#allocation115_spill] sm:$0xff]  ;;  %v1600_v29 = vmul.f32 %v5927_v10, %v5928_v43  ;;  %v1361_v3 = vadd.f32 %v1359_v45, %v4371_v21  ;;  %v5932_v62 = vld [vmem:[#allocation34_spill] sm:$0xff]  ;;  %v1498_v16 = vadd.f32 %v1496_v39, %v1490_v52  ;;  %v5936_v21 = vld [vmem:[#allocation136_spill] sm:$0xff] }
 0x2ad   : > { %5922 = vst [vmem:[#allocation101_spill] sm:$0xff] %v4541_v50  ;;  %v1599_v2 = vmul.f32 %v5927_v10, %v5926_v18  ;;  %v5929_v50 = vld [vmem:[#allocation129_spill] sm:$0xff]  ;;  %v4569_v11 = vmul.f32 %v5932_v62, %v5931_v61  ;;  %v5933_v37 = vld [vmem:[#allocation130_spill] sm:$0xff]  ;;  %v1499_v10 = vadd.f32 %v1497_v60, %v1491_v46  ;;  %v4583_v9 = vmul.f32 %v4383_v35, %v4245_v6  ;;  %v5938_v46 = vld [vmem:[#allocation12_spill] sm:$0xff] }
 0x2ae   : > { %v4559_v15 = vmul.f32 %v5929_v50, %v4194_v40  ;;  %v4563_v47 = vmul.f32 %v5929_v50, %v4197_v56  ;;  %v4573_v1 = vmul.f32 %v5932_v62, %v5933_v37  ;;  %v4575_v40 = vpop.permute.xlu0 %1674  ;;  %v4579_v50 = vmul.f32 %v4383_v35, %v4242_v34  ;;  %v5934_v45 = vld [vmem:[#allocation134_spill] sm:$0xff]  ;;  %v1745_v62 = vpop.permute.xlu1 %1744 }
 0x2af   : > { %v4586_v38 = vmul.f32 %v1718_v13, %v5934_v45  ;;  %v4589_v56 = vmul.f32 %v1718_v13, %v5936_v21  ;;  %v1601_v43 = vadd.f32 %v1599_v2, %v1593_v8  ;;  %v1602_v52 = vadd.f32 %v1600_v29, %v1594_v36  ;;  %v5939_v60 = vld [vmem:[#allocation142_spill] sm:$0xff] }
 0x2b0   : > { %5930 = vst [vmem:[#allocation49_spill] sm:$0xff] %v4563_v47  ;;  %v1175_v39 = vadd.f32 %v5938_v46, %v1159_v57  ;;  %v1176_v18 = vadd.f32 %v5939_v60, %v1160_v26  ;;  %v5940_v47 = vld [vmem:[#allocation96_spill] sm:$0xff]  ;;  %v1376_v6 = vadd.f32 %v4413_v63, %v1360_v42  ;;  %v1506_v13 = vadd.f32 %v4431_v24, %v1498_v16  ;;  %v5941_v57 = vld [vmem:[#allocation137_spill] sm:$0xff]  ;;  %v5942_v36 = vld [vmem:[#allocation138_spill] sm:$0xff] }
 0x2b1   : > { %5935 = vst [vmem:[#allocation70_spill] sm:$0xff] %v4586_v38  ;;  %5937 = vst [vmem:[#allocation63_spill] sm:$0xff] %v4589_v56  ;;  %v1009_v34 = vmul.f32 %v4114_v28, %v5940_v47  ;;  %v1010_v35 = vmul.f32 %v4117_v55, %v5940_v47  ;;  %v1377_v38 = vadd.f32 %v4417_v19, %v1361_v3  ;;  %v5943_v63 = vld [vmem:[#allocation143_spill] sm:$0xff]  ;;  %v5944_v24 = vld [vmem:[#allocation144_spill] sm:$0xff] }
 0x2b2   : > { %v1507_v56 = vadd.f32 %v4435_v22, %v1499_v10  ;;  %v905_v29 = vmul.f32 %v5890_v48, %v4385_v27  ;;  %v906_v26 = vmul.f32 %v5893_v17, %v4385_v27  ;;  %v4605_v2 = vpop.permute.xlu0 %1779  ;;  %v4608_v8 = vmul.f32 %v1737_v54, %v5941_v57  ;;  %v5945_v10 = vld [vmem:[#allocation9_spill] sm:$0xff]  ;;  %v5946_v60 = vld [vmem:[#allocation126_spill] sm:$0xff] }
 0x2b3   : > { %v4611_v47 = vmul.f32 %v1737_v54, %v5942_v36  ;;  %v4614_v19 = vmul.f32 %v1745_v62, %v5943_v63  ;;  %v4617_v42 = vmul.f32 %v1745_v62, %v5944_v24  ;;  %v1609_v22 = vadd.f32 %v1607_v14, %v1601_v43  ;;  %v5947_v36 = vld [vmem:[#allocation21_spill] sm:$0xff]  ;;  %v5948_v62 = vld [vmem:[#allocation78_spill] sm:$0xff]  ;;  %v5949_v43 = vld [vmem:[#allocation79_spill] sm:$0xff] }
 0x2b4   : > { %v1610_v3 = vadd.f32 %v1608_v31, %v1602_v52  ;;  %v4620_v16 = vadd.f32 %v4397_v58, %v1175_v39  ;;  %v4623_v27 = vadd.f32 %v4401_v33, %v1176_v18  ;;  %v1025_v46 = vadd.f32 %v5945_v10, %v1009_v34  ;;  %v5950_v18 = vld [vmem:[#allocation133_spill] sm:$0xff]  ;;  %v5951_v34 = vld [vmem:[#allocation83_spill] sm:$0xff] }
 0x2b5   : > { %v1026_v57 = vadd.f32 %v5946_v60, %v1010_v35  ;;  %v4628_v54 = vadd.f32 %v4348_v23, %v1376_v6  ;;  %v4631_v55 = vadd.f32 %v5947_v36, %v1377_v38  ;;  %v907_v28 = vadd.f32 %v905_v29, %v5948_v62  ;;  %v5952_v52 = vld [vmem:[#allocation135_spill] sm:$0xff]  ;;  %v5954_v36 = vld [vmem:[#allocation10_spill] sm:$0xff]  ;;  %v5955_v60 = vld [vmem:[#allocation80_spill] sm:$0xff] }
 0x2b6   : > { %v908_v14 = vadd.f32 %v906_v26, %v5949_v43  ;;  %v4636_v58 = vadd.f32 %v4447_v12, %v1506_v13  ;;  %v4639_v33 = vadd.f32 %v4451_v20, %v1507_v56  ;;  %v1704_v31 = vmul.f32 %v5951_v34, %v5950_v18  ;;  %v846_v39 = vpop.permute.xlu0 %845  ;;  %v5953_v13 = vld [vmem:[#allocation109_spill] sm:$0xff]  ;;  %v5957_v43 = vld [vmem:[#allocation59_spill] sm:$0xff] }
 0x2b7   : > { %v1705_v6 = vmul.f32 %v5951_v34, %v5952_v52  ;;  %v1106_v23 = vmul.f32 %v5920_v7, %v4437_v49  ;;  %v1107_v38 = vmul.f32 %v5923_v32, %v4437_v49  ;;  %v4650_v35 = vadd.f32 %v4507_v59, %v1609_v22  ;;  %v5956_v22 = vld [vmem:[#allocation84_spill] sm:$0xff]  ;;  %v5958_v34 = vld [vmem:[#allocation127_spill] sm:$0xff] }
 0x2b8   : > { %v4653_v12 = vadd.f32 %v4511_v44, %v1610_v3  ;;  %v856_v56 = vmul.f32 %v4084_v4, %v846_v39  ;;  %v857_v20 = vmul.f32 %v4087_v41, %v846_v39  ;;  %v1210_v29 = vmul.f32 %v5931_v61, %v5953_v13  ;;  %v5959_v52 = vld [vmem:[#allocation60_spill] sm:$0xff]  ;;  %v5960_v61 = vld [vmem:[#allocation85_spill] sm:$0xff]  ;;  %v5966_v32 = vld [vmem:[#allocation35_spill] sm:$0xff] }
 0x2b9   : > { %v1211_v26 = vmul.f32 %v5933_v37, %v5953_v13  ;;  %v1041_v10 = vadd.f32 %v5954_v36, %v1025_v46  ;;  %v1042_v49 = vadd.f32 %v4393_v5, %v1026_v57  ;;  %v923_v59 = vadd.f32 %v5955_v60, %v907_v28  ;;  %v5961_v37 = vld [vmem:[#allocation86_spill] sm:$0xff]  ;;  %v5962_v28 = vld [vmem:[#allocation111_spill] sm:$0xff] }
 0x2ba   : > { %v924_v62 = vadd.f32 %v5956_v22, %v908_v14  ;;  %v858_v44 = vadd.f32 %v856_v56, %v4440_v30  ;;  %v859_v3 = vadd.f32 %v857_v20, %v4443_v0  ;;  %v1523_v39 = vmul.f32 %v5958_v34, %v5957_v43  ;;  %v1045_v36 = vpop.permute.xlu0 %1044  ;;  %v5963_v14 = vld [vmem:[#allocation112_spill] sm:$0xff]  ;;  %v5964_v30 = vld [vmem:[#allocation14_spill] sm:$0xff] }
 0x2bb   : > { %v1524_v18 = vmul.f32 %v5958_v34, %v5959_v52  ;;  %v1108_v13 = vadd.f32 %v1106_v23, %v5960_v61  ;;  %v1109_v46 = vadd.f32 %v1107_v38, %v5961_v37  ;;  %v1055_v60 = vmul.f32 %v5962_v28, %v1045_v36  ;;  %v5965_v0 = vld [vmem:[#allocation148_spill] sm:$0xff]  ;;  %v5967_v61 = vld [vmem:[#allocation31_spill] sm:$0xff]  ;;  %v5968_v37 = vld [vmem:[#allocation26_spill] sm:$0xff] }
 0x2bc   : > { %v925_v5 = vadd.f32 %v923_v59, %v858_v44  ;;  %v926_v57 = vadd.f32 %v924_v62, %v859_v3  ;;  %v1056_v22 = vmul.f32 %v5963_v14, %v1045_v36  ;;  %v1226_v56 = vadd.f32 %v5964_v30, %v1210_v29  ;;  %v5969_v44 = vld [vmem:[#allocation20_spill] sm:$0xff]  ;;  %v5970_v28 = vld [vmem:[#allocation25_spill] sm:$0xff] }
 0x2bd   : > { %v1227_v20 = vadd.f32 %v5965_v0, %v1211_v26  ;;  %v1307_v7 = vmul.f32 %v5943_v63, %v5966_v32  ;;  %v1308_v34 = vmul.f32 %v5944_v24, %v5966_v32  ;;  %v1057_v59 = vadd.f32 %v1055_v60, %v1041_v10  ;;  %v5971_v14 = vld [vmem:[#allocation88_spill] sm:$0xff]  ;;  %v5972_v30 = vld [vmem:[#allocation89_spill] sm:$0xff] }
 0x2be   : > { %v992_v23 = vadd.f32 %v5967_v61, %v925_v5  ;;  %v993_v38 = vadd.f32 %v5968_v37, %v926_v57  ;;  %v1058_v62 = vadd.f32 %v1056_v22, %v1042_v49  ;;  %v1531_v3 = vadd.f32 %v5969_v44, %v1523_v39  ;;  %v1246_v0 = vpop.permute.xlu0 %1245  ;;  %v5973_v49 = vld [vmem:[#allocation13_spill] sm:$0xff]  ;;  %v5974_v39 = vld [vmem:[#allocation15_spill] sm:$0xff] }
 0x2bf   : > { %v1532_v36 = vadd.f32 %v5970_v28, %v1524_v18  ;;  %v1124_v29 = vadd.f32 %v5971_v14, %v1108_v13  ;;  %v1125_v26 = vadd.f32 %v5972_v30, %v1109_v46  ;;  %v1256_v48 = vmul.f32 %v5934_v45, %v1246_v0  ;;  %v5975_v18 = vld [vmem:[#allocation153_spill] sm:$0xff]  ;;  %v5976_v13 = vld [vmem:[#allocation154_spill] sm:$0xff]  ;;  %v5977_v61 = vld [vmem:[#allocation43_spill] sm:$0xff] }
 0x2c0   : > { %v1059_v17 = vadd.f32 %v1057_v59, %v992_v23  ;;  %v1060_v63 = vadd.f32 %v1058_v62, %v993_v38  ;;  %v1257_v32 = vmul.f32 %v5936_v21, %v1246_v0  ;;  %v1706_v5 = vadd.f32 %v1704_v31, %v4569_v11  ;;  %v5978_v23 = vld [vmem:[#allocation139_spill] sm:$0xff]  ;;  %v5979_v38 = vld [vmem:[#allocation44_spill] sm:$0xff]  ;;  %v5981_v31 = vld [vmem:[#allocation30_spill] sm:$0xff] }
 0x2c1   : > { %v1707_v10 = vadd.f32 %v1705_v6, %v4573_v1  ;;  %v1242_v57 = vadd.f32 %v5973_v49, %v1226_v56  ;;  %v1243_v60 = vadd.f32 %v5974_v39, %v1227_v20  ;;  %v1309_v28 = vadd.f32 %v1307_v7, %v5975_v18  ;;  %v5980_v11 = vld [vmem:[#allocation27_spill] sm:$0xff]  ;;  %v5986_v49 = vld [vmem:[#allocation128_spill] sm:$0xff]  ;;  %v5987_v39 = vld [vmem:[#allocation18_spill] sm:$0xff] }
 0x2c2   : > { %v1310_v14 = vadd.f32 %v1308_v34, %v5976_v13  ;;  %v1126_v46 = vadd.f32 %v1124_v29, %v1059_v17  ;;  %v1127_v22 = vadd.f32 %v1125_v26, %v1060_v63  ;;  %v1628_v37 = vmul.f32 %v5978_v23, %v5977_v61  ;;  %v4699_v62 = vpop.permute.xlu0 %1449  ;;  %v5982_v17 = vld [vmem:[#allocation104_spill] sm:$0xff]  ;;  %v5983_v63 = vld [vmem:[#allocation42_spill] sm:$0xff]  ;;  %v5984_v29 = vld [vmem:[#allocation105_spill] sm:$0xff] }
 0x2c3   : > { %v1629_v59 = vmul.f32 %v5978_v23, %v5979_v38  ;;  %v1539_v1 = vadd.f32 %v5980_v11, %v1531_v3  ;;  %v1540_v6 = vadd.f32 %v5981_v31, %v1532_v36  ;;  %v1258_v20 = vadd.f32 %v1256_v48, %v1242_v57  ;;  %v5985_v26 = vld [vmem:[#allocation124_spill] sm:$0xff]  ;;  %v5988_v18 = vld [vmem:[#allocation155_spill] sm:$0xff]  ;;  %v5993_v11 = vld [vmem:[#allocation141_spill] sm:$0xff] }
 0x2c4   : > { %v1193_v56 = vadd.f32 %v4620_v16, %v1126_v46  ;;  %v1194_v7 = vadd.f32 %v4623_v27, %v1127_v22  ;;  %v1259_v34 = vadd.f32 %v1257_v32, %v1243_v60  ;;  %v1572_v44 = vmul.f32 %v5983_v63, %v5982_v17  ;;  %v5989_v48 = vld [vmem:[#allocation39_spill] sm:$0xff]  ;;  %v5990_v57 = vld [vmem:[#allocation48_spill] sm:$0xff]  ;;  %v5992_v22 = vld [vmem:[#allocation149_spill] sm:$0xff] }
 0x2c5   : > { %v1573_v30 = vmul.f32 %v5983_v63, %v5984_v29  ;;  %v1677_v0 = vmul.f32 %v4575_v40, %v5985_v26  ;;  %v1678_v3 = vmul.f32 %v4575_v40, %v5986_v49  ;;  %v1325_v36 = vadd.f32 %v5987_v39, %v1309_v28  ;;  %v5991_v46 = vld [vmem:[#allocation140_spill] sm:$0xff]  ;;  %v5995_v28 = vld [vmem:[#allocation65_spill] sm:$0xff] }
 0x2c6   : > { %v1326_v16 = vadd.f32 %v5988_v18, %v1310_v14  ;;  %v1260_v13 = vadd.f32 %v1258_v20, %v1193_v56  ;;  %v1261_v27 = vadd.f32 %v1259_v34, %v1194_v7  ;;  %v1636_v32 = vadd.f32 %v5989_v48, %v1628_v37  ;;  %v1543_v63 = vpop.permute.xlu0 %1542  ;;  %v5994_v40 = vld [vmem:[#allocation64_spill] sm:$0xff]  ;;  %v5997_v7 = vld [vmem:[#allocation29_spill] sm:$0xff] }
 0x2c7   : > { %v1637_v60 = vadd.f32 %v5990_v57, %v1629_v59  ;;  %v1733_v23 = vmul.f32 %v5992_v22, %v5991_v46  ;;  %v1734_v31 = vmul.f32 %v5992_v22, %v5993_v11  ;;  %v1545_v45 = vmul.f32 %v1543_v63, %v5994_v40  ;;  %v5996_v14 = vld [vmem:[#allocation28_spill] sm:$0xff]  ;;  %v6043_v49 = vld [vmem:[#allocation53_spill] sm:$0xff] }
 0x2c8   : > { %v1327_v24 = vadd.f32 %v1325_v36, %v1260_v13  ;;  %v1328_v21 = vadd.f32 %v1326_v16, %v1261_v27  ;;  %v1546_v39 = vmul.f32 %v1543_v63, %v5995_v28  ;;  %v1574_v56 = vadd.f32 %v1572_v44, %v5996_v14  ;;  %v5998_v13 = vld [vmem:[#allocation101_spill] sm:$0xff]  ;;  %v6006_v14 = vld [vmem:[#allocation7_spill] sm:$0xff]  ;;  %v6051_v17 = vld [vmem:[#allocation56_spill] sm:$0xff] }
 0x2c9   : > { %v1575_v20 = vadd.f32 %v1573_v30, %v5997_v7  ;;  %v1679_v37 = vadd.f32 %v1677_v0, %v4547_v25  ;;  %v1680_v59 = vadd.f32 %v1678_v3, %v4549_v53  ;;  %v1547_v48 = vadd.f32 %v1545_v45, %v1539_v1  ;;  %v5999_v45 = vld [vmem:[#allocation33_spill] sm:$0xff]  ;;  %v6007_v7 = vld [vmem:[#allocation8_spill] sm:$0xff] }
 0x2ca   : > { %v1394_v34 = vadd.f32 %v4628_v54, %v1327_v24  ;;  %v1395_v18 = vadd.f32 %v4631_v55, %v1328_v21  ;;  %v1548_v57 = vadd.f32 %v1546_v39, %v1540_v6  ;;  %v1714_v36 = vadd.f32 %v4579_v50, %v1706_v5  ;;  %v1648_v0 = vpop.permute.xlu0 %1647  ;;  %v6000_v50 = vld [vmem:[#allocation156_spill] sm:$0xff]  ;;  %v6001_v5 = vld [vmem:[#allocation49_spill] sm:$0xff] }
 0x2cb   : > { %v1715_v16 = vadd.f32 %v4583_v9, %v1707_v10  ;;  %v1644_v27 = vadd.f32 %v5998_v13, %v1636_v32  ;;  %v1645_v44 = vadd.f32 %v4545_v51, %v1637_v60  ;;  %v1549_v25 = vadd.f32 %v1547_v48, %v4636_v58  ;;  %v6002_v58 = vld [vmem:[#allocation47_spill] sm:$0xff]  ;;  %v6004_v63 = vld [vmem:[#allocation5_spill] sm:$0xff]  ;;  %v6009_v48 = vld [vmem:[#allocation22_spill] sm:$0xff] }
 0x2cc   : > { %v1396_v22 = vmul.f32 0.2, %v1394_v34  ;;  %v1397_v30 = vmul.f32 0.2, %v1395_v18  ;;  %v1550_v53 = vadd.f32 %v1548_v57, %v4639_v33  ;;  %v1741_v24 = vadd.f32 %v4608_v8, %v1733_v23  ;;  %v6003_v33 = vld [vmem:[#allocation50_spill] sm:$0xff] }
 0x2cd   : > { %v1742_v55 = vadd.f32 %v4611_v47, %v1734_v31  ;;  %v1582_v21 = vadd.f32 %v5999_v45, %v1574_v56  ;;  %v1583_v54 = vadd.f32 %v6000_v50, %v1575_v20  ;;  %v1687_v9 = vadd.f32 %v4559_v15, %v1679_v37  ;;  %v6005_v23 = vld [vmem:[#allocation6_spill] sm:$0xff] }
 0x2ce   : > { %v1688_v10 = vadd.f32 %v6001_v5, %v1680_v59  ;;  %v1398_v51 = vmax.f32 %v1394_v34, %v1396_v22  ;;  %v1399_v1 = vmax.f32 %v1395_v18, %v1397_v30  ;;  %v1650_v32 = vmul.f32 %v1648_v0, %v6002_v58  ;;  %v6008_v59 = vld [vmem:[#allocation117_spill] sm:$0xff]  ;;  %v1753_v22 = vpop.permute.xlu0 %1752  ;;  %v6010_v30 = vld [vmem:[#allocation23_spill] sm:$0xff] }
 0x2cf   : > { %v1584_v6 = vadd.f32 %v1582_v21, %v1549_v25  ;;  %v1585_v3 = vadd.f32 %v1583_v54, %v1550_v53  ;;  %v1651_v60 = vmul.f32 %v1648_v0, %v6003_v33 }
 0x2d0   : > { %v1409_v8 = vrot.slane %v1398_v51, %v6004_v63  ;;  %v1413_v47 = vrot.slane %v1399_v1, %v6004_v63  ;;  %v1423_v31 = vrot.slane %v1398_v51, %v6005_v23  ;;  %v1427_v39 = vrot.slane %v1399_v1, %v6005_v23 }
 0x2d1   : > { %v1439_v15 = vrot.slane %v1398_v51, %v6006_v14  ;;  %v1443_v56 = vrot.slane %v1399_v1, %v6006_v14  ;;  %v1455_v20 = vrot.slane %v1398_v51, %v6007_v7  ;;  %v1459_v37 = vrot.slane %v1399_v1, %v6007_v7 }
 0x2d2   : > { %v1414_v34 = vmul.f32 %v1409_v8, %v6008_v59  ;;  %v1415_v18 = vmul.f32 %v1413_v47, %v6008_v59  ;;  %v1428_v57 = vmul.f32 %v1423_v31, %v6009_v48  ;;  %v1429_v13 = vmul.f32 %v1427_v39, %v6009_v48  ;;  %v6011_v8 = vld [vmem:[#allocation16_spill] sm:$0xff]  ;;  %v6012_v31 = vld [vmem:[#allocation150_spill] sm:$0xff] }
 0x2d3   : > { %v1444_v25 = vmul.f32 %v1439_v15, %v6010_v30  ;;  %v1445_v53 = vmul.f32 %v1443_v56, %v6010_v30  ;;  %v1652_v0 = vadd.f32 %v1650_v32, %v1644_v27  ;;  %v1653_v45 = vadd.f32 %v1651_v60, %v1645_v44  ;;  %v6013_v27 = vld [vmem:[#allocation70_spill] sm:$0xff]  ;;  %v6014_v32 = vld [vmem:[#allocation63_spill] sm:$0xff] }
 0x2d4   : > { %v1430_v21 = vadd.f32 %v1428_v57, %v1414_v34  ;;  %v1431_v50 = vadd.f32 %v1429_v13, %v1415_v18  ;;  %v1619_v54 = vadd.f32 %v4650_v35, %v1584_v6  ;;  %v1620_v5 = vadd.f32 %v4653_v12, %v1585_v3  ;;  %v6015_v18 = vld [vmem:[#allocation24_spill] sm:$0xff] }
 0x2d5   : > { %v1460_v51 = vmul.f32 %v1455_v20, %v4699_v62  ;;  %v1461_v1 = vmul.f32 %v1459_v37, %v4699_v62  ;;  %v1755_v47 = vmul.f32 %v1753_v22, %v6011_v8  ;;  %v1756_v39 = vmul.f32 %v1753_v22, %v6012_v31  ;;  %v6037_v8 = vld [vmem:[#allocation11_spill] sm:$0xff] }
 0x2d6   : > { %v1446_v59 = vadd.f32 %v1444_v25, %v1430_v21  ;;  %v1447_v15 = vadd.f32 %v1445_v53, %v1431_v50  ;;  %v1654_v48 = vadd.f32 %v1652_v0, %v1619_v54  ;;  %v1655_v56 = vadd.f32 %v1653_v45, %v1620_v5  ;;  %v6017_v0 = vld [vmem:[#allocation151_spill] sm:$0xff] }
 0x2d7   : > { %v1722_v44 = vadd.f32 %v6013_v27, %v1714_v36  ;;  %v1723_v60 = vadd.f32 %v6014_v32, %v1715_v16  ;;  %v1749_v35 = vadd.f32 %v4614_v19, %v1741_v24  ;;  %v1750_v12 = vadd.f32 %v4617_v42, %v1742_v55  ;;  %v1766_v19 = vpop.permute.xlu1 %1765  ;;  %v6016_v55 = vld [vmem:[#allocation32_spill] sm:$0xff]  ;;  %v6018_v50 = vld [vmem:[#allocation147_spill] sm:$0xff] }
 0x2d8   : > { %v1462_v6 = vadd.f32 %v1460_v51, %v1446_v59  ;;  %v1463_v3 = vadd.f32 %v1461_v1, %v1447_v15  ;;  %v1689_v20 = vadd.f32 %v1687_v9, %v1654_v48  ;;  %v1690_v62 = vadd.f32 %v1688_v10, %v1655_v56  ;;  %v6019_v5 = vld [vmem:[#allocation19_spill] sm:$0xff]  ;;  %v6021_v59 = vld [vmem:[#allocation152_spill] sm:$0xff] }
 0x2d9   : > { %v1757_v37 = vadd.f32 %v1755_v47, %v1749_v35  ;;  %v1758_v34 = vadd.f32 %v1756_v39, %v1750_v12  ;;  %v1768_v54 = vmul.f32 %v1766_v19, %v6018_v50  ;;  %v1782_v51 = vmul.f32 %v4605_v2, %v6019_v5  ;;  %v6020_v47 = vld [vmem:[#allocation17_spill] sm:$0xff]  ;;  %v6023_v12 = vld [vmem:[#allocation146_spill] sm:$0xff] }
 0x2da   : > { %v1470_v57 = vadd.f32 %v6015_v18, %v1462_v6  ;;  %v1471_v13 = vadd.f32 %v6015_v18, %v1463_v3  ;;  %v1724_v22 = vadd.f32 %v1722_v44, %v1689_v20  ;;  %v1725_v30 = vadd.f32 %v1723_v60, %v1690_v62  ;;  %v6022_v60 = vld [vmem:[#allocation145_spill] sm:$0xff] }
 0x2db   : > { %v1772_v42 = vpop.permute.xlu1 %1771  ;;  %v1769_v39 = vmul.f32 %v1766_v19, %v6020_v47  ;;  %v1783_v15 = vmul.f32 %v4605_v2, %v6021_v59  ;;  %v6029_v19 = vmov 1  }
 0x2dc   : > { %v2964_v25 = vmul.f32 -1.442695, %v1470_v57  ;;  %v2965_v36 = vmul.f32 -1.442695, %v1471_v13  ;;  %v1759_v53 = vadd.f32 %v1757_v37, %v1724_v22  ;;  %v1760_v16 = vadd.f32 %v1758_v34, %v1725_v30  ;;  %v1864_v13 = vld [vmem:[%s5457_s8] sm:$0xf] }
 0x2dd   : > { %v1774_v9 = vmul.f32 %v1772_v42, %v6016_v55  ;;  %v1775_v45 = vmul.f32 %v1772_v42, %v6017_v0  ;;  %v2974_v22 = vld [vmem:[%s5457_s8 + $0x4] sm:$0xf]  ;;  %v2977_v30 = vld [vmem:[%s5457_s8 + $0x10] sm:$0xf] }
 0x2de   : > { %3172 = vpow2.f32 %v2964_v25  ;;  %v6027_v25 = vmov 2   ;;  %v4842_v42 = vld [vmem:[%s5458_s9 + $0x10] sm:$0xf] }
 0x2df   : > { %3174 = vpow2.f32 %v2965_v36  ;;  %v1776_v48 = vadd.f32 %v1774_v9, %v1768_v54  ;;  %v1777_v56 = vadd.f32 %v1775_v45, %v1769_v39  ;;  %v1788_v27 = vpop.permute.xlu1 %1787  ;;  %v4828_v36 = vld [vmem:[%s5457_s8 + $0x1c] sm:$0xf]  ;;  %v2976_v9 = vld [vmem:[%s5457_s8 + $0xc] sm:$0xf]  ;;  %v2979_v45 = vld [vmem:[%s5457_s8 + $0x18] sm:$0xf] }
 0x2e0   : > { %v1790_v35 = vmul.f32 %v1788_v27, %v6022_v60  ;;  %v1791_v6 = vmul.f32 %v1788_v27, %v6023_v12  ;;  %v4868_v54 = vld [vmem:[%s5458_s9 + $0xc] sm:$0xf]  ;;  %v4893_v39 = vld [vmem:[%s5458_s9 + $0x1c] sm:$0xf]  ;;  %v6035_v12 = vld [vmem:[#allocation41_spill] sm:$0xff] }
 0x2e1   : > { %v1784_v44 = vadd.f32 %v1782_v51, %v1776_v48  ;;  %v1785_v32 = vadd.f32 %v1783_v15, %v1777_v56  ;;  %v4876_v51 = vld [vmem:[%s5458_s9 + $0x18] sm:$0xf]  ;;  %6032 = vst [vmem:[#allocation122_spill] sm:$0xff] %v4893_v39  ;;  %v4902_v15 = vld [vmem:[%s5457_s8 + $0x20] sm:$0xf] }
 0x2e2   : > { %6031 = vst [vmem:[#allocation82_spill] sm:$0xff] %v4876_v51  ;;  %v4909_v48 = vld [vmem:[%s5458_s9 + $0x8] sm:$0xf] }
 0x2e3   : > { %v1792_v3 = vadd.f32 %v1790_v35, %v1784_v44  ;;  %v1793_v20 = vadd.f32 %v1791_v6, %v1785_v32 }
 0x2e5   : > { %v1794_v62 = vadd.f32 %v1792_v3, %v1759_v53  ;;  %v1795_v34 = vadd.f32 %v1793_v20, %v1760_v16  ;;  %v6028_v53 = vmov 3   ;;  %v4835_v16 = vld [vmem:[%s5458_s9 + $0x4] sm:$0xf] }
 0x2e8   : > { %v3173_v24 = vpop.eup %3172 }
 0x2e9   : > { %v3175_v10 = vpop.eup %3174  ;;  %v1478_v21 = vadd.f32 1.0, %v3173_v24  ;;  %v2975_v24 = vld [vmem:[%s5457_s8 + $0x8] sm:$0xf] }
 0x2ea   : > { %v1479_v1 = vadd.f32 1.0, %v3175_v10  ;;  %v6030_v10 = vmov 0  }
 0x2eb   : > { %3176 = vrcp.f32 %v1478_v21  ;;  %v4861_v21 = vld [vmem:[%s5458_s9] sm:$0xf] }
 0x2ec   : > { %3178 = vrcp.f32 %v1479_v1  ;;  %v2978_v1 = vld [vmem:[%s5457_s8 + $0x14] sm:$0xf] }
 0x2f5   : > { %v3177_v37 = vpop.eup %3176 }
 0x2f6   : > { %v3179_v18 = vpop.eup %3178  ;;  %v4779_v57 = vmul.f32 %v3177_v37, %v1794_v62 }
 0x2f7   : > { %v4781_v2 = vmul.f32 %v3179_v18, %v1795_v34 }
 0x2f8   : > { %1798 = vrot.lane.b32.xlu1 %v4779_v57, %s6024_s19 }
 0x2f9   : > { %1800 = vrot.lane.b32.xlu0 %v4781_v2, %s6024_s19 }
 0x2fc   : > { %1806 = vrot.lane.b32.xlu1 %v4779_v57, %s6025_s20 }
 0x2fd   : > { %1808 = vrot.lane.b32.xlu0 %v4781_v2, %s6025_s20  ;;  %s404_s20 = sand.u32 1, %s3239_s22  }
 0x300   : > { %1814 = vrot.lane.b32.xlu1 %v4779_v57, %s5700_s16 }
 0x301   : > { %1816 = vrot.lane.b32.xlu0 %v4781_v2, %s5700_s16  ;;  %s2996_s16 = sshll.u32 %s3350_s25, 7  ;;  %s3263_s25 = smov [#allocation2]  }
 0x302   : > { %s5405_s4 = scalar_lea.hbm %s5461_s12, %s2996_s16 }
 0x304   : > { %1822 = vrot.lane.b32.xlu1 %v4779_v57, %s5701_s18 }
 0x305   : > { %1824 = vrot.lane.b32.xlu0 %v4781_v2, %s5701_s18 }
 0x308   : > { %1832 = vrot.lane.b32.xlu1 %v4779_v57, %s6026_s0 }
 0x309   : > { %1834 = vrot.lane.b32.xlu0 %v4781_v2, %s6026_s0  ;;  %s2998_s0 = spop %2997 }
 0x30c   : > { %1840 = vrot.lane.b32.xlu1 %v4779_v57, %s5702_s29 }
 0x30d   : > { %1842 = vrot.lane.b32.xlu0 %v4781_v2, %s5702_s29 }
 0x310   : > { %1848 = vrot.lane.b32.xlu1 %v4779_v57, %s5703_s15 }
 0x311   : > { %1850 = vrot.lane.b32.xlu0 %v4781_v2, %s5703_s15 }
 0x314   : > { %1856 = vrot.lane.b32.xlu1 %v4779_v57, %s5704_s17 }
 0x315   : > { %1858 = vrot.lane.b32.xlu0 %v4781_v2, %s5704_s17 }
 0x318   : > { %1867 = vperm.xlu1 %3115, %v1864_v13  }
 0x319   : > { %1978 = vperm.xlu0 %3113, %v2974_v22  }
 0x31c   : > { %3116 = vset.pattern.permute.xlu1 %v6027_v25 }
 0x31d   : > { %2179 = vperm.xlu0 %3113, %v2977_v30   ;;  %1897 = vperm.xlu1 %3116, %v1864_v13  }
 0x321   : > { %2380 = vperm.xlu0 %3113, %v4828_v36   ;;  %3117 = vset.pattern.permute.xlu1 %v6028_v53 }
 0x322   : > { %1913 = vperm.xlu1 %3117, %v1864_v13  }
 0x325   : > { %2522 = vperm.xlu0 %3113, %v4835_v16  }
 0x326   : > { %3118 = vset.pattern.permute.xlu1 %v6029_v19 }
 0x327   : > { %1946 = vperm.xlu1 %3118, %v2974_v22  }
 0x329   : > { %2627 = vperm.xlu0 %3113, %v4842_v42  }
 0x32b   : > { %3119 = vset.pattern.permute.xlu1 %v6027_v25 }
 0x32c   : > { %1962 = vperm.xlu1 %3119, %v2974_v22  }
 0x32d   : > { %3153 = vset.pattern.permute.xlu0 %v6029_v19 }
 0x32e   : > { %1881 = vperm.xlu0 %3153, %v1864_v13  }
 0x330   : > { %3120 = vset.pattern.permute.xlu1 %v6030_v10 }
 0x331   : > { %1999 = vperm.xlu1 %3120, %v2975_v24  }
 0x332   : > { %2080 = vperm.xlu0 %3153, %v2976_v9  }
 0x335   : > { %3121 = vset.pattern.permute.xlu1 %v6029_v19 }
 0x336   : > { %2281 = vperm.xlu0 %3153, %v2979_v45   ;;  %2013 = vperm.xlu1 %3121, %v2975_v24  }
 0x33a   : > { %2473 = vperm.xlu0 %3153, %v4861_v21   ;;  %3122 = vset.pattern.permute.xlu1 %v6028_v53 }
 0x33b   : > { %2045 = vperm.xlu1 %3122, %v2975_v24  }
 0x33e   : > { %2576 = vperm.xlu0 %3153, %v4868_v54  }
 0x33f   : > { %3123 = vset.pattern.permute.xlu1 %v6030_v10 }
 0x340   : > { %2066 = vperm.xlu1 %3123, %v2976_v9  }
 0x342   : > { %2611 = vperm.xlu0 %3153, %v4842_v42  }
 0x344   : > { %3124 = vset.pattern.permute.xlu1 %v6027_v25 }
 0x345   : > { %2096 = vperm.xlu1 %3124, %v2976_v9  }
 0x346   : > { %2681 = vperm.xlu0 %3153, %v4876_v51  }
 0x349   : > { %3125 = vset.pattern.permute.xlu1 %v6028_v53 }
 0x34a   : > { %3156 = vset.pattern.permute.xlu0 %v6030_v10  ;;  %2112 = vperm.xlu1 %3125, %v2976_v9   ;;  %v587_v9 = vstv %s2998_s0  ;;  %s2945_s0 = sshll.u32 %s404_s20, 3 }
 0x34b   : > { %1932 = vperm.xlu0 %3156, %v2974_v22   ;;  %v588_v59 = vsub.f32 %v6037_v8, %v587_v9  ;;  %s406_s18 = scalar_lea.vmem [#allocation2], %s2945_s0 }
 0x34c   : > { %s2882_s28 = sshll.u32 %s406_s18, 4  ;;  %s5407_s28 = int_to_ptr.vmem [resolvable:$true] %s2882_s28 }
 0x34e   : > { %3126 = vset.pattern.permute.xlu1 %v6029_v19 }
 0x34f   : > { %2133 = vperm.xlu0 %3156, %v2977_v30   ;;  %2147 = vperm.xlu1 %3126, %v2977_v30  }
 0x353   : > { %2334 = vperm.xlu0 %3156, %v4828_v36   ;;  %3127 = vset.pattern.permute.xlu1 %v6027_v25 }
 0x354   : > { %2163 = vperm.xlu1 %3127, %v2977_v30  }
 0x357   : > { %2500 = vperm.xlu0 %3156, %v4835_v16  }
 0x358   : > { %3128 = vset.pattern.permute.xlu1 %v6030_v10 }
 0x359   : > { %2200 = vperm.xlu1 %3128, %v2978_v1  }
 0x35b   : > { %2710 = vperm.xlu0 %3156, %v4893_v39  }
 0x35d   : > { %3129 = vset.pattern.permute.xlu1 %v6029_v19 }
 0x35e   : > { %2214 = vperm.xlu1 %3129, %v2978_v1  }
 0x35f   : > { %3159 = vset.pattern.permute.xlu0 %v6027_v25 }
 0x360   : > { %2029 = vperm.xlu0 %3159, %v2975_v24  }
 0x362   : > { %3130 = vset.pattern.permute.xlu1 %v6028_v53 }
 0x363   : > { %2246 = vperm.xlu1 %3130, %v2978_v1  }
 0x364   : > { %2230 = vperm.xlu0 %3159, %v2978_v1  }
 0x367   : > { %3131 = vset.pattern.permute.xlu1 %v6030_v10 }
 0x368   : > { %2431 = vperm.xlu0 %3159, %v4902_v15   ;;  %2267 = vperm.xlu1 %3131, %v2979_v45  }
 0x36a   : > { %v1799_v56 = vpop.permute.xlu1 %1798 }
 0x36b   : > { %v1801_v27 = vpop.permute.xlu0 %1800 }
 0x36c   : > { %2549 = vperm.xlu0 %3159, %v4909_v48   ;;  %3132 = vset.pattern.permute.xlu1 %v6027_v25  ;;  %v1802_v55 = vsel %vm610_vm3, %v1799_v56, %v1801_v27  ;;  %v1803_v11 = vsel %vm610_vm3, %v1801_v27, %v1799_v56  ;;  %v6044_v56 = vld [vmem:[#allocation54_spill] sm:$0xff] }
 0x36d   : > { %2297 = vperm.xlu1 %3132, %v2979_v45   ;;  %v1804_v26 = vmul.f32 %v1803_v11, %v6043_v49 }
 0x36e   : > { %v1807_v44 = vpop.permute.xlu1 %1806 }
 0x36f   : > { %v1809_v32 = vpop.permute.xlu0 %1808  ;;  %v1919_v33 = vrot.slane %v1804_v26, %v6007_v7  ;;  %v1903_v52 = vrot.slane %v1804_v26, %v6006_v14 }
 0x370   : > { %2619 = vperm.xlu0 %3159, %v4842_v42   ;;  %v1811_v24 = vsel %vm631_vm2, %v1809_v32, %v1807_v44 }
 0x371   : > { %3133 = vset.pattern.permute.xlu1 %v6028_v53 }
 0x372   : > { %2313 = vperm.xlu1 %3133, %v2979_v45   ;;  %v4916_v35 = vpop.permute.xlu1 %1814  ;;  %v6034_v45 = vld [vmem:[#allocation40_spill] sm:$0xff] }
 0x373   : > { %v4918_v6 = vpop.permute.xlu0 %1816  ;;  %v4949_v1 = vmul.f32 %v1811_v24, %v6034_v45  ;;  %v6040_v45 = vld [vmem:[#allocation38_spill] sm:$0xff] }
 0x374   : > { %2724 = vperm.xlu0 %3159, %v4893_v39  }
 0x375   : > { %v1984_v47 = vrot.slane %v4949_v1, %v6007_v7 }
 0x376   : > { %3134 = vset.pattern.permute.xlu1 %v6029_v19  ;;  %v4924_v3 = vpop.permute.xlu1 %1822 }
 0x377   : > { %2348 = vperm.xlu1 %3134, %v4828_v36   ;;  %v4927_v20 = vpop.permute.xlu0 %1824 }
 0x378   : > { %3164 = vset.pattern.permute.xlu0 %v6028_v53 }
 0x379   : > { %2732 = vperm.xlu0 %3164, %v4893_v39  }
 0x37a   : > { %v4932_v62 = vpop.permute.xlu1 %1832 }
 0x37b   : > { %3135 = vset.pattern.permute.xlu1 %v6027_v25  ;;  %v4935_v37 = vpop.permute.xlu0 %1834 }
 0x37c   : > { %2364 = vperm.xlu1 %3135, %v4828_v36   ;;  %v1810_v36 = vsel %vm631_vm2, %v1807_v44, %v1809_v32  ;;  %v6039_v32 = vld [vmem:[#allocation37_spill] sm:$0xff] }
 0x37d   : > { %3167 = vset.pattern.permute.xlu0 %v6030_v10  ;;  %v4952_v60 = vmul.f32 %v1810_v36, %v6035_v12  ;;  %v4965_v24 = vmul.f32 %v4779_v57, %v6039_v32  ;;  %v4969_v12 = vmul.f32 %v4781_v2, %v6040_v45  ;;  %v589_v36 = vmul.f32 1.442695, %v588_v59  ;;  %v6041_v2 = vld [vmem:[#allocation73_spill] sm:$0xff]  ;;  %v6042_v59 = vld [vmem:[#allocation75_spill] sm:$0xff] }
 0x37e   : > { %v4939_v34 = vpop.permute.xlu1 %1840 }
 0x37f   : > { %v4941_v18 = vpop.permute.xlu0 %1842  ;;  %v1988_v50 = vrot.slane %v4952_v60, %v6007_v7  ;;  %3180 = vpow2.f32 %v589_v36  ;;  %v1956_v58 = vrot.slane %v4952_v60, %v6005_v23 }
 0x380   : > { %3136 = vset.pattern.permute.xlu1 %v6030_v10 }
 0x381   : > { %2401 = vperm.xlu1 %3136, %v4902_v15  }
 0x382   : > { %v1849_v13 = vpop.permute.xlu1 %1848 }
 0x383   : > { %v1851_v22 = vpop.permute.xlu0 %1850 }
 0x384   : > { %v1852_v8 = vsel %vm756_vm8, %v1849_v13, %v1851_v22  ;;  %v1853_v9 = vsel %vm756_vm8, %v1851_v22, %v1849_v13  ;;  %v2185_v13 = vrot.slane %v4965_v24, %v6007_v7  ;;  %v2189_v22 = vrot.slane %v4969_v12, %v6007_v7 }
 0x385   : > { %3137 = vset.pattern.permute.xlu1 %v6029_v19  ;;  %v4984_v45 = vmul.f32 %v1852_v8, %v6041_v2  ;;  %v4987_v46 = vmul.f32 %v1853_v9, %v6042_v59 }
 0x386   : > { %2415 = vperm.xlu1 %3137, %v4902_v15   ;;  %v4954_v31 = vpop.permute.xlu1 %1856 }
 0x387   : > { %6036 = vst [vmem:[#allocation123_spill] sm:$0xff] %v4954_v31  ;;  %v4957_v5 = vpop.permute.xlu0 %1858  ;;  %v2386_v9 = vrot.slane %v4984_v45, %v6007_v7  ;;  %v2390_v2 = vrot.slane %v4987_v46, %v6007_v7 }
 0x388   : > { %6038 = vst [vmem:[#allocation74_spill] sm:$0xff] %v4957_v5 }
 0x389   : > { %v5015_v38 = vpop.eup %3180 }
 0x38a   : > { %3138 = vset.pattern.permute.xlu1 %v6028_v53  ;;  %6048 = vst [vmem:[#allocation142_spill] sm:$0xff] %v5015_v38 }
 0x397   : > { %v1868_v44 = vpop.permute.xlu1 %1867 }
 0x398   : > { %v1979_v0 = vpop.permute.xlu0 %1978 }
 0x399   : > { %v4979_v57 = vmul.f32 %v1984_v47, %v1979_v0  ;;  %v4981_v32 = vmul.f32 %v1988_v50, %v1979_v0  ;;  %v1805_v47 = vmul.f32 %v1802_v55, %v6044_v56 }
 0x39b   : > { %v1923_v36 = vrot.slane %v1805_v47, %v6007_v7  ;;  %v1891_v40 = vrot.slane %v1805_v47, %v6005_v23 }
 0x39c   : > { %v2180_v27 = vpop.permute.xlu0 %2179  ;;  %v1898_v0 = vpop.permute.xlu1 %1897 }
 0x39d   : > { %v4995_v50 = vmul.f32 %v2185_v13, %v2180_v27  ;;  %v4997_v8 = vmul.f32 %v2189_v22, %v2180_v27  ;;  %v1952_v27 = vrot.slane %v4949_v1, %v6005_v23 }
 0x3a0   : > { %v2381_v59 = vpop.permute.xlu0 %2380 }
 0x3a1   : > { %v5005_v49 = vmul.f32 %v2386_v9, %v2381_v59  ;;  %v5007_v11 = vmul.f32 %v2390_v2, %v2381_v59  ;;  %v1914_v55 = vpop.permute.xlu1 %1913  ;;  %v1819_v2 = vsel %vm653_vm4, %v4918_v6, %v4916_v35 }
 0x3a2   : > { %v1924_v13 = vmul.f32 %v1919_v33, %v1914_v55  ;;  %v1925_v56 = vmul.f32 %v1923_v36, %v1914_v55  ;;  %v1818_v33 = vsel %vm653_vm4, %v4916_v35, %v4918_v6  ;;  %v591_v36 = vsel %vm576_vm1, %v5015_v38, 0.0  ;;  %v6050_v55 = vld [vmem:[#allocation55_spill] sm:$0xff] }
 0x3a3   : > { %6045 = vst [vmem:[#allocation129_spill] sm:$0xff] %v5005_v49  ;;  %6046 = vst [vmem:[#allocation34_spill] sm:$0xff] %v5007_v11  ;;  %v5041_v28 = vmul.f32 %v1818_v33, %v6051_v17  ;;  %v1873_v35 = vrot.slane %v1804_v26, %v6004_v63  ;;  %v1877_v6 = vrot.slane %v1805_v47, %v6004_v63 }
 0x3a4   : > { %v5009_v22 = vpop.permute.xlu0 %2522  ;;  %v1887_v38 = vrot.slane %v1804_v26, %v6005_v23 }
 0x3a5   : > { %6047 = vst [vmem:[#allocation12_spill] sm:$0xff] %v5009_v22  ;;  %v1878_v17 = vmul.f32 %v1873_v35, %v1868_v44  ;;  %v1879_v33 = vmul.f32 %v1877_v6, %v1868_v44  ;;  %v2023_v44 = vrot.slane %v5041_v28, %v6005_v23  ;;  %v6052_v6 = vld [vmem:[#allocation57_spill] sm:$0xff] }
 0x3a6   : > { %v1947_v61 = vpop.permute.xlu1 %1946 }
 0x3a7   : > { %v5017_v29 = vmul.f32 %v1952_v27, %v1947_v61  ;;  %v5019_v9 = vmul.f32 %v1956_v58, %v1947_v61  ;;  %v1968_v61 = vrot.slane %v4949_v1, %v6006_v14  ;;  %v1972_v58 = vrot.slane %v4952_v60, %v6006_v14 }
 0x3a8   : > { %v5029_v59 = vpop.permute.xlu0 %2627  ;;  %v5038_v27 = vmul.f32 %v1819_v2, %v6050_v55  ;;  %v1907_v2 = vrot.slane %v1805_v47, %v6006_v14 }
 0x3a9   : > { %6049 = vst [vmem:[#allocation96_spill] sm:$0xff] %v5029_v59 }
 0x3aa   : > { %592 = vadd.xlane.f32.xlu1 %v591_v36  ;;  %v2005_v4 = vrot.slane %v5038_v27, %v6004_v63 }
 0x3ab   : > { %v1963_v59 = vpop.permute.xlu1 %1962 }
 0x3ac   : > { %v5045_v22 = vmul.f32 %v1968_v61, %v1963_v59  ;;  %v5047_v36 = vmul.f32 %v1972_v58, %v1963_v59  ;;  %v2009_v59 = vrot.slane %v5041_v28, %v6004_v63  ;;  %v1908_v61 = vmul.f32 %v1903_v52, %v1898_v0 }
 0x3ad   : > { %v1882_v55 = vpop.permute.xlu0 %1881  ;;  %v1909_v58 = vmul.f32 %v1907_v2, %v1898_v0 }
 0x3ae   : > { %v1892_v43 = vmul.f32 %v1887_v38, %v1882_v55  ;;  %v1893_v41 = vmul.f32 %v1891_v40, %v1882_v55  ;;  %v2019_v40 = vrot.slane %v5038_v27, %v6005_v23  ;;  %v6053_v55 = vld [vmem:[#allocation58_spill] sm:$0xff] }
 0x3b0   : > { %v1894_v39 = vadd.f32 %v1892_v43, %v1878_v17  ;;  %v1895_v51 = vadd.f32 %v1893_v41, %v1879_v33  ;;  %v2000_v11 = vpop.permute.xlu1 %1999 }
 0x3b1   : > { %v2081_v49 = vpop.permute.xlu0 %2080  ;;  %v2010_v26 = vmul.f32 %v2005_v4, %v2000_v11  ;;  %v2011_v31 = vmul.f32 %v2009_v59, %v2000_v11  ;;  %v1826_v4 = vsel %vm675_vm5, %v4924_v3, %v4927_v20 }
 0x3b2   : > { %v1910_v47 = vadd.f32 %v1908_v61, %v1894_v39  ;;  %v1911_v5 = vadd.f32 %v1909_v58, %v1895_v51  ;;  %v1829_v17 = vmul.f32 %v1826_v4, %v6053_v55 }
 0x3b4   : > { %v5057_v35 = vadd.f32 %v1924_v13, %v1910_v47  ;;  %v5059_v38 = vadd.f32 %v1925_v56, %v1911_v5  ;;  %v1827_v5 = vsel %vm675_vm5, %v4927_v20, %v4924_v3  ;;  %v2051_v13 = vrot.slane %v5038_v27, %v6007_v7  ;;  %v5101_v47 = vld [vmem:[%s5452_s3] sm:$0xf] }
 0x3b5   : > { %v5065_v52 = vpop.permute.xlu0 %2281  ;;  %v2014_v43 = vpop.permute.xlu1 %2013  ;;  %v2055_v56 = vrot.slane %v5041_v28, %v6007_v7  ;;  %v1828_v2 = vmul.f32 %v1827_v5, %v6052_v6  ;;  %v2090_v61 = vrot.slane %v1829_v17, %v6005_v23  ;;  %2797 = vperm.xlu0 %3167, %v5101_v47  }
 0x3b6   : > { %v2024_v41 = vmul.f32 %v2019_v40, %v2014_v43  ;;  %v2025_v0 = vmul.f32 %v2023_v44, %v2014_v43 }
 0x3b7   : > { %v2086_v20 = vrot.slane %v1828_v2, %v6005_v23  ;;  %v2072_v58 = vrot.slane %v1828_v2, %v6004_v63  ;;  %v2092_v44 = vmul.f32 %v2090_v61, %v2081_v49 }
 0x3b8   : > { %v5075_v51 = vadd.f32 %v2024_v41, %v2010_v26  ;;  %v5077_v39 = vadd.f32 %v2025_v0, %v2011_v31  ;;  %v2076_v26 = vrot.slane %v1829_v17, %v6004_v63 }
 0x3b9   : > { %v5079_v11 = vpop.permute.xlu0 %2473  ;;  %3170 = vset.pattern.permute.xlu0 %v6028_v53 }
 0x3ba   : > { %v2046_v33 = vpop.permute.xlu1 %2045  ;;  %2843 = vperm.xlu0 %3170, %v5101_v47  }
 0x3bb   : > { %v5087_v59 = vmul.f32 %v2051_v13, %v2046_v33  ;;  %v5089_v3 = vmul.f32 %v2055_v56, %v2046_v33  ;;  %2447 = vperm.xlu1 %3138, %v4902_v15   ;;  %v2091_v15 = vmul.f32 %v2086_v20, %v2081_v49  ;;  %v2102_v13 = vrot.slane %v1828_v2, %v6006_v14 }
 0x3bc   : > { %v2106_v56 = vrot.slane %v1829_v17, %v6006_v14 }
 0x3bd   : > { %v5092_v31 = vpop.permute.xlu0 %2576 }
 0x3bf   : > { %3139 = vset.pattern.permute.xlu1 %v6030_v10  ;;  %v2067_v40 = vpop.permute.xlu1 %2066 }
 0x3c0   : > { %v2077_v43 = vmul.f32 %v2072_v58, %v2067_v40  ;;  %v2078_v41 = vmul.f32 %v2076_v26, %v2067_v40  ;;  %2467 = vperm.xlu1 %3139, %v4861_v21   ;;  %v2118_v58 = vrot.slane %v1828_v2, %v6007_v7  ;;  %v2122_v26 = vrot.slane %v1829_v17, %v6007_v7 }
 0x3c1   : > { %v5106_v0 = vpop.permute.xlu0 %2611  ;;  %v1938_v40 = vrot.slane %v4949_v1, %v6004_v63 }
 0x3c2   : > { %v2093_v4 = vadd.f32 %v2091_v15, %v2077_v43  ;;  %v2094_v5 = vadd.f32 %v2092_v44, %v2078_v41  ;;  %v1942_v15 = vrot.slane %v4952_v60, %v6004_v63  ;;  %v2139_v60 = vrot.slane %v4965_v24, %v6004_v63 }
 0x3c4   : > { %3140 = vset.pattern.permute.xlu1 %v6027_v25  ;;  %v2097_v6 = vpop.permute.xlu1 %2096 }
 0x3c5   : > { %v5113_v49 = vpop.permute.xlu0 %2681  ;;  %v2107_v55 = vmul.f32 %v2102_v13, %v2097_v6  ;;  %v2108_v33 = vmul.f32 %v2106_v56, %v2097_v6  ;;  %2481 = vperm.xlu1 %3140, %v4861_v21   ;;  %v2143_v6 = vrot.slane %v4969_v12, %v6004_v63 }
 0x3c7   : > { %v2109_v20 = vadd.f32 %v2107_v55, %v2093_v4  ;;  %v2110_v61 = vadd.f32 %v2108_v33, %v2094_v5 }
 0x3c9   : > { %3141 = vset.pattern.permute.xlu1 %v6028_v53  ;;  %v2113_v44 = vpop.permute.xlu1 %2112 }
 0x3ca   : > { %v1933_v43 = vpop.permute.xlu0 %1932  ;;  %v2123_v41 = vmul.f32 %v2118_v58, %v2113_v44  ;;  %v2124_v13 = vmul.f32 %v2122_v26, %v2113_v44  ;;  %2489 = vperm.xlu1 %3141, %v4861_v21   ;;  %v2157_v21 = vrot.slane %v4969_v12, %v6005_v23  ;;  %v1836_v26 = vsel %vm712_vm6, %v4932_v62, %v4935_v37 }
 0x3cb   : > { %v1943_v4 = vmul.f32 %v1938_v40, %v1933_v43  ;;  %v1944_v5 = vmul.f32 %v1942_v15, %v1933_v43  ;;  %v1837_v40 = vsel %vm712_vm6, %v4935_v37, %v4932_v62 }
 0x3cc   : > { %v5124_v56 = vadd.f32 %v2123_v41, %v2109_v20  ;;  %v5126_v2 = vadd.f32 %v2124_v13, %v2110_v61  ;;  %v2153_v20 = vrot.slane %v4965_v24, %v6005_v23 }
 0x3cd   : > { %v1959_v17 = vadd.f32 %v5017_v29, %v1943_v4  ;;  %v1960_v1 = vadd.f32 %v5019_v9, %v1944_v5  ;;  %v2173_v4 = vrot.slane %v4969_v12, %v6006_v14  ;;  %v2169_v5 = vrot.slane %v4965_v24, %v6006_v14 }
 0x3ce   : > { %v2134_v55 = vpop.permute.xlu0 %2133  ;;  %3142 = vset.pattern.permute.xlu1 %v6029_v19  ;;  %v2148_v33 = vpop.permute.xlu1 %2147 }
 0x3cf   : > { %v1975_v29 = vadd.f32 %v5045_v22, %v1959_v17  ;;  %v1976_v9 = vadd.f32 %v5047_v36, %v1960_v1  ;;  %v2144_v61 = vmul.f32 %v2139_v60, %v2134_v55  ;;  %v2145_v58 = vmul.f32 %v2143_v6, %v2134_v55  ;;  %2506 = vperm.xlu1 %3142, %v4835_v16   ;;  %v6054_v17 = vld [vmem:[#allocation66_spill] sm:$0xff]  ;;  %v6055_v60 = vld [vmem:[#allocation67_spill] sm:$0xff] }
 0x3d0   : > { %v2158_v15 = vmul.f32 %v2153_v20, %v2148_v33  ;;  %v2159_v44 = vmul.f32 %v2157_v21, %v2148_v33  ;;  %v1838_v1 = vmul.f32 %v1836_v26, %v6054_v17  ;;  %v1839_v62 = vmul.f32 %v1837_v40, %v6055_v60 }
 0x3d1   : > { %v1991_v22 = vadd.f32 %v4979_v57, %v1975_v29  ;;  %v1992_v36 = vadd.f32 %v4981_v32, %v1976_v9 }
 0x3d2   : > { %v2160_v43 = vadd.f32 %v2158_v15, %v2144_v61  ;;  %v2161_v41 = vadd.f32 %v2159_v44, %v2145_v58  ;;  %v5152_v13 = vpop.permute.xlu0 %2334  ;;  %v2206_v24 = vrot.slane %v1838_v1, %v6004_v63  ;;  %v2210_v20 = vrot.slane %v1839_v62, %v6004_v63 }
 0x3d3   : > { %3143 = vset.pattern.permute.xlu1 %v6027_v25  ;;  %v2164_v37 = vpop.permute.xlu1 %2163  ;;  %v1993_v57 = vadd.f32 %v1991_v22, %v5057_v35  ;;  %v1994_v32 = vadd.f32 %v1992_v36, %v5059_v38  ;;  %v2220_v58 = vrot.slane %v1838_v1, %v6005_v23  ;;  %v2224_v26 = vrot.slane %v1839_v62, %v6005_v23 }
 0x3d4   : > { %v2174_v6 = vmul.f32 %v2169_v5, %v2164_v37  ;;  %v2175_v55 = vmul.f32 %v2173_v4, %v2164_v37  ;;  %2514 = vperm.xlu1 %3143, %v4835_v16   ;;  %v2039_v44 = vrot.slane %v5041_v28, %v6006_v14  ;;  %v1844_v22 = vsel %vm734_vm7, %v4939_v34, %v4941_v18 }
 0x3d5   : > { %v1845_v36 = vsel %vm734_vm7, %v4941_v18, %v4939_v34  ;;  %v2252_v17 = vrot.slane %v1838_v1, %v6007_v7  ;;  %v2256_v28 = vrot.slane %v1839_v62, %v6007_v7  ;;  %v6056_v18 = vld [vmem:[#allocation71_spill] sm:$0xff] }
 0x3d6   : > { %v2176_v21 = vadd.f32 %v2174_v6, %v2160_v43  ;;  %v2177_v12 = vadd.f32 %v2175_v55, %v2161_v41  ;;  %v5164_v33 = vpop.permute.xlu0 %2500  ;;  %v2236_v6 = vrot.slane %v1838_v1, %v6006_v14  ;;  %v2240_v55 = vrot.slane %v1839_v62, %v6006_v14 }
 0x3d8   : > { %v2192_v29 = vadd.f32 %v4995_v50, %v2176_v21  ;;  %v2193_v9 = vadd.f32 %v4997_v8, %v2177_v12  ;;  %3144 = vset.pattern.permute.xlu1 %v6030_v10  ;;  %v2201_v35 = vpop.permute.xlu1 %2200  ;;  %v2035_v8 = vrot.slane %v5038_v27, %v6006_v14  ;;  %v1846_v21 = vmul.f32 %v1844_v22, %v6056_v18  ;;  %v6057_v12 = vld [vmem:[#allocation72_spill] sm:$0xff] }
 0x3d9   : > { %v2211_v38 = vmul.f32 %v2206_v24, %v2201_v35  ;;  %v2212_v61 = vmul.f32 %v2210_v20, %v2201_v35  ;;  %2535 = vperm.xlu1 %3144, %v4909_v48   ;;  %v1847_v24 = vmul.f32 %v1845_v36, %v6057_v12 }
 0x3da   : > { %v5172_v16 = vpop.permute.xlu0 %2710 }
 0x3dd   : > { %3145 = vset.pattern.permute.xlu1 %v6029_v19  ;;  %v2215_v40 = vpop.permute.xlu1 %2214 }
 0x3de   : > { %v2225_v15 = vmul.f32 %v2220_v58, %v2215_v40  ;;  %v2226_v50 = vmul.f32 %v2224_v26, %v2215_v40  ;;  %2541 = vperm.xlu1 %3145, %v4909_v48  }
 0x3df   : > { %v2030_v43 = vpop.permute.xlu0 %2029 }
 0x3e0   : > { %v2227_v41 = vadd.f32 %v2225_v15, %v2211_v38  ;;  %v2228_v4 = vadd.f32 %v2226_v50, %v2212_v61  ;;  %v2040_v5 = vmul.f32 %v2035_v8, %v2030_v43  ;;  %v2041_v27 = vmul.f32 %v2039_v44, %v2030_v43 }
 0x3e1   : > { %v2287_v15 = vrot.slane %v1846_v21, %v6005_v23  ;;  %v2291_v50 = vrot.slane %v1847_v24, %v6005_v23  ;;  %v2273_v8 = vrot.slane %v1846_v21, %v6004_v63 }
 0x3e2   : > { %v2042_v60 = vadd.f32 %v2040_v5, %v5075_v51  ;;  %v2043_v37 = vadd.f32 %v2041_v27, %v5077_v39  ;;  %3146 = vset.pattern.permute.xlu1 %v6028_v53  ;;  %v2247_v34 = vpop.permute.xlu1 %2246 }
 0x3e3   : > { %v2231_v20 = vpop.permute.xlu0 %2230  ;;  %v2257_v35 = vmul.f32 %v2252_v17, %v2247_v34  ;;  %v2258_v38 = vmul.f32 %v2256_v28, %v2247_v34  ;;  %2557 = vperm.xlu1 %3146, %v4909_v48   ;;  %v2277_v48 = vrot.slane %v1847_v24, %v6004_v63  ;;  %v2293_v36 = vmul.f32 %v2291_v50, %v5065_v52  ;;  %v6059_v50 = vld [vmem:[#allocation123_spill] sm:$0xff] }
 0x3e4   : > { %v2058_v51 = vadd.f32 %v5087_v59, %v2042_v60  ;;  %v2059_v39 = vadd.f32 %v5089_v3, %v2043_v37  ;;  %v2241_v61 = vmul.f32 %v2236_v6, %v2231_v20  ;;  %v2242_v1 = vmul.f32 %v2240_v55, %v2231_v20 }
 0x3e5   : > { %v2303_v28 = vrot.slane %v1846_v21, %v6006_v14 }
 0x3e6   : > { %v2060_v58 = vadd.f32 %v2058_v51, %v1993_v57  ;;  %v2061_v62 = vadd.f32 %v2059_v39, %v1994_v32  ;;  %v2243_v26 = vadd.f32 %v2241_v61, %v2227_v41  ;;  %v2244_v40 = vadd.f32 %v2242_v1, %v2228_v4 }
 0x3e7   : > { %3147 = vset.pattern.permute.xlu1 %v6030_v10  ;;  %v2268_v44 = vpop.permute.xlu1 %2267  ;;  %v2292_v32 = vmul.f32 %v2287_v15, %v5065_v52  ;;  %v2340_v51 = vrot.slane %v4984_v45, %v6004_v63  ;;  %v2344_v39 = vrot.slane %v4987_v46, %v6004_v63  ;;  %v6058_v15 = vld [vmem:[#allocation74_spill] sm:$0xff] }
 0x3e8   : > { %v2127_v59 = vadd.f32 %v5124_v56, %v2060_v58  ;;  %v2128_v3 = vadd.f32 %v5126_v2, %v2061_v62  ;;  %v2259_v22 = vadd.f32 %v2257_v35, %v2243_v26  ;;  %v2260_v57 = vadd.f32 %v2258_v38, %v2244_v40  ;;  %2570 = vperm.xlu1 %3147, %v4868_v54  }
 0x3e9   : > { %v2278_v43 = vmul.f32 %v2273_v8, %v2268_v44  ;;  %v2279_v41 = vmul.f32 %v2277_v48, %v2268_v44  ;;  %v2307_v56 = vrot.slane %v1847_v24, %v6006_v14  ;;  %v2346_v62 = vmul.f32 %v2344_v39, %v5152_v13 }
 0x3ea   : > { %v2195_v4 = vadd.f32 %v2193_v9, %v2128_v3  ;;  %v2194_v5 = vadd.f32 %v2192_v29, %v2127_v59  ;;  %v2319_v9 = vrot.slane %v1846_v21, %v6007_v7  ;;  %v2323_v29 = vrot.slane %v1847_v24, %v6007_v7 }
 0x3eb   : > { %v2294_v27 = vadd.f32 %v2292_v32, %v2278_v43  ;;  %v2295_v17 = vadd.f32 %v2293_v36, %v2279_v41  ;;  %v2354_v21 = vrot.slane %v4984_v45, %v6005_v23  ;;  %v2358_v24 = vrot.slane %v4987_v46, %v6005_v23  ;;  %v6061_v32 = vld [vmem:[#allocation77_spill] sm:$0xff] }
 0x3ec   : > { %v2261_v60 = vadd.f32 %v2259_v22, %v2194_v5  ;;  %v2262_v2 = vadd.f32 %v2260_v57, %v2195_v4  ;;  %3148 = vset.pattern.permute.xlu1 %v6027_v25  ;;  %v2298_v37 = vpop.permute.xlu1 %2297  ;;  %v1860_v8 = vsel %vm778_vm9, %v6059_v50, %v6058_v15  ;;  %v1861_v48 = vsel %vm778_vm9, %v6058_v15, %v6059_v50  ;;  %v6060_v22 = vld [vmem:[#allocation76_spill] sm:$0xff] }
 0x3ed   : > { %v2308_v6 = vmul.f32 %v2303_v28, %v2298_v37  ;;  %v2309_v55 = vmul.f32 %v2307_v56, %v2298_v37  ;;  %2584 = vperm.xlu1 %3148, %v4868_v54   ;;  %v2370_v3 = vrot.slane %v4984_v45, %v6006_v14  ;;  %v5248_v57 = vmul.f32 %v1860_v8, %v6060_v22  ;;  %v6063_v28 = vld [vmem:[#allocation34_spill] sm:$0xff]  ;;  %v6066_v22 = vld [vmem:[#allocation81_spill] sm:$0xff] }
 0x3ee   : > { %v5251_v36 = vmul.f32 %v1861_v48, %v6061_v32  ;;  %v6067_v32 = vld [vmem:[#allocation87_spill] sm:$0xff] }
 0x3ef   : > { %v2310_v52 = vadd.f32 %v2308_v6, %v2294_v27  ;;  %v2311_v34 = vadd.f32 %v2309_v55, %v2295_v17  ;;  %v2407_v45 = vrot.slane %v5248_v57, %v6004_v63  ;;  %v6062_v27 = vld [vmem:[#allocation129_spill] sm:$0xff] }
 0x3f0   : > { %v2457_v15 = vrot.slane %v5251_v36, %v6007_v7 }
 0x3f1   : > { %3149 = vset.pattern.permute.xlu1 %v6030_v10  ;;  %v2314_v18 = vpop.permute.xlu1 %2313 }
 0x3f2   : > { %v2324_v12 = vmul.f32 %v2319_v9, %v2314_v18  ;;  %v2325_v20 = vmul.f32 %v2323_v29, %v2314_v18  ;;  %2605 = vperm.xlu1 %3149, %v4842_v42   ;;  %v2345_v42 = vmul.f32 %v2340_v51, %v5152_v13  ;;  %v2986_v13 = vld [vmem:[%s5458_s9 + $0x14] sm:$0xf]  ;;  %v2432_v9 = vpop.permute.xlu0 %2431  ;;  %v2437_v18 = vrot.slane %v5248_v57, %v6006_v14 }
 0x3f4   : > { %v2326_v35 = vadd.f32 %v2324_v12, %v2310_v52  ;;  %v2327_v38 = vadd.f32 %v2325_v20, %v2311_v34  ;;  %v2421_v52 = vrot.slane %v5248_v57, %v6005_v23  ;;  %v2425_v34 = vrot.slane %v5251_v36, %v6005_v23 }
 0x3f5   : > { %v2441_v12 = vrot.slane %v5251_v36, %v6006_v14 }
 0x3f6   : > { %v2328_v61 = vadd.f32 %v2326_v35, %v2261_v60  ;;  %v2329_v1 = vadd.f32 %v2327_v38, %v2262_v2  ;;  %3150 = vset.pattern.permute.xlu1 %v6028_v53  ;;  %v2349_v58 = vpop.permute.xlu1 %2348  ;;  %v2442_v38 = vmul.f32 %v2437_v18, %v2432_v9 }
 0x3f7   : > { %v2359_v26 = vmul.f32 %v2354_v21, %v2349_v58  ;;  %v2360_v40 = vmul.f32 %v2358_v24, %v2349_v58  ;;  %2592 = vperm.xlu1 %3150, %v4868_v54   ;;  %v2374_v54 = vrot.slane %v4987_v46, %v6006_v14  ;;  %v2411_v46 = vrot.slane %v5251_v36, %v6004_v63  ;;  %v6065_v58 = vld [vmem:[#allocation122_spill] sm:$0xff] }
 0x3f8   : > { %v2443_v51 = vmul.f32 %v2441_v12, %v2432_v9  ;;  %v6074_v12 = vld [vmem:[#allocation61_spill] sm:$0xff] }
 0x3f9   : > { %v2361_v44 = vadd.f32 %v2359_v26, %v2345_v42  ;;  %v2362_v59 = vadd.f32 %v2360_v40, %v2346_v62  ;;  %v2989_v42 = vld [vmem:[%s5458_s9 + $0x20] sm:$0xf] }
 0x3fb   : > { %3151 = vset.pattern.permute.xlu1 %v6030_v10  ;;  %v2365_v30 = vpop.permute.xlu1 %2364 }
 0x3fc   : > { %v2375_v43 = vmul.f32 %v2370_v3, %v2365_v30  ;;  %v2376_v41 = vmul.f32 %v2374_v54, %v2365_v30  ;;  %2640 = vperm.xlu1 %3151, %v2986_v13  }
 0x3fe   : > { %v2377_v4 = vadd.f32 %v2375_v43, %v2361_v44  ;;  %v2378_v5 = vadd.f32 %v2376_v41, %v2362_v59  ;;  %v6068_v41 = vld [vmem:[#allocation90_spill] sm:$0xff] }
 0x400   : > { %v2393_v17 = vadd.f32 %v6062_v27, %v2377_v4  ;;  %v2394_v56 = vadd.f32 %v6063_v28, %v2378_v5  ;;  %3152 = vset.pattern.permute.xlu1 %v6029_v19  ;;  %v2402_v60 = vpop.permute.xlu1 %2401  ;;  %v2476_v4 = vmul.f32 %v5079_v11, %v6068_v41  ;;  %v6070_v27 = vld [vmem:[#allocation93_spill] sm:$0xff]  ;;  %v6071_v28 = vld [vmem:[#allocation95_spill] sm:$0xff] }
 0x401   : > { %v2412_v2 = vmul.f32 %v2407_v45, %v2402_v60  ;;  %v2413_v37 = vmul.f32 %v2411_v46, %v2402_v60  ;;  %2646 = vperm.xlu1 %3152, %v2986_v13  }
 0x402   : > { %v2395_v6 = vadd.f32 %v2393_v17, %v2328_v61  ;;  %v2396_v55 = vadd.f32 %v2394_v56, %v2329_v1  ;;  %v6064_v1 = vld [vmem:[#allocation82_spill] sm:$0xff] }
 0x405   : > { %3154 = vset.pattern.permute.xlu1 %v6027_v25  ;;  %v2416_v29 = vpop.permute.xlu1 %2415 }
 0x406   : > { %v2426_v20 = vmul.f32 %v2421_v52, %v2416_v29  ;;  %v2427_v35 = vmul.f32 %v2425_v34, %v2416_v29  ;;  %2654 = vperm.xlu1 %3154, %v2986_v13   ;;  %v6073_v52 = vld [vmem:[#allocation100_spill] sm:$0xff] }
 0x408   : > { %v2428_v39 = vadd.f32 %v2426_v20, %v2412_v2  ;;  %v2429_v21 = vadd.f32 %v2427_v35, %v2413_v37  ;;  %v6075_v20 = vld [vmem:[#allocation62_spill] sm:$0xff] }
 0x40a   : > { %3155 = vset.pattern.permute.xlu1 %v6030_v10  ;;  %v2444_v24 = vadd.f32 %v2442_v38, %v2428_v39  ;;  %v2445_v61 = vadd.f32 %v2443_v51, %v2429_v21  ;;  %v6076_v38 = vld [vmem:[#allocation59_spill] sm:$0xff]  ;;  %v6077_v39 = vld [vmem:[#allocation60_spill] sm:$0xff] }
 0x40b   : > { %2675 = vperm.xlu1 %3155, %v6064_v1   ;;  %v2503_v51 = vmul.f32 %v5164_v33, %v6076_v38  ;;  %v2504_v21 = vmul.f32 %v5164_v33, %v6077_v39 }
 0x40f   : > { %3157 = vset.pattern.permute.xlu1 %v6028_v53 }
 0x410   : > { %2662 = vperm.xlu1 %3157, %v2986_v13  }
 0x414   : > { %3158 = vset.pattern.permute.xlu1 %v6027_v25 }
 0x415   : > { %2689 = vperm.xlu1 %3158, %v6064_v1  }
 0x419   : > { %3160 = vset.pattern.permute.xlu1 %v6029_v19 }
 0x41a   : > { %2716 = vperm.xlu1 %3160, %v6065_v58   ;;  %v6078_v58 = vld [vmem:[#allocation68_spill] sm:$0xff] }
 0x41e   : > { %3161 = vset.pattern.permute.xlu1 %v6028_v53 }
 0x41f   : > { %2697 = vperm.xlu1 %3161, %v6064_v1  }
 0x423   : > { %3162 = vset.pattern.permute.xlu1 %v6030_v10  ;;  %v2453_v10 = vrot.slane %v5248_v57, %v6007_v7 }
 0x424   : > { %2745 = vperm.xlu1 %3162, %v2989_v42  }
 0x428   : > { %3163 = vset.pattern.permute.xlu1 %v6029_v19 }
 0x429   : > { %2751 = vperm.xlu1 %3163, %v2989_v42  }
 0x42d   : > { %3165 = vset.pattern.permute.xlu1 %v6027_v25 }
 0x42e   : > { %2759 = vperm.xlu1 %3165, %v2989_v42  }
 0x432   : > { %3166 = vset.pattern.permute.xlu1 %v6028_v53 }
 0x433   : > { %2767 = vperm.xlu1 %3166, %v2989_v42  }
 0x437   : > { %v593_v62 = vpop.xlane.xlu1 %592  ;;  %3168 = vset.pattern.permute.xlu1 %v6029_v19 }
 0x438   : > { %v594_v26 = vrot.slane %v593_v62, 4  ;;  %2811 = vperm.xlu1 %3168, %v5101_v47  }
 0x43a   : > { %v595_v40 = vadd.f32 %v594_v26, %v593_v62  ;;  %v6079_v62 = vld [vmem:[#allocation69_spill] sm:$0xff] }
 0x43b   : > { %v2448_v50 = vpop.permute.xlu1 %2447 }
 0x43c   : > { %v596_v8 = vrot.slane %v595_v40, 2  ;;  %v2458_v48 = vmul.f32 %v2453_v10, %v2448_v50  ;;  %v2459_v44 = vmul.f32 %v2457_v15, %v2448_v50  ;;  %3169 = vset.pattern.permute.xlu1 %v6027_v25  ;;  %v6069_v25 = vld [vmem:[#allocation91_spill] sm:$0xff]  ;;  %v6081_v10 = vld [vmem:[#allocation12_spill] sm:$0xff]  ;;  %v6082_v50 = vld [vmem:[#allocation65_spill] sm:$0xff] }
 0x43d   : > { %2827 = vperm.xlu1 %3169, %v5101_v47   ;;  %v2477_v47 = vmul.f32 %v5079_v11, %v6069_v25  ;;  %v6085_v25 = vld [vmem:[#allocation92_spill] sm:$0xff] }
 0x43e   : > { %v2460_v53 = vadd.f32 %v2458_v48, %v2444_v24  ;;  %v2461_v19 = vadd.f32 %v2459_v44, %v2445_v61  ;;  %v597_v59 = vadd.f32 %v596_v8, %v595_v40  ;;  %v6080_v40 = vld [vmem:[#allocation64_spill] sm:$0xff]  ;;  %v2526_v8 = vmul.f32 %v6081_v10, %v6082_v50  ;;  %v6101_v50 = vld [vmem:[#allocation51_spill] sm:$0xff] }
 0x43f   : > { %v2468_v13 = vpop.permute.xlu1 %2467  ;;  %v2525_v15 = vmul.f32 %v6081_v10, %v6080_v40  ;;  %v6099_v40 = vld [vmem:[#allocation43_spill] sm:$0xff] }
 0x440   : > { %v598_v3 = vrot.slane %v597_v59, 1  ;;  %v5294_v54 = vadd.f32 %v2460_v53, %v2395_v6  ;;  %v2470_v57 = vmul.f32 %v2468_v13, %v6066_v22  ;;  %v2471_v30 = vmul.f32 %v2468_v13, %v6067_v32  ;;  %v6072_v6 = vld [vmem:[#allocation99_spill] sm:$0xff]  ;;  %v6083_v32 = vld [vmem:[#allocation97_spill] sm:$0xff] }
 0x441   : > { %v5298_v36 = vadd.f32 %v2461_v19, %v2396_v55 }
 0x442   : > { %v599_v43 = vadd.f32 %v598_v3, %v597_v59  ;;  %v2478_v45 = vadd.f32 %v2476_v4, %v2470_v57  ;;  %v2479_v46 = vadd.f32 %v2477_v47, %v2471_v30  ;;  %v2550_v4 = vpop.permute.xlu0 %2549 }
 0x444   : > { %2999 = vpush %v599_v43  ;;  %v2482_v5 = vpop.permute.xlu1 %2481  ;;  %v6084_v43 = vld [vmem:[#allocation98_spill] sm:$0xff] }
 0x445   : > { %v2484_v17 = vmul.f32 %v2482_v5, %v6070_v27  ;;  %v2485_v56 = vmul.f32 %v2482_v5, %v6071_v28  ;;  %v6086_v5 = vld [vmem:[#allocation94_spill] sm:$0xff]  ;;  %v6087_v28 = vld [vmem:[#allocation115_spill] sm:$0xff] }
 0x447   : > { %v2486_v60 = vadd.f32 %v2484_v17, %v2478_v45  ;;  %v2487_v2 = vadd.f32 %v2485_v56, %v2479_v46  ;;  %v2579_v56 = vmul.f32 %v5092_v31, %v6087_v28 }
 0x449   : > { %v2490_v37 = vpop.permute.xlu1 %2489 }
 0x44a   : > { %v2492_v55 = vmul.f32 %v2490_v37, %v6072_v6  ;;  %v2493_v34 = vmul.f32 %v2490_v37, %v6073_v52  ;;  %v6089_v37 = vld [vmem:[#allocation104_spill] sm:$0xff] }
 0x44b   : > { %v2552_v6 = vmul.f32 %v2550_v4, %v6089_v37 }
 0x44c   : > { %v2494_v9 = vadd.f32 %v2492_v55, %v2486_v60  ;;  %v2495_v29 = vadd.f32 %v2493_v34, %v2487_v2  ;;  %v6088_v60 = vld [vmem:[#allocation116_spill] sm:$0xff]  ;;  %v6090_v55 = vld [vmem:[#allocation105_spill] sm:$0xff] }
 0x44d   : > { %v2580_v2 = vmul.f32 %v5092_v31, %v6088_v60  ;;  %v2553_v52 = vmul.f32 %v2550_v4, %v6090_v55  ;;  %v6091_v34 = vld [vmem:[#allocation45_spill] sm:$0xff]  ;;  %v6096_v31 = vld [vmem:[#allocation103_spill] sm:$0xff] }
 0x44e   : > { %v2507_v18 = vpop.permute.xlu1 %2506 }
 0x44f   : > { %v2509_v11 = vmul.f32 %v2507_v18, %v6074_v12  ;;  %v2510_v35 = vmul.f32 %v2507_v18, %v6075_v20  ;;  %v2620_v12 = vpop.permute.xlu0 %2619 }
 0x451   : > { %v2511_v61 = vadd.f32 %v2509_v11, %v2503_v51  ;;  %v2512_v1 = vadd.f32 %v2510_v35, %v2504_v21  ;;  %v6093_v11 = vld [vmem:[#allocation106_spill] sm:$0xff]  ;;  %v6094_v35 = vld [vmem:[#allocation107_spill] sm:$0xff] }
 0x452   : > { %v6095_v21 = vld [vmem:[#allocation102_spill] sm:$0xff] }
 0x453   : > { %v2515_v24 = vpop.permute.xlu1 %2514 }
 0x454   : > { %v2517_v42 = vmul.f32 %v2515_v24, %v6078_v58  ;;  %v2518_v26 = vmul.f32 %v2515_v24, %v6079_v62  ;;  %v6097_v58 = vld [vmem:[#allocation108_spill] sm:$0xff]  ;;  %v6098_v62 = vld [vmem:[#allocation110_spill] sm:$0xff] }
 0x456   : > { %v2519_v48 = vadd.f32 %v2517_v42, %v2511_v61  ;;  %v2520_v44 = vadd.f32 %v2518_v26, %v2512_v1 }
 0x458   : > { %v2527_v53 = vadd.f32 %v2525_v15, %v2519_v48  ;;  %v2528_v19 = vadd.f32 %v2526_v8, %v2520_v44  ;;  %v2536_v59 = vpop.permute.xlu1 %2535  ;;  %v6100_v15 = vld [vmem:[#allocation44_spill] sm:$0xff]  ;;  %v2622_v8 = vmul.f32 %v2620_v12, %v6101_v50 }
 0x459   : > { %v2538_v47 = vmul.f32 %v2536_v59, %v6085_v25  ;;  %v2539_v45 = vmul.f32 %v2536_v59, %v6086_v5  ;;  %v6102_v59 = vld [vmem:[#allocation52_spill] sm:$0xff] }
 0x45a   : > { %v2529_v13 = vadd.f32 %v2527_v53, %v2494_v9  ;;  %v2530_v33 = vadd.f32 %v2528_v19, %v2495_v29  ;;  %v2614_v9 = vmul.f32 %v5106_v0, %v6091_v34  ;;  %v6092_v29 = vld [vmem:[#allocation46_spill] sm:$0xff]  ;;  %v6113_v50 = vld [vmem:[#allocation124_spill] sm:$0xff] }
 0x45b   : > { %v2615_v18 = vmul.f32 %v5106_v0, %v6092_v29 }
 0x45d   : > { %v2542_v3 = vpop.permute.xlu1 %2541 }
 0x45e   : > { %v2544_v30 = vmul.f32 %v2542_v3, %v6083_v32  ;;  %v2545_v41 = vmul.f32 %v2542_v3, %v6084_v43  ;;  %v2623_v3 = vmul.f32 %v2620_v12, %v6102_v59  ;;  %v6115_v59 = vld [vmem:[#allocation125_spill] sm:$0xff] }
 0x460   : > { %v2546_v27 = vadd.f32 %v2544_v30, %v2538_v47  ;;  %v2547_v17 = vadd.f32 %v2545_v41, %v2539_v45  ;;  %v6103_v47 = vld [vmem:[#allocation111_spill] sm:$0xff]  ;;  %v6104_v45 = vld [vmem:[#allocation112_spill] sm:$0xff] }
 0x462   : > { %v2558_v22 = vpop.permute.xlu1 %2557  ;;  %v2554_v51 = vadd.f32 %v2552_v6, %v2546_v27  ;;  %v2555_v39 = vadd.f32 %v2553_v52, %v2547_v17  ;;  %v6105_v27 = vld [vmem:[#allocation47_spill] sm:$0xff]  ;;  %v6106_v17 = vld [vmem:[#allocation96_spill] sm:$0xff] }
 0x463   : > { %v2560_v24 = vmul.f32 %v2558_v22, %v6095_v21  ;;  %v2561_v61 = vmul.f32 %v2558_v22, %v6096_v31  ;;  %v2630_v28 = vmul.f32 %v6106_v17, %v6105_v27  ;;  %v6122_v27 = vld [vmem:[#allocation135_spill] sm:$0xff] }
 0x465   : > { %v2563_v32 = vadd.f32 %v2561_v61, %v2555_v39 }
 0x467   : > { %v2571_v57 = vpop.permute.xlu1 %2570  ;;  %v2565_v37 = vadd.f32 %v2563_v32, %v2530_v33 }
 0x468   : > { %v2573_v20 = vmul.f32 %v2571_v57, %v6093_v11  ;;  %v2574_v38 = vmul.f32 %v2571_v57, %v6094_v35  ;;  %v2562_v57 = vadd.f32 %v2560_v24, %v2554_v51 }
 0x46a   : > { %v2581_v48 = vadd.f32 %v2579_v56, %v2573_v20  ;;  %v2582_v44 = vadd.f32 %v2580_v2, %v2574_v38  ;;  %v6107_v56 = vld [vmem:[#allocation50_spill] sm:$0xff]  ;;  %v2564_v2 = vadd.f32 %v2562_v57, %v2529_v13 }
 0x46b   : > { %v2631_v60 = vmul.f32 %v6106_v17, %v6107_v56  ;;  %v6108_v38 = vld [vmem:[#allocation142_spill] sm:$0xff]  ;;  %v2685_v17 = vmul.f32 %v5113_v49, %v6122_v27  ;;  %v6123_v56 = vld [vmem:[#allocation131_spill] sm:$0xff] }
 0x46c   : > { %v2585_v46 = vpop.permute.xlu1 %2584  ;;  %v6116_v57 = vld [vmem:[#allocation130_spill] sm:$0xff] }
 0x46d   : > { %v2587_v42 = vmul.f32 %v2585_v46, %v6097_v58  ;;  %v2588_v26 = vmul.f32 %v2585_v46, %v6098_v62 }
 0x46f   : > { %v2589_v22 = vadd.f32 %v2587_v42, %v2581_v48  ;;  %v2590_v30 = vadd.f32 %v2588_v26, %v2582_v44  ;;  %v6110_v42 = vld [vmem:[#allocation119_spill] sm:$0xff]  ;;  %v6111_v26 = vld [vmem:[#allocation113_spill] sm:$0xff]  ;;  %v6114_v48 = vld [vmem:[#allocation128_spill] sm:$0xff] }
 0x471   : > { %v2606_v1 = vpop.permute.xlu1 %2605 }
 0x472   : > { %v2608_v10 = vmul.f32 %v2606_v1, %v6099_v40  ;;  %v2609_v0 = vmul.f32 %v2606_v1, %v6100_v15  ;;  %v6109_v1 = vld [vmem:[#allocation118_spill] sm:$0xff] }
 0x474   : > { %v2616_v53 = vadd.f32 %v2614_v9, %v2608_v10  ;;  %v2617_v19 = vadd.f32 %v2615_v18, %v2609_v0  ;;  %v6112_v10 = vld [vmem:[#allocation114_spill] sm:$0xff] }
 0x475   : > { %s3000_s15 = spop %2999 }
 0x476   : > { %v2624_v43 = vadd.f32 %v2622_v8, %v2616_v53  ;;  %v601_v41 = vstv %s3000_s15  ;;  %v2593_v4 = vpop.permute.xlu1 %2592  ;;  %v2625_v25 = vadd.f32 %v2623_v3, %v2617_v19  ;;  %s3185_s15 = scalar_lea.vmem %s5407_s28, 128 }
 0x477   : > { %3182 = vrcp.f32 %v601_v41  ;;  %v2595_v5 = vmul.f32 %v2593_v4, %v6103_v47  ;;  %v2596_v46 = vmul.f32 %v2593_v4, %v6104_v45  ;;  %v6119_v4 = vld [vmem:[#allocation137_spill] sm:$0xff]  ;;  %v6120_v47 = vld [vmem:[#allocation138_spill] sm:$0xff]  ;;  %p3186_p11 = scmp.ne.s32.totalorder %s5407_s28, %s3185_s15 }
 0x478   : > { %v2632_v52 = vadd.f32 %v2630_v28, %v2624_v43  ;;  %v2633_v34 = vadd.f32 %v2631_v60, %v2625_v25  ;;  %v6118_v43 = vld [vmem:[#allocation121_spill] sm:$0xff]  ;;  %v2725_v28 = vpop.permute.xlu0 %2724 }
 0x479   : > { %v2597_v6 = vadd.f32 %v2595_v5, %v2589_v22  ;;  %v2598_v55 = vadd.f32 %v2596_v46, %v2590_v30  ;;  %v6117_v22 = vld [vmem:[#allocation120_spill] sm:$0xff]  ;;  %v6121_v45 = vld [vmem:[#allocation133_spill] sm:$0xff]  ;;  %p3187_p12 = pnand %p3186_p11, %p3367_p5 }
 0x47a   : > { %v2684_v46 = vmul.f32 %v5113_v49, %v6121_v45 }
 0x47b   : > { %v2599_v9 = vadd.f32 %v2597_v6, %v2564_v2  ;;  %v2600_v29 = vadd.f32 %v2598_v55, %v2565_v37  ;;  %v2641_v18 = vpop.permute.xlu1 %2640  ;;  %v6124_v2 = vld [vmem:[#allocation132_spill] sm:$0xff]  ;;  %p3188_p13 = pneg %p3187_p12 }
 0x47c   : > { %v2643_v40 = vmul.f32 %v2641_v18, %v6111_v26  ;;  %v2644_v15 = vmul.f32 %v2641_v18, %v6112_v10  ;;  %v6125_v6 = vld [vmem:[#allocation140_spill] sm:$0xff] }
 0x47d   : > { %v2634_v12 = vadd.f32 %v2632_v52, %v2599_v9  ;;  %v2635_v11 = vadd.f32 %v2633_v34, %v2600_v29  ;;  %v2713_v55 = vmul.f32 %v5172_v16, %v6125_v6  ;;  %v6126_v52 = vld [vmem:[#allocation141_spill] sm:$0xff] }
 0x47e   : > { %v2714_v34 = vmul.f32 %v5172_v16, %v6126_v52  ;;  %v2733_v16 = vpop.permute.xlu0 %2732 }
 0x480   : > { %v2647_v20 = vpop.permute.xlu1 %2646 }
 0x481   : > { %v3183_v35 = vpop.eup %3182  ;;  %v2649_v58 = vmul.f32 %v2647_v20, %v6109_v1  ;;  %v2650_v62 = vmul.f32 %v2647_v20, %v6110_v42 }
 0x482   : > { %v603_v51 = vmul.f32 %v3183_v35, %v6108_v38  ;;  %v6127_v38 = vld [vmem:[#allocation134_spill] sm:$0xff] }
 0x483   : > { %v2651_v53 = vadd.f32 %v2649_v58, %v2643_v40  ;;  %v2652_v19 = vadd.f32 %v2650_v62, %v2644_v15  ;;  %v6129_v58 = vld [vmem:[#allocation143_spill] sm:$0xff]  ;;  %v6130_v62 = vld [vmem:[#allocation144_spill] sm:$0xff] }
 0x484   : > { %3001 = vpush %v603_v51  ;;  %v2782_v39 = vrot.slane %v603_v51, 1  ;;  %v2727_v42 = vmul.f32 %v2725_v28, %v6129_v58  ;;  %v2728_v26 = vmul.f32 %v2725_v28, %v6130_v62  ;;  %v6131_v15 = vld [vmem:[#allocation32_spill] sm:$0xff]  ;;  %v2798_v58 = vpop.permute.xlu0 %2797 }
 0x485   : > { %v2655_v21 = vpop.permute.xlu1 %2654 }
 0x486   : > { %3003 = vpush %v2782_v39  ;;  %v2657_v8 = vmul.f32 %v2655_v21, %v6113_v50  ;;  %v2658_v44 = vmul.f32 %v2655_v21, %v6114_v48  ;;  %v6128_v39 = vld [vmem:[#allocation136_spill] sm:$0xff] }
 0x488   : > { %v2659_v9 = vadd.f32 %v2657_v8, %v2651_v53  ;;  %v2660_v29 = vadd.f32 %v2658_v44, %v2652_v19  ;;  %v6132_v8 = vld [vmem:[#allocation151_spill] sm:$0xff] }
 0x48a   : > { %v2676_v24 = vpop.permute.xlu1 %2675 }
 0x48b   : > { %v2678_v3 = vmul.f32 %v2676_v24, %v6115_v59  ;;  %v2679_v32 = vmul.f32 %v2676_v24, %v6116_v57 }
 0x48d   : > { %v2686_v20 = vadd.f32 %v2684_v46, %v2678_v3  ;;  %v2687_v35 = vadd.f32 %v2685_v17, %v2679_v32  ;;  %v6133_v3 = vld [vmem:[#allocation147_spill] sm:$0xff]  ;;  %v6134_v32 = vld [vmem:[#allocation17_spill] sm:$0xff] }
 0x48f   : > { %v2663_v13 = vpop.permute.xlu1 %2662 }
 0x490   : > { %v2665_v30 = vmul.f32 %v2663_v13, %v6117_v22  ;;  %v2666_v41 = vmul.f32 %v2663_v13, %v6118_v43 }
 0x492   : > { %v2667_v21 = vadd.f32 %v2665_v30, %v2659_v9  ;;  %v2668_v24 = vadd.f32 %v2666_v41, %v2660_v29  ;;  %v6135_v30 = vld [vmem:[#allocation19_spill] sm:$0xff]  ;;  %v6136_v41 = vld [vmem:[#allocation152_spill] sm:$0xff] }
 0x494   : > { %v2690_v33 = vpop.permute.xlu1 %2689  ;;  %v2669_v53 = vadd.f32 %v2667_v21, %v2634_v12 }
 0x495   : > { %v2692_v60 = vmul.f32 %v2690_v33, %v6123_v56  ;;  %v2693_v37 = vmul.f32 %v2690_v33, %v6124_v2 }
 0x497   : > { %v2694_v33 = vadd.f32 %v2692_v60, %v2686_v20  ;;  %v2695_v1 = vadd.f32 %v2693_v37, %v2687_v35  ;;  %v6139_v37 = vld [vmem:[#allocation145_spill] sm:$0xff] }
 0x499   : > { %v2717_v31 = vpop.permute.xlu1 %2716 }
 0x49a   : > { %v2719_v25 = vmul.f32 %v2717_v31, %v6119_v4  ;;  %v2720_v5 = vmul.f32 %v2717_v31, %v6120_v47 }
 0x49c   : > { %v2721_v13 = vadd.f32 %v2719_v25, %v2713_v55  ;;  %v2722_v31 = vadd.f32 %v2720_v5, %v2714_v34  ;;  %v6137_v25 = vld [vmem:[#allocation16_spill] sm:$0xff]  ;;  %v6138_v5 = vld [vmem:[#allocation150_spill] sm:$0xff] }
 0x49d   : > { %v2735_v47 = vmul.f32 %v2733_v16, %v6137_v25  ;;  %v2736_v45 = vmul.f32 %v2733_v16, %v6138_v5 }
 0x49e   : > { %v2698_v61 = vpop.permute.xlu1 %2697  ;;  %v2729_v19 = vadd.f32 %v2727_v42, %v2721_v13  ;;  %v2730_v59 = vadd.f32 %v2728_v26, %v2722_v31 }
 0x49f   : > { %v2700_v51 = vmul.f32 %v2698_v61, %v6127_v38  ;;  %v2701_v49 = vmul.f32 %v2698_v61, %v6128_v39  ;;  %v2670_v61 = vadd.f32 %v2668_v24, %v2635_v11 }
 0x4a0   : > { %v2737_v11 = vadd.f32 %v2735_v47, %v2729_v19  ;;  %v2738_v56 = vadd.f32 %v2736_v45, %v2730_v59 }
 0x4a1   : > { %v2702_v40 = vadd.f32 %v2700_v51, %v2694_v33  ;;  %v2703_v10 = vadd.f32 %v2701_v49, %v2695_v1 }
 0x4a3   : > { %v2746_v0 = vpop.permute.xlu1 %2745  ;;  %v2704_v46 = vadd.f32 %v2702_v40, %v2669_v53  ;;  %v2705_v27 = vadd.f32 %v2703_v10, %v2670_v61  ;;  %v2844_v61 = vpop.permute.xlu0 %2843 }
 0x4a4   : > { %v2748_v57 = vmul.f32 %v2746_v0, %v6133_v3  ;;  %v2749_v22 = vmul.f32 %v2746_v0, %v6134_v32  ;;  %v6140_v0 = vld [vmem:[#allocation146_spill] sm:$0xff] }
 0x4a5   : > { %v2739_v9 = vadd.f32 %v2737_v11, %v2704_v46  ;;  %v2740_v29 = vadd.f32 %v2738_v56, %v2705_v27 }
 0x4a8   : > { %v2752_v18 = vpop.permute.xlu1 %2751 }
 0x4a9   : > { %v2754_v50 = vmul.f32 %v2752_v18, %v6131_v15  ;;  %v2755_v48 = vmul.f32 %v2752_v18, %v6132_v8 }
 0x4ab   : > { %v2756_v17 = vadd.f32 %v2754_v50, %v2748_v57  ;;  %v2757_v28 = vadd.f32 %v2755_v48, %v2749_v22  ;;  %v3184_v57 = vld [vmem:[%s3391_s26] sm:$0xff]  ;;  %s2868_s26 = scalar_lea.sflag [#allocation3], %s404_s20 }
 0x4ac   : > { %v2858_v32 = vcombine.high %v3184_v57, %v3184_v57 }
 0x4ad   : > { %v2760_v44 = vpop.permute.xlu1 %2759 }
 0x4ae   : > { %v2762_v43 = vmul.f32 %v2760_v44, %v6135_v30  ;;  %v2763_v4 = vmul.f32 %v2760_v44, %v6136_v41 }
 0x4b0   : > { %v2764_v60 = vadd.f32 %v2762_v43, %v2756_v17  ;;  %v2765_v2 = vadd.f32 %v2763_v4, %v2757_v28 }
 0x4b2   : > { %v2768_v12 = vpop.permute.xlu1 %2767 }
 0x4b3   : > { %v2770_v6 = vmul.f32 %v2768_v12, %v6139_v37  ;;  %v2771_v55 = vmul.f32 %v2768_v12, %v6140_v0 }
 0x4b5   : > { %v2772_v52 = vadd.f32 %v2770_v6, %v2764_v60  ;;  %v2773_v34 = vadd.f32 %v2771_v55, %v2765_v2  ;;  %s3002_s17 = spop %3001 }
 0x4b6   : > { %v2778_v18 = vstv %s3002_s17  ;;  %s3189_s17 = sshll.u32 %s3263_s25, 4  ;;  %s3190_s17 = int_to_ptr.vmem [resolvable:$false] %s3189_s17 }
 0x4b7   : > { %v2774_v20 = vadd.f32 %v2772_v52, %v2739_v9  ;;  %v2775_v35 = vadd.f32 %v2773_v34, %v2740_v29  ;;  %s3004_s19 = spop %3003  ;;  %v2780_v51 = vmul.f32 %v2778_v18, %v5294_v54  ;;  %v2781_v39 = vmul.f32 %v2778_v18, %v5298_v36  ;;  %v2812_v31 = vpop.permute.xlu1 %2811  ;;  %p3192_p0 = scmp.lt.s32.totalorder %s5407_s28, %s3190_s17 }
 0x4b8   : > { %v2784_v38 = vstv %s3004_s19  ;;  %s3191_s19 = scalar_lea.vmem %s3190_s17, 256 }
 0x4b9   : > { %v2786_v49 = vmul.f32 %v2784_v38, %v2774_v20  ;;  %v2787_v21 = vmul.f32 %v2784_v38, %v2775_v35  ;;  %p3193_p1 = scmp.lt.s32.totalorder %s3191_s19, %s3185_s15 }
 0x4bb   : > { %v2788_v24 = vadd.f32 %v2786_v49, %v2780_v51  ;;  %v2789_v13 = vadd.f32 %v2787_v21, %v2781_v39  ;;  %p3194_p2 = por %p3193_p1, %p3192_p0 }
 0x4bc   : > { %v2828_v50 = vpop.permute.xlu1 %2827 }
 0x4bd   : > { %v2790_v33 = vmul.f32 0.2, %v2788_v24  ;;  %v2791_v1 = vmul.f32 0.2, %v2789_v13  ;;  %p3195_p3 = pnand %p3194_p2, %p3188_p13 }
 0x4bf   : > { %v2792_v42 = vmax.f32 %v2788_v24, %v2790_v33  ;;  %v2793_v62 = vmax.f32 %v2789_v13, %v2791_v1 }
 0x4c1   : > { %v2803_v26 = vrot.slane %v2792_v42, %v6004_v63  ;;  %v2807_v16 = vrot.slane %v2793_v62, %v6004_v63  ;;  %v2821_v54 = vrot.slane %v2793_v62, %v6005_v23  ;;  %v2817_v40 = vrot.slane %v2792_v42, %v6005_v23 }
 0x4c2   : > { %v2849_v36 = vrot.slane %v2792_v42, %v6007_v7  ;;  %v2853_v10 = vrot.slane %v2793_v62, %v6007_v7  ;;  %v2837_v15 = vrot.slane %v2793_v62, %v6006_v14  ;;  %v2833_v8 = vrot.slane %v2792_v42, %v6006_v14 }
 0x4c3   : > { %v2808_v48 = vmul.f32 %v2803_v26, %v2798_v58  ;;  %v2809_v44 = vmul.f32 %v2807_v16, %v2798_v58  ;;  %v2822_v53 = vmul.f32 %v2817_v40, %v2812_v31  ;;  %v2823_v63 = vmul.f32 %v2821_v54, %v2812_v31 }
 0x4c4   : > { %v2838_v59 = vmul.f32 %v2833_v8, %v2828_v50  ;;  %v2839_v3 = vmul.f32 %v2837_v15, %v2828_v50  ;;  %v2854_v7 = vmul.f32 %v2849_v36, %v2844_v61  ;;  %v2855_v22 = vmul.f32 %v2853_v10, %v2844_v61 }
 0x4c5   : > { %v2824_v23 = vadd.f32 %v2822_v53, %v2808_v48  ;;  %v2825_v19 = vadd.f32 %v2823_v63, %v2809_v44 }
 0x4c7   : > { %v2840_v30 = vadd.f32 %v2838_v59, %v2824_v23  ;;  %v2841_v14 = vadd.f32 %v2839_v3, %v2825_v19 }
 0x4c9   : > { %v2856_v43 = vadd.f32 %v2854_v7, %v2840_v30  ;;  %v2857_v41 = vadd.f32 %v2855_v22, %v2841_v14 }
 0x4cb   : > { %v2860_v4 = vadd.f32 %v3184_v57, %v2856_v43  ;;  %v2861_v25 = vadd.f32 %v2858_v32, %v2857_v41 }
 0x4cd   : > { %v2864_v47 = vcombine.low %v2860_v4, %v2861_v25 }
 0x4cf   : > { %2866 = vst [vmem:[%s406_s18] sm:$0xff] %v2864_v47 }
 0x4d0   : > { %3198 = shalt.err (!%p3195_p3)
}
 0x4d1   : > { %s3199_s20 = scalar_lea.hbm %s5405_s4, 128  ;;  %s3203_s18 = scalar_lea.hbm %s5461_s12, 256 }
 0x4d2   : > { %p3200_p4 = scmp.ne.s32.totalorder %s5405_s4, %s3199_s20  ;;  %p3204_p9 = scmp.lt.u32.totalorder %s5405_s4, %s5461_s12 }
 0x4d3   : > { %p3205_p10 = scmp.lt.u32.totalorder %s3203_s18, %s3199_s20  ;;  %p3207_p12 = scmp.lt.u32.totalorder %s3199_s20, %s5405_s4 }
 0x4d4   : > { %p3201_p7 = pnand %p3200_p4, %p3367_p5 }
 0x4d5   : > { %p3206_p11 = por %p3205_p10, %p3204_p9 }
 0x4d6   : > { %p3202_p8 = pneg %p3201_p7 }
 0x4d7   : > { %p3208_p13 = por %p3207_p12, %p3206_p11 }
 0x4d9   : > { %p3209_p0 = pnand %p3208_p13, %p3202_p8 }
 0x4db   : > { %3212 = shalt.err (!%p3209_p0)
}
 0x4dc   : > { %3005 = dma.vmem_to_hbm [thread:$0]  (%p3367_p5), %s5407_s28, 128, %s5405_s4, %s2868_s26  }
 0x4dd PF: > { %p3011_p1 = scmp.ge.s32.totalorder %s3247_s24, 2  ;;  %s2894_s15 = sand.u32 1, %s3235_s21  }
 0x4de   : > { %s2895_s25 = scalar_lea.sflag [#allocation3], %s2894_s15 }
 0x4df   : > { %p3008_p2 = pnand %p3011_p1, %p3371_p6 }
 0x4e1   : > { %3230 = dma.done.wait (!%p3008_p2), %s2895_s25, 128  }
 0x4e2   : > { %3232 = vsyncadd (!%p3008_p2), %s2895_s25, 4294967168  ;;  %p22_p3 = scmp.ge.s32.totalorder %s3354_s27, 4   ;;  %s6141_s21 = smov %s3239_s22 }
 0x4e3   : > { %s6142_s22 = smov %s3243_s23  ;;  %s6143_s23 = smov %s3365_s30 }
 0x4e4   : > { %s6144_s24 = smov %s3354_s27  ;;  %24 = sbr.rel (!%p22_p3) target bundleno = 7 (0x7), region = 143 }
 0x4eb   :  { %2900 = vsyncpa [#allocation3], 1 }
 0x4ec   :  { %2902 = vsyncpa [#allocation3 + $0x1], 1 }

</bundles_post_ra>
